<compile_context>
chip_gen: v7x
topology: tpu7x:2x2x1
jax: 0.10.0
libtpu: 0.0.40
codegen_flags: <defaults>
</compile_context>

<pallas_src>
import functools

import jax
import jax.numpy as jnp
from jax.experimental import pallas as pl
from jax.experimental.pallas import tpu as pltpu

# ------------------------- module hyper-parameters -------------------------
VOCAB_SIZE = 50
EMBEDDING_DIM = 32
LSTM_HIDDEN_SIZE = 32
LSTM_NUM_LAYERS = 2
IMG_FEATURE_DIM = 64
PAD_INDEX = 0


# ------------------------------ fused kernel -------------------------------
def _lstm_stack_2layer(x_all, wih1, whh1, b1, wih2, whh2, b2, hseq_sc, T, N, H):
    """Two stacked LSTM layers (PyTorch gate order i, f, g, o), zero init state.

    x_all:   [T*N, E] time-major-flattened input (value, already in vregs).
    hseq_sc: VMEM ref [T*N, H] holding the layer-1 hidden sequence.
    Returns the final hidden state of layer 2: [N, H].
    """

    def recurrence(gx, whh, store_ref):
        h = jnp.zeros((N, H), jnp.float32)
        c = jnp.zeros((N, H), jnp.float32)
        for t in range(T):                      # fully unrolled (T static, small)
            gates = gx[t * N:(t + 1) * N, :] + jnp.dot(
                h, whh, preferred_element_type=jnp.float32)      # [N, 4H]
            sig = jax.nn.sigmoid(gates)         # one full-vreg EUP pass
            tnh = jnp.tanh(gates)               # one full-vreg EUP pass
            i_g = sig[:, 0 * H:1 * H]
            f_g = sig[:, 1 * H:2 * H]
            g_g = tnh[:, 2 * H:3 * H]
            o_g = sig[:, 3 * H:4 * H]
            c = f_g * c + i_g * g_g
            h = o_g * jnp.tanh(c)
            if store_ref is not None:
                store_ref[pl.ds(t * N, N), :] = h
        return h

    # layer 1: hoisted input GEMM (bias broadcast hoisted with it)
    gx1 = jnp.dot(x_all, wih1, preferred_element_type=jnp.float32) + b1
    recurrence(gx1, whh1, hseq_sc)
    # layer 2: hoisted input GEMM over the layer-1 sequence; no hseq writeback
    gx2 = jnp.dot(hseq_sc[...], wih2, preferred_element_type=jnp.float32) + b2
    return recurrence(gx2, whh2, None)


def _memory_network_kernel(
        qx_ref, hx_ref, img_ref, bias_ref,
        q_wih1_ref, q_whh1_ref, q_b1_ref, q_wih2_ref, q_whh2_ref, q_b2_ref,
        f_wih1_ref, f_whh1_ref, f_b1_ref, f_wih2_ref, f_whh2_ref, f_b2_ref,
        w1i_ref, w1q_ref, b1_ref, w2_ref, b2_ref,
        out_ref,
        q_hseq_sc, f_hseq_sc,
        *, T_q, T_h, N, H):
    # ----- question branch (2-layer LSTM, last hidden state) -----
    q_last = _lstm_stack_2layer(
        qx_ref[...], q_wih1_ref[...], q_whh1_ref[...], q_b1_ref[...],
        q_wih2_ref[...], q_whh2_ref[...], q_b2_ref[...],
        q_hseq_sc, T_q, N, H)

    # ----- fact / history branch (2-layer LSTM, last hidden state) -----
    f_last = _lstm_stack_2layer(
        hx_ref[...], f_wih1_ref[...], f_whh1_ref[...], f_b1_ref[...],
        f_wih2_ref[...], f_whh2_ref[...], f_b2_ref[...],
        f_hseq_sc, T_h, N, H)

    # ----- fc_1(concat([img, q_last])) == img @ W1_img + q_last @ W1_q -----
    query = jnp.tanh(
        jnp.dot(img_ref[...], w1i_ref[...], preferred_element_type=jnp.float32)
        + jnp.dot(q_last, w1q_ref[...], preferred_element_type=jnp.float32)
        + b1_ref[...])                                            # [N, H]
    # dropout: eval mode -> identity

    # ----- block-diagonal causal prefix attention over history rounds -----
    scores = jnp.dot(query, f_last.T,
                     preferred_element_type=jnp.float32)          # [N, N]
    scores = scores + bias_ref[...]               # 0 allowed / -1e30 masked
    m = jnp.max(scores, axis=-1, keepdims=True)
    p = jnp.exp(scores - m)                       # masked entries underflow to 0
    p = p * pl.reciprocal(jnp.sum(p, axis=-1, keepdims=True), approx=True)
    attended = jnp.dot(p, f_last, preferred_element_type=jnp.float32)  # [N, H]

    att = jnp.tanh(jnp.dot(attended, w2_ref[...],
                           preferred_element_type=jnp.float32) + b2_ref[...])
    # dropout: eval mode -> identity
    out_ref[...] = query + att


# ---------------------- deterministic parameter setup ----------------------
def init_params(key):
    E, H, V, D = EMBEDDING_DIM, LSTM_HIDDEN_SIZE, VOCAB_SIZE, IMG_FEATURE_DIM
    ks = jax.random.split(key, 8)

    emb = 0.1 * jax.random.normal(ks[0], (V, E), jnp.float32)
    emb = emb.at[PAD_INDEX].set(0.0)                     # padding_idx -> zero row

    def lstm_stack(k, in_dim):
        layers = []
        for l in range(LSTM_NUM_LAYERS):
            k1, k2, k3, k4, k = jax.random.split(k, 5)
            d_in = in_dim if l == 0 else H
            s = 1.0 / jnp.sqrt(H)
            w_ih = jax.random.uniform(k1, (d_in, 4 * H), jnp.float32, -s, s)
            w_hh = jax.random.uniform(k2, (H, 4 * H), jnp.float32, -s, s)
            # PyTorch has both b_ih and b_hh; the effective bias is their sum.
            b = (jax.random.uniform(k3, (1, 4 * H), jnp.float32, -s, s)
                 + jax.random.uniform(k4, (1, 4 * H), jnp.float32, -s, s))
            layers.append((w_ih, w_hh, b))
        return layers

    q_lstm = lstm_stack(ks[1], E)
    f_lstm = lstm_stack(ks[2], E)

    lim1 = float(jnp.sqrt(6.0 / (D + H)))                # kaiming_uniform fan_in
    w1 = jax.random.uniform(ks[3], (D + H, H), jnp.float32, -lim1, lim1)
    b1 = jnp.zeros((1, H), jnp.float32)                  # nn.init.constant_(bias, 0)
    lim2 = float(jnp.sqrt(6.0 / H))
    w2 = jax.random.uniform(ks[4], (H, H), jnp.float32, -lim2, lim2)
    b2 = jnp.zeros((1, H), jnp.float32)

    return dict(emb=emb, q_lstm=q_lstm, f_lstm=f_lstm,
                w1_img=w1[:D], w1_q=w1[D:], b1=b1, w2=w2, b2=b2)


# ------------------------------ full forward -------------------------------
def memory_network_forward(params, img_features, questions, history):
    B, R, L = questions.shape
    _, _, Lh = history.shape
    H = LSTM_HIDDEN_SIZE
    E = EMBEDDING_DIM
    D = IMG_FEATURE_DIM
    N = B * R

    emb = params["emb"]
    # transpose the cheap int32 token ids to time-major, then gather once;
    # the [T, N, E] -> [T*N, E] flatten is free in XLA and fuses with the gather.
    q_tok_tm = questions.reshape(N, L).T                         # [L, N] int32
    q_x = jnp.take(emb, q_tok_tm, axis=0).reshape(L * N, E)
    h_tok_tm = history.reshape(N, Lh).T                          # [Lh, N] int32
    h_x = jnp.take(emb, h_tok_tm, axis=0).reshape(Lh * N, E)

    # img_features.repeat(1, rounds, 1).view(B*R, Dimg)
    img_rep = jnp.broadcast_to(
        img_features.astype(jnp.float32).reshape(B, 1, D), (B, R, D)
    ).reshape(N, D)

    # block-diagonal (per dialog) causal additive attention mask, [N, N]
    idx = jnp.arange(N)
    allowed = ((idx[:, None] // R) == (idx[None, :] // R)) & (
        idx[None, :] <= idx[:, None])
    attn_bias = jnp.where(allowed, 0.0, -1e30).astype(jnp.float32)

    qp, fp = params["q_lstm"], params["f_lstm"]
    kernel = functools.partial(_memory_network_kernel,
                               T_q=L, T_h=Lh, N=N, H=H)
    vmem = pl.BlockSpec(memory_space=pltpu.MemorySpace.VMEM)

    out = pl.pallas_call(
        kernel,
        out_shape=jax.ShapeDtypeStruct((N, H), jnp.float32),
        in_specs=[vmem] * 21,
        out_specs=vmem,
        scratch_shapes=[pltpu.VMEM((L * N, H), jnp.float32),    # q layer-1 hseq
                        pltpu.VMEM((Lh * N, H), jnp.float32)],  # f layer-1 hseq
    )(q_x, h_x, img_rep, attn_bias,
      qp[0][0], qp[0][1], qp[0][2], qp[1][0], qp[1][1], qp[1][2],
      fp[0][0], fp[0][1], fp[0][2], fp[1][0], fp[1][1], fp[1][2],
      params["w1_img"], params["w1_q"], params["b1"],
      params["w2"], params["b2"])

    return out.reshape(B, R, H)


if __name__ == "__main__":
    key = jax.random.PRNGKey(0)
    kp, ki, kq, kh = jax.random.split(key, 4)

    B, R, L, Lh = 2, 4, 8, 10
    params = init_params(kp)
    img_features = jax.random.normal(ki, (B, 1, IMG_FEATURE_DIM), jnp.float32)
    questions = jax.random.randint(kq, (B, R, L), 0, VOCAB_SIZE, dtype=jnp.int32)
    history = jax.random.randint(kh, (B, R, Lh), 0, VOCAB_SIZE, dtype=jnp.int32)

    fwd = jax.jit(memory_network_forward)
    out = fwd(params, img_features, questions, history)
    out = jax.block_until_ready(out)

    assert out.shape == (B, R, LSTM_HIDDEN_SIZE), out.shape
    assert bool(jnp.all(jnp.isfinite(out)))
    print("KERNEL_OK")
</pallas_src>

<mosaic_0001>
module attributes {stable_mosaic.version = 11 : i64} {
  func.func @_memory_network_kernel(%arg0: memref<64x32xf32, #tpu.memory_space<vmem>>, %arg1: memref<80x32xf32, #tpu.memory_space<vmem>>, %arg2: memref<8x64xf32, #tpu.memory_space<vmem>>, %arg3: memref<8x8xf32, #tpu.memory_space<vmem>>, %arg4: memref<32x128xf32, #tpu.memory_space<vmem>>, %arg5: memref<32x128xf32, #tpu.memory_space<vmem>>, %arg6: memref<1x128xf32, #tpu.memory_space<vmem>>, %arg7: memref<32x128xf32, #tpu.memory_space<vmem>>, %arg8: memref<32x128xf32, #tpu.memory_space<vmem>>, %arg9: memref<1x128xf32, #tpu.memory_space<vmem>>, %arg10: memref<32x128xf32, #tpu.memory_space<vmem>>, %arg11: memref<32x128xf32, #tpu.memory_space<vmem>>, %arg12: memref<1x128xf32, #tpu.memory_space<vmem>>, %arg13: memref<32x128xf32, #tpu.memory_space<vmem>>, %arg14: memref<32x128xf32, #tpu.memory_space<vmem>>, %arg15: memref<1x128xf32, #tpu.memory_space<vmem>>, %arg16: memref<64x32xf32, #tpu.memory_space<vmem>>, %arg17: memref<32x32xf32, #tpu.memory_space<vmem>>, %arg18: memref<1x32xf32, #tpu.memory_space<vmem>>, %arg19: memref<32x32xf32, #tpu.memory_space<vmem>>, %arg20: memref<1x32xf32, #tpu.memory_space<vmem>>, %arg21: memref<8x32xf32, #tpu.memory_space<vmem>>, %arg22: memref<64x32xf32, #tpu.memory_space<vmem>>, %arg23: memref<80x32xf32, #tpu.memory_space<vmem>>) attributes {dimension_semantics = [], scalar_prefetch = 0 : i64, scratch_operands = 2 : i64, tpu.core_type = #tpu.core_type<tc>} {
    %c0 = arith.constant 0 : index
    %c0_0 = arith.constant 0 : index
    %0 = vector.load %arg0[%c0, %c0_0] : memref<64x32xf32, #tpu.memory_space<vmem>>, vector<64x32xf32>
    %c0_1 = arith.constant 0 : index
    %c0_2 = arith.constant 0 : index
    %1 = vector.load %arg4[%c0_1, %c0_2] : memref<32x128xf32, #tpu.memory_space<vmem>>, vector<32x128xf32>
    %c0_3 = arith.constant 0 : index
    %c0_4 = arith.constant 0 : index
    %2 = vector.load %arg5[%c0_3, %c0_4] : memref<32x128xf32, #tpu.memory_space<vmem>>, vector<32x128xf32>
    %c0_5 = arith.constant 0 : index
    %c0_6 = arith.constant 0 : index
    %3 = vector.load %arg6[%c0_5, %c0_6] : memref<1x128xf32, #tpu.memory_space<vmem>>, vector<1x128xf32>
    %c0_7 = arith.constant 0 : index
    %c0_8 = arith.constant 0 : index
    %4 = vector.load %arg7[%c0_7, %c0_8] : memref<32x128xf32, #tpu.memory_space<vmem>>, vector<32x128xf32>
    %c0_9 = arith.constant 0 : index
    %c0_10 = arith.constant 0 : index
    %5 = vector.load %arg8[%c0_9, %c0_10] : memref<32x128xf32, #tpu.memory_space<vmem>>, vector<32x128xf32>
    %c0_11 = arith.constant 0 : index
    %c0_12 = arith.constant 0 : index
    %6 = vector.load %arg9[%c0_11, %c0_12] : memref<1x128xf32, #tpu.memory_space<vmem>>, vector<1x128xf32>
    %cst = arith.constant dense<0.000000e+00> : vector<64x128xf32>
    %7 = tpu.matmul %0, %1, %cst {dimension_numbers = #tpu.dot_dimension_numbers<[1], [0], [0], [1], [0, 0, 1, 1], [], []>} : vector<64x32xf32>, vector<32x128xf32>, vector<64x128xf32> -> vector<64x128xf32>
    %8 = vector.broadcast %3 : vector<1x128xf32> to vector<64x128xf32>
    %9 = arith.addf %7, %8 : vector<64x128xf32>
    %cst_13 = arith.constant 0.000000e+00 : f32
    %10 = vector.broadcast %cst_13 : f32 to vector<8x32xf32>
    %cst_14 = arith.constant 0.000000e+00 : f32
    %11 = vector.broadcast %cst_14 : f32 to vector<8x32xf32>
    %12 = vector.extract_strided_slice %9 {offsets = [0, 0], sizes = [8, 128], strides = [1, 1]} : vector<64x128xf32> to vector<8x128xf32>
    %cst_15 = arith.constant dense<0.000000e+00> : vector<8x128xf32>
    %13 = tpu.matmul %10, %2, %cst_15 {dimension_numbers = #tpu.dot_dimension_numbers<[1], [0], [0], [1], [0, 0, 1, 1], [], []>} : vector<8x32xf32>, vector<32x128xf32>, vector<8x128xf32> -> vector<8x128xf32>
    %14 = arith.addf %12, %13 : vector<8x128xf32>
    %15 = arith.negf %14 : vector<8x128xf32>
    %16 = math.exp %15 : vector<8x128xf32>
    %cst_16 = arith.constant 1.000000e+00 : f32
    %17 = vector.broadcast %cst_16 : f32 to vector<8x128xf32>
    %18 = arith.addf %17, %16 : vector<8x128xf32>
    %19 = arith.divf %17, %18 : vector<8x128xf32>
    %20 = math.tanh %14 : vector<8x128xf32>
    %21 = vector.extract_strided_slice %19 {offsets = [0, 0], sizes = [8, 32], strides = [1, 1]} : vector<8x128xf32> to vector<8x32xf32>
    %22 = vector.extract_strided_slice %19 {offsets = [0, 32], sizes = [8, 32], strides = [1, 1]} : vector<8x128xf32> to vector<8x32xf32>
    %23 = vector.extract_strided_slice %20 {offsets = [0, 64], sizes = [8, 32], strides = [1, 1]} : vector<8x128xf32> to vector<8x32xf32>
    %24 = vector.extract_strided_slice %19 {offsets = [0, 96], sizes = [8, 32], strides = [1, 1]} : vector<8x128xf32> to vector<8x32xf32>
    %25 = arith.mulf %22, %11 : vector<8x32xf32>
    %26 = arith.mulf %21, %23 : vector<8x32xf32>
    %27 = arith.addf %25, %26 : vector<8x32xf32>
    %28 = math.tanh %27 : vector<8x32xf32>
    %29 = arith.mulf %24, %28 : vector<8x32xf32>
    %c0_17 = arith.constant 0 : index
    %c0_18 = arith.constant 0 : index
    %30 = vector.load %arg22[%c0_17, %c0_18] : memref<64x32xf32, #tpu.memory_space<vmem>>, vector<8x32xf32>
    tpu.vector_store %arg22[%c0_17, %c0_18], %29 {strides = array<i32>} : memref<64x32xf32, #tpu.memory_space<vmem>>, vector<8x32xf32>,
    %31 = vector.extract_strided_slice %9 {offsets = [8, 0], sizes = [8, 128], strides = [1, 1]} : vector<64x128xf32> to vector<8x128xf32>
    %cst_19 = arith.constant dense<0.000000e+00> : vector<8x128xf32>
    %32 = tpu.matmul %29, %2, %cst_19 {dimension_numbers = #tpu.dot_dimension_numbers<[1], [0], [0], [1], [0, 0, 1, 1], [], []>} : vector<8x32xf32>, vector<32x128xf32>, vector<8x128xf32> -> vector<8x128xf32>
    %33 = arith.addf %31, %32 : vector<8x128xf32>
    %34 = arith.negf %33 : vector<8x128xf32>
    %35 = math.exp %34 : vector<8x128xf32>
    %cst_20 = arith.constant 1.000000e+00 : f32
    %36 = vector.broadcast %cst_20 : f32 to vector<8x128xf32>
    %37 = arith.addf %36, %35 : vector<8x128xf32>
    %38 = arith.divf %36, %37 : vector<8x128xf32>
    %39 = math.tanh %33 : vector<8x128xf32>
    %40 = vector.extract_strided_slice %38 {offsets = [0, 0], sizes = [8, 32], strides = [1, 1]} : vector<8x128xf32> to vector<8x32xf32>
    %41 = vector.extract_strided_slice %38 {offsets = [0, 32], sizes = [8, 32], strides = [1, 1]} : vector<8x128xf32> to vector<8x32xf32>
    %42 = vector.extract_strided_slice %39 {offsets = [0, 64], sizes = [8, 32], strides = [1, 1]} : vector<8x128xf32> to vector<8x32xf32>
    %43 = vector.extract_strided_slice %38 {offsets = [0, 96], sizes = [8, 32], strides = [1, 1]} : vector<8x128xf32> to vector<8x32xf32>
    %44 = arith.mulf %41, %27 : vector<8x32xf32>
    %45 = arith.mulf %40, %42 : vector<8x32xf32>
    %46 = arith.addf %44, %45 : vector<8x32xf32>
    %47 = math.tanh %46 : vector<8x32xf32>
    %48 = arith.mulf %43, %47 : vector<8x32xf32>
    %c8 = arith.constant 8 : index
    %c0_21 = arith.constant 0 : index
    %49 = vector.load %arg22[%c8, %c0_21] : memref<64x32xf32, #tpu.memory_space<vmem>>, vector<8x32xf32>
    tpu.vector_store %arg22[%c8, %c0_21], %48 {strides = array<i32>} : memref<64x32xf32, #tpu.memory_space<vmem>>, vector<8x32xf32>,
    %50 = vector.extract_strided_slice %9 {offsets = [16, 0], sizes = [8, 128], strides = [1, 1]} : vector<64x128xf32> to vector<8x128xf32>
    %cst_22 = arith.constant dense<0.000000e+00> : vector<8x128xf32>
    %51 = tpu.matmul %48, %2, %cst_22 {dimension_numbers = #tpu.dot_dimension_numbers<[1], [0], [0], [1], [0, 0, 1, 1], [], []>} : vector<8x32xf32>, vector<32x128xf32>, vector<8x128xf32> -> vector<8x128xf32>
    %52 = arith.addf %50, %51 : vector<8x128xf32>
    %53 = arith.negf %52 : vector<8x128xf32>
    %54 = math.exp %53 : vector<8x128xf32>
    %cst_23 = arith.constant 1.000000e+00 : f32
    %55 = vector.broadcast %cst_23 : f32 to vector<8x128xf32>
    %56 = arith.addf %55, %54 : vector<8x128xf32>
    %57 = arith.divf %55, %56 : vector<8x128xf32>
    %58 = math.tanh %52 : vector<8x128xf32>
    %59 = vector.extract_strided_slice %57 {offsets = [0, 0], sizes = [8, 32], strides = [1, 1]} : vector<8x128xf32> to vector<8x32xf32>
    %60 = vector.extract_strided_slice %57 {offsets = [0, 32], sizes = [8, 32], strides = [1, 1]} : vector<8x128xf32> to vector<8x32xf32>
    %61 = vector.extract_strided_slice %58 {offsets = [0, 64], sizes = [8, 32], strides = [1, 1]} : vector<8x128xf32> to vector<8x32xf32>
    %62 = vector.extract_strided_slice %57 {offsets = [0, 96], sizes = [8, 32], strides = [1, 1]} : vector<8x128xf32> to vector<8x32xf32>
    %63 = arith.mulf %60, %46 : vector<8x32xf32>
    %64 = arith.mulf %59, %61 : vector<8x32xf32>
    %65 = arith.addf %63, %64 : vector<8x32xf32>
    %66 = math.tanh %65 : vector<8x32xf32>
    %67 = arith.mulf %62, %66 : vector<8x32xf32>
    %c16 = arith.constant 16 : index
    %c0_24 = arith.constant 0 : index
    %68 = vector.load %arg22[%c16, %c0_24] : memref<64x32xf32, #tpu.memory_space<vmem>>, vector<8x32xf32>
    tpu.vector_store %arg22[%c16, %c0_24], %67 {strides = array<i32>} : memref<64x32xf32, #tpu.memory_space<vmem>>, vector<8x32xf32>,
    %69 = vector.extract_strided_slice %9 {offsets = [24, 0], sizes = [8, 128], strides = [1, 1]} : vector<64x128xf32> to vector<8x128xf32>
    %cst_25 = arith.constant dense<0.000000e+00> : vector<8x128xf32>
    %70 = tpu.matmul %67, %2, %cst_25 {dimension_numbers = #tpu.dot_dimension_numbers<[1], [0], [0], [1], [0, 0, 1, 1], [], []>} : vector<8x32xf32>, vector<32x128xf32>, vector<8x128xf32> -> vector<8x128xf32>
    %71 = arith.addf %69, %70 : vector<8x128xf32>
    %72 = arith.negf %71 : vector<8x128xf32>
    %73 = math.exp %72 : vector<8x128xf32>
    %cst_26 = arith.constant 1.000000e+00 : f32
    %74 = vector.broadcast %cst_26 : f32 to vector<8x128xf32>
    %75 = arith.addf %74, %73 : vector<8x128xf32>
    %76 = arith.divf %74, %75 : vector<8x128xf32>
    %77 = math.tanh %71 : vector<8x128xf32>
    %78 = vector.extract_strided_slice %76 {offsets = [0, 0], sizes = [8, 32], strides = [1, 1]} : vector<8x128xf32> to vector<8x32xf32>
    %79 = vector.extract_strided_slice %76 {offsets = [0, 32], sizes = [8, 32], strides = [1, 1]} : vector<8x128xf32> to vector<8x32xf32>
    %80 = vector.extract_strided_slice %77 {offsets = [0, 64], sizes = [8, 32], strides = [1, 1]} : vector<8x128xf32> to vector<8x32xf32>
    %81 = vector.extract_strided_slice %76 {offsets = [0, 96], sizes = [8, 32], strides = [1, 1]} : vector<8x128xf32> to vector<8x32xf32>
    %82 = arith.mulf %79, %65 : vector<8x32xf32>
    %83 = arith.mulf %78, %80 : vector<8x32xf32>
    %84 = arith.addf %82, %83 : vector<8x32xf32>
    %85 = math.tanh %84 : vector<8x32xf32>
    %86 = arith.mulf %81, %85 : vector<8x32xf32>
    %c24 = arith.constant 24 : index
    %c0_27 = arith.constant 0 : index
    %87 = vector.load %arg22[%c24, %c0_27] : memref<64x32xf32, #tpu.memory_space<vmem>>, vector<8x32xf32>
    tpu.vector_store %arg22[%c24, %c0_27], %86 {strides = array<i32>} : memref<64x32xf32, #tpu.memory_space<vmem>>, vector<8x32xf32>,
    %88 = vector.extract_strided_slice %9 {offsets = [32, 0], sizes = [8, 128], strides = [1, 1]} : vector<64x128xf32> to vector<8x128xf32>
    %cst_28 = arith.constant dense<0.000000e+00> : vector<8x128xf32>
    %89 = tpu.matmul %86, %2, %cst_28 {dimension_numbers = #tpu.dot_dimension_numbers<[1], [0], [0], [1], [0, 0, 1, 1], [], []>} : vector<8x32xf32>, vector<32x128xf32>, vector<8x128xf32> -> vector<8x128xf32>
    %90 = arith.addf %88, %89 : vector<8x128xf32>
    %91 = arith.negf %90 : vector<8x128xf32>
    %92 = math.exp %91 : vector<8x128xf32>
    %cst_29 = arith.constant 1.000000e+00 : f32
    %93 = vector.broadcast %cst_29 : f32 to vector<8x128xf32>
    %94 = arith.addf %93, %92 : vector<8x128xf32>
    %95 = arith.divf %93, %94 : vector<8x128xf32>
    %96 = math.tanh %90 : vector<8x128xf32>
    %97 = vector.extract_strided_slice %95 {offsets = [0, 0], sizes = [8, 32], strides = [1, 1]} : vector<8x128xf32> to vector<8x32xf32>
    %98 = vector.extract_strided_slice %95 {offsets = [0, 32], sizes = [8, 32], strides = [1, 1]} : vector<8x128xf32> to vector<8x32xf32>
    %99 = vector.extract_strided_slice %96 {offsets = [0, 64], sizes = [8, 32], strides = [1, 1]} : vector<8x128xf32> to vector<8x32xf32>
    %100 = vector.extract_strided_slice %95 {offsets = [0, 96], sizes = [8, 32], strides = [1, 1]} : vector<8x128xf32> to vector<8x32xf32>
    %101 = arith.mulf %98, %84 : vector<8x32xf32>
    %102 = arith.mulf %97, %99 : vector<8x32xf32>
    %103 = arith.addf %101, %102 : vector<8x32xf32>
    %104 = math.tanh %103 : vector<8x32xf32>
    %105 = arith.mulf %100, %104 : vector<8x32xf32>
    %c32 = arith.constant 32 : index
    %c0_30 = arith.constant 0 : index
    %106 = vector.load %arg22[%c32, %c0_30] : memref<64x32xf32, #tpu.memory_space<vmem>>, vector<8x32xf32>
    tpu.vector_store %arg22[%c32, %c0_30], %105 {strides = array<i32>} : memref<64x32xf32, #tpu.memory_space<vmem>>, vector<8x32xf32>,
    %107 = vector.extract_strided_slice %9 {offsets = [40, 0], sizes = [8, 128], strides = [1, 1]} : vector<64x128xf32> to vector<8x128xf32>
    %cst_31 = arith.constant dense<0.000000e+00> : vector<8x128xf32>
    %108 = tpu.matmul %105, %2, %cst_31 {dimension_numbers = #tpu.dot_dimension_numbers<[1], [0], [0], [1], [0, 0, 1, 1], [], []>} : vector<8x32xf32>, vector<32x128xf32>, vector<8x128xf32> -> vector<8x128xf32>
    %109 = arith.addf %107, %108 : vector<8x128xf32>
    %110 = arith.negf %109 : vector<8x128xf32>
    %111 = math.exp %110 : vector<8x128xf32>
    %cst_32 = arith.constant 1.000000e+00 : f32
    %112 = vector.broadcast %cst_32 : f32 to vector<8x128xf32>
    %113 = arith.addf %112, %111 : vector<8x128xf32>
    %114 = arith.divf %112, %113 : vector<8x128xf32>
    %115 = math.tanh %109 : vector<8x128xf32>
    %116 = vector.extract_strided_slice %114 {offsets = [0, 0], sizes = [8, 32], strides = [1, 1]} : vector<8x128xf32> to vector<8x32xf32>
    %117 = vector.extract_strided_slice %114 {offsets = [0, 32], sizes = [8, 32], strides = [1, 1]} : vector<8x128xf32> to vector<8x32xf32>
    %118 = vector.extract_strided_slice %115 {offsets = [0, 64], sizes = [8, 32], strides = [1, 1]} : vector<8x128xf32> to vector<8x32xf32>
    %119 = vector.extract_strided_slice %114 {offsets = [0, 96], sizes = [8, 32], strides = [1, 1]} : vector<8x128xf32> to vector<8x32xf32>
    %120 = arith.mulf %117, %103 : vector<8x32xf32>
    %121 = arith.mulf %116, %118 : vector<8x32xf32>
    %122 = arith.addf %120, %121 : vector<8x32xf32>
    %123 = math.tanh %122 : vector<8x32xf32>
    %124 = arith.mulf %119, %123 : vector<8x32xf32>
    %c40 = arith.constant 40 : index
    %c0_33 = arith.constant 0 : index
    %125 = vector.load %arg22[%c40, %c0_33] : memref<64x32xf32, #tpu.memory_space<vmem>>, vector<8x32xf32>
    tpu.vector_store %arg22[%c40, %c0_33], %124 {strides = array<i32>} : memref<64x32xf32, #tpu.memory_space<vmem>>, vector<8x32xf32>,
    %126 = vector.extract_strided_slice %9 {offsets = [48, 0], sizes = [8, 128], strides = [1, 1]} : vector<64x128xf32> to vector<8x128xf32>
    %cst_34 = arith.constant dense<0.000000e+00> : vector<8x128xf32>
    %127 = tpu.matmul %124, %2, %cst_34 {dimension_numbers = #tpu.dot_dimension_numbers<[1], [0], [0], [1], [0, 0, 1, 1], [], []>} : vector<8x32xf32>, vector<32x128xf32>, vector<8x128xf32> -> vector<8x128xf32>
    %128 = arith.addf %126, %127 : vector<8x128xf32>
    %129 = arith.negf %128 : vector<8x128xf32>
    %130 = math.exp %129 : vector<8x128xf32>
    %cst_35 = arith.constant 1.000000e+00 : f32
    %131 = vector.broadcast %cst_35 : f32 to vector<8x128xf32>
    %132 = arith.addf %131, %130 : vector<8x128xf32>
    %133 = arith.divf %131, %132 : vector<8x128xf32>
    %134 = math.tanh %128 : vector<8x128xf32>
    %135 = vector.extract_strided_slice %133 {offsets = [0, 0], sizes = [8, 32], strides = [1, 1]} : vector<8x128xf32> to vector<8x32xf32>
    %136 = vector.extract_strided_slice %133 {offsets = [0, 32], sizes = [8, 32], strides = [1, 1]} : vector<8x128xf32> to vector<8x32xf32>
    %137 = vector.extract_strided_slice %134 {offsets = [0, 64], sizes = [8, 32], strides = [1, 1]} : vector<8x128xf32> to vector<8x32xf32>
    %138 = vector.extract_strided_slice %133 {offsets = [0, 96], sizes = [8, 32], strides = [1, 1]} : vector<8x128xf32> to vector<8x32xf32>
    %139 = arith.mulf %136, %122 : vector<8x32xf32>
    %140 = arith.mulf %135, %137 : vector<8x32xf32>
    %141 = arith.addf %139, %140 : vector<8x32xf32>
    %142 = math.tanh %141 : vector<8x32xf32>
    %143 = arith.mulf %138, %142 : vector<8x32xf32>
    %c48 = arith.constant 48 : index
    %c0_36 = arith.constant 0 : index
    %144 = vector.load %arg22[%c48, %c0_36] : memref<64x32xf32, #tpu.memory_space<vmem>>, vector<8x32xf32>
    tpu.vector_store %arg22[%c48, %c0_36], %143 {strides = array<i32>} : memref<64x32xf32, #tpu.memory_space<vmem>>, vector<8x32xf32>,
    %145 = vector.extract_strided_slice %9 {offsets = [56, 0], sizes = [8, 128], strides = [1, 1]} : vector<64x128xf32> to vector<8x128xf32>
    %cst_37 = arith.constant dense<0.000000e+00> : vector<8x128xf32>
    %146 = tpu.matmul %143, %2, %cst_37 {dimension_numbers = #tpu.dot_dimension_numbers<[1], [0], [0], [1], [0, 0, 1, 1], [], []>} : vector<8x32xf32>, vector<32x128xf32>, vector<8x128xf32> -> vector<8x128xf32>
    %147 = arith.addf %145, %146 : vector<8x128xf32>
    %148 = arith.negf %147 : vector<8x128xf32>
    %149 = math.exp %148 : vector<8x128xf32>
    %cst_38 = arith.constant 1.000000e+00 : f32
    %150 = vector.broadcast %cst_38 : f32 to vector<8x128xf32>
    %151 = arith.addf %150, %149 : vector<8x128xf32>
    %152 = arith.divf %150, %151 : vector<8x128xf32>
    %153 = math.tanh %147 : vector<8x128xf32>
    %154 = vector.extract_strided_slice %152 {offsets = [0, 0], sizes = [8, 32], strides = [1, 1]} : vector<8x128xf32> to vector<8x32xf32>
    %155 = vector.extract_strided_slice %152 {offsets = [0, 32], sizes = [8, 32], strides = [1, 1]} : vector<8x128xf32> to vector<8x32xf32>
    %156 = vector.extract_strided_slice %153 {offsets = [0, 64], sizes = [8, 32], strides = [1, 1]} : vector<8x128xf32> to vector<8x32xf32>
    %157 = vector.extract_strided_slice %152 {offsets = [0, 96], sizes = [8, 32], strides = [1, 1]} : vector<8x128xf32> to vector<8x32xf32>
    %158 = arith.mulf %155, %141 : vector<8x32xf32>
    %159 = arith.mulf %154, %156 : vector<8x32xf32>
    %160 = arith.addf %158, %159 : vector<8x32xf32>
    %161 = math.tanh %160 : vector<8x32xf32>
    %162 = arith.mulf %157, %161 : vector<8x32xf32>
    %c56 = arith.constant 56 : index
    %c0_39 = arith.constant 0 : index
    %163 = vector.load %arg22[%c56, %c0_39] : memref<64x32xf32, #tpu.memory_space<vmem>>, vector<8x32xf32>
    tpu.vector_store %arg22[%c56, %c0_39], %162 {strides = array<i32>} : memref<64x32xf32, #tpu.memory_space<vmem>>, vector<8x32xf32>,
    %c0_40 = arith.constant 0 : index
    %c0_41 = arith.constant 0 : index
    %164 = vector.load %arg22[%c0_40, %c0_41] : memref<64x32xf32, #tpu.memory_space<vmem>>, vector<64x32xf32>
    %cst_42 = arith.constant dense<0.000000e+00> : vector<64x128xf32>
    %165 = tpu.matmul %164, %4, %cst_42 {dimension_numbers = #tpu.dot_dimension_numbers<[1], [0], [0], [1], [0, 0, 1, 1], [], []>} : vector<64x32xf32>, vector<32x128xf32>, vector<64x128xf32> -> vector<64x128xf32>
    %166 = vector.broadcast %6 : vector<1x128xf32> to vector<64x128xf32>
    %167 = arith.addf %165, %166 : vector<64x128xf32>
    %cst_43 = arith.constant 0.000000e+00 : f32
    %168 = vector.broadcast %cst_43 : f32 to vector<8x32xf32>
    %cst_44 = arith.constant 0.000000e+00 : f32
    %169 = vector.broadcast %cst_44 : f32 to vector<8x32xf32>
    %170 = vector.extract_strided_slice %167 {offsets = [0, 0], sizes = [8, 128], strides = [1, 1]} : vector<64x128xf32> to vector<8x128xf32>
    %cst_45 = arith.constant dense<0.000000e+00> : vector<8x128xf32>
    %171 = tpu.matmul %168, %5, %cst_45 {dimension_numbers = #tpu.dot_dimension_numbers<[1], [0], [0], [1], [0, 0, 1, 1], [], []>} : vector<8x32xf32>, vector<32x128xf32>, vector<8x128xf32> -> vector<8x128xf32>
    %172 = arith.addf %170, %171 : vector<8x128xf32>
    %173 = arith.negf %172 : vector<8x128xf32>
    %174 = math.exp %173 : vector<8x128xf32>
    %cst_46 = arith.constant 1.000000e+00 : f32
    %175 = vector.broadcast %cst_46 : f32 to vector<8x128xf32>
    %176 = arith.addf %175, %174 : vector<8x128xf32>
    %177 = arith.divf %175, %176 : vector<8x128xf32>
    %178 = math.tanh %172 : vector<8x128xf32>
    %179 = vector.extract_strided_slice %177 {offsets = [0, 0], sizes = [8, 32], strides = [1, 1]} : vector<8x128xf32> to vector<8x32xf32>
    %180 = vector.extract_strided_slice %177 {offsets = [0, 32], sizes = [8, 32], strides = [1, 1]} : vector<8x128xf32> to vector<8x32xf32>
    %181 = vector.extract_strided_slice %178 {offsets = [0, 64], sizes = [8, 32], strides = [1, 1]} : vector<8x128xf32> to vector<8x32xf32>
    %182 = vector.extract_strided_slice %177 {offsets = [0, 96], sizes = [8, 32], strides = [1, 1]} : vector<8x128xf32> to vector<8x32xf32>
    %183 = arith.mulf %180, %169 : vector<8x32xf32>
    %184 = arith.mulf %179, %181 : vector<8x32xf32>
    %185 = arith.addf %183, %184 : vector<8x32xf32>
    %186 = math.tanh %185 : vector<8x32xf32>
    %187 = arith.mulf %182, %186 : vector<8x32xf32>
    %188 = vector.extract_strided_slice %167 {offsets = [8, 0], sizes = [8, 128], strides = [1, 1]} : vector<64x128xf32> to vector<8x128xf32>
    %cst_47 = arith.constant dense<0.000000e+00> : vector<8x128xf32>
    %189 = tpu.matmul %187, %5, %cst_47 {dimension_numbers = #tpu.dot_dimension_numbers<[1], [0], [0], [1], [0, 0, 1, 1], [], []>} : vector<8x32xf32>, vector<32x128xf32>, vector<8x128xf32> -> vector<8x128xf32>
    %190 = arith.addf %188, %189 : vector<8x128xf32>
    %191 = arith.negf %190 : vector<8x128xf32>
    %192 = math.exp %191 : vector<8x128xf32>
    %cst_48 = arith.constant 1.000000e+00 : f32
    %193 = vector.broadcast %cst_48 : f32 to vector<8x128xf32>
    %194 = arith.addf %193, %192 : vector<8x128xf32>
    %195 = arith.divf %193, %194 : vector<8x128xf32>
    %196 = math.tanh %190 : vector<8x128xf32>
    %197 = vector.extract_strided_slice %195 {offsets = [0, 0], sizes = [8, 32], strides = [1, 1]} : vector<8x128xf32> to vector<8x32xf32>
    %198 = vector.extract_strided_slice %195 {offsets = [0, 32], sizes = [8, 32], strides = [1, 1]} : vector<8x128xf32> to vector<8x32xf32>
    %199 = vector.extract_strided_slice %196 {offsets = [0, 64], sizes = [8, 32], strides = [1, 1]} : vector<8x128xf32> to vector<8x32xf32>
    %200 = vector.extract_strided_slice %195 {offsets = [0, 96], sizes = [8, 32], strides = [1, 1]} : vector<8x128xf32> to vector<8x32xf32>
    %201 = arith.mulf %198, %185 : vector<8x32xf32>
    %202 = arith.mulf %197, %199 : vector<8x32xf32>
    %203 = arith.addf %201, %202 : vector<8x32xf32>
    %204 = math.tanh %203 : vector<8x32xf32>
    %205 = arith.mulf %200, %204 : vector<8x32xf32>
    %206 = vector.extract_strided_slice %167 {offsets = [16, 0], sizes = [8, 128], strides = [1, 1]} : vector<64x128xf32> to vector<8x128xf32>
    %cst_49 = arith.constant dense<0.000000e+00> : vector<8x128xf32>
    %207 = tpu.matmul %205, %5, %cst_49 {dimension_numbers = #tpu.dot_dimension_numbers<[1], [0], [0], [1], [0, 0, 1, 1], [], []>} : vector<8x32xf32>, vector<32x128xf32>, vector<8x128xf32> -> vector<8x128xf32>
    %208 = arith.addf %206, %207 : vector<8x128xf32>
    %209 = arith.negf %208 : vector<8x128xf32>
    %210 = math.exp %209 : vector<8x128xf32>
    %cst_50 = arith.constant 1.000000e+00 : f32
    %211 = vector.broadcast %cst_50 : f32 to vector<8x128xf32>
    %212 = arith.addf %211, %210 : vector<8x128xf32>
    %213 = arith.divf %211, %212 : vector<8x128xf32>
    %214 = math.tanh %208 : vector<8x128xf32>
    %215 = vector.extract_strided_slice %213 {offsets = [0, 0], sizes = [8, 32], strides = [1, 1]} : vector<8x128xf32> to vector<8x32xf32>
    %216 = vector.extract_strided_slice %213 {offsets = [0, 32], sizes = [8, 32], strides = [1, 1]} : vector<8x128xf32> to vector<8x32xf32>
    %217 = vector.extract_strided_slice %214 {offsets = [0, 64], sizes = [8, 32], strides = [1, 1]} : vector<8x128xf32> to vector<8x32xf32>
    %218 = vector.extract_strided_slice %213 {offsets = [0, 96], sizes = [8, 32], strides = [1, 1]} : vector<8x128xf32> to vector<8x32xf32>
    %219 = arith.mulf %216, %203 : vector<8x32xf32>
    %220 = arith.mulf %215, %217 : vector<8x32xf32>
    %221 = arith.addf %219, %220 : vector<8x32xf32>
    %222 = math.tanh %221 : vector<8x32xf32>
    %223 = arith.mulf %218, %222 : vector<8x32xf32>
    %224 = vector.extract_strided_slice %167 {offsets = [24, 0], sizes = [8, 128], strides = [1, 1]} : vector<64x128xf32> to vector<8x128xf32>
    %cst_51 = arith.constant dense<0.000000e+00> : vector<8x128xf32>
    %225 = tpu.matmul %223, %5, %cst_51 {dimension_numbers = #tpu.dot_dimension_numbers<[1], [0], [0], [1], [0, 0, 1, 1], [], []>} : vector<8x32xf32>, vector<32x128xf32>, vector<8x128xf32> -> vector<8x128xf32>
    %226 = arith.addf %224, %225 : vector<8x128xf32>
    %227 = arith.negf %226 : vector<8x128xf32>
    %228 = math.exp %227 : vector<8x128xf32>
    %cst_52 = arith.constant 1.000000e+00 : f32
    %229 = vector.broadcast %cst_52 : f32 to vector<8x128xf32>
    %230 = arith.addf %229, %228 : vector<8x128xf32>
    %231 = arith.divf %229, %230 : vector<8x128xf32>
    %232 = math.tanh %226 : vector<8x128xf32>
    %233 = vector.extract_strided_slice %231 {offsets = [0, 0], sizes = [8, 32], strides = [1, 1]} : vector<8x128xf32> to vector<8x32xf32>
    %234 = vector.extract_strided_slice %231 {offsets = [0, 32], sizes = [8, 32], strides = [1, 1]} : vector<8x128xf32> to vector<8x32xf32>
    %235 = vector.extract_strided_slice %232 {offsets = [0, 64], sizes = [8, 32], strides = [1, 1]} : vector<8x128xf32> to vector<8x32xf32>
    %236 = vector.extract_strided_slice %231 {offsets = [0, 96], sizes = [8, 32], strides = [1, 1]} : vector<8x128xf32> to vector<8x32xf32>
    %237 = arith.mulf %234, %221 : vector<8x32xf32>
    %238 = arith.mulf %233, %235 : vector<8x32xf32>
    %239 = arith.addf %237, %238 : vector<8x32xf32>
    %240 = math.tanh %239 : vector<8x32xf32>
    %241 = arith.mulf %236, %240 : vector<8x32xf32>
    %242 = vector.extract_strided_slice %167 {offsets = [32, 0], sizes = [8, 128], strides = [1, 1]} : vector<64x128xf32> to vector<8x128xf32>
    %cst_53 = arith.constant dense<0.000000e+00> : vector<8x128xf32>
    %243 = tpu.matmul %241, %5, %cst_53 {dimension_numbers = #tpu.dot_dimension_numbers<[1], [0], [0], [1], [0, 0, 1, 1], [], []>} : vector<8x32xf32>, vector<32x128xf32>, vector<8x128xf32> -> vector<8x128xf32>
    %244 = arith.addf %242, %243 : vector<8x128xf32>
    %245 = arith.negf %244 : vector<8x128xf32>
    %246 = math.exp %245 : vector<8x128xf32>
    %cst_54 = arith.constant 1.000000e+00 : f32
    %247 = vector.broadcast %cst_54 : f32 to vector<8x128xf32>
    %248 = arith.addf %247, %246 : vector<8x128xf32>
    %249 = arith.divf %247, %248 : vector<8x128xf32>
    %250 = math.tanh %244 : vector<8x128xf32>
    %251 = vector.extract_strided_slice %249 {offsets = [0, 0], sizes = [8, 32], strides = [1, 1]} : vector<8x128xf32> to vector<8x32xf32>
    %252 = vector.extract_strided_slice %249 {offsets = [0, 32], sizes = [8, 32], strides = [1, 1]} : vector<8x128xf32> to vector<8x32xf32>
    %253 = vector.extract_strided_slice %250 {offsets = [0, 64], sizes = [8, 32], strides = [1, 1]} : vector<8x128xf32> to vector<8x32xf32>
    %254 = vector.extract_strided_slice %249 {offsets = [0, 96], sizes = [8, 32], strides = [1, 1]} : vector<8x128xf32> to vector<8x32xf32>
    %255 = arith.mulf %252, %239 : vector<8x32xf32>
    %256 = arith.mulf %251, %253 : vector<8x32xf32>
    %257 = arith.addf %255, %256 : vector<8x32xf32>
    %258 = math.tanh %257 : vector<8x32xf32>
    %259 = arith.mulf %254, %258 : vector<8x32xf32>
    %260 = vector.extract_strided_slice %167 {offsets = [40, 0], sizes = [8, 128], strides = [1, 1]} : vector<64x128xf32> to vector<8x128xf32>
    %cst_55 = arith.constant dense<0.000000e+00> : vector<8x128xf32>
    %261 = tpu.matmul %259, %5, %cst_55 {dimension_numbers = #tpu.dot_dimension_numbers<[1], [0], [0], [1], [0, 0, 1, 1], [], []>} : vector<8x32xf32>, vector<32x128xf32>, vector<8x128xf32> -> vector<8x128xf32>
    %262 = arith.addf %260, %261 : vector<8x128xf32>
    %263 = arith.negf %262 : vector<8x128xf32>
    %264 = math.exp %263 : vector<8x128xf32>
    %cst_56 = arith.constant 1.000000e+00 : f32
    %265 = vector.broadcast %cst_56 : f32 to vector<8x128xf32>
    %266 = arith.addf %265, %264 : vector<8x128xf32>
    %267 = arith.divf %265, %266 : vector<8x128xf32>
    %268 = math.tanh %262 : vector<8x128xf32>
    %269 = vector.extract_strided_slice %267 {offsets = [0, 0], sizes = [8, 32], strides = [1, 1]} : vector<8x128xf32> to vector<8x32xf32>
    %270 = vector.extract_strided_slice %267 {offsets = [0, 32], sizes = [8, 32], strides = [1, 1]} : vector<8x128xf32> to vector<8x32xf32>
    %271 = vector.extract_strided_slice %268 {offsets = [0, 64], sizes = [8, 32], strides = [1, 1]} : vector<8x128xf32> to vector<8x32xf32>
    %272 = vector.extract_strided_slice %267 {offsets = [0, 96], sizes = [8, 32], strides = [1, 1]} : vector<8x128xf32> to vector<8x32xf32>
    %273 = arith.mulf %270, %257 : vector<8x32xf32>
    %274 = arith.mulf %269, %271 : vector<8x32xf32>
    %275 = arith.addf %273, %274 : vector<8x32xf32>
    %276 = math.tanh %275 : vector<8x32xf32>
    %277 = arith.mulf %272, %276 : vector<8x32xf32>
    %278 = vector.extract_strided_slice %167 {offsets = [48, 0], sizes = [8, 128], strides = [1, 1]} : vector<64x128xf32> to vector<8x128xf32>
    %cst_57 = arith.constant dense<0.000000e+00> : vector<8x128xf32>
    %279 = tpu.matmul %277, %5, %cst_57 {dimension_numbers = #tpu.dot_dimension_numbers<[1], [0], [0], [1], [0, 0, 1, 1], [], []>} : vector<8x32xf32>, vector<32x128xf32>, vector<8x128xf32> -> vector<8x128xf32>
    %280 = arith.addf %278, %279 : vector<8x128xf32>
    %281 = arith.negf %280 : vector<8x128xf32>
    %282 = math.exp %281 : vector<8x128xf32>
    %cst_58 = arith.constant 1.000000e+00 : f32
    %283 = vector.broadcast %cst_58 : f32 to vector<8x128xf32>
    %284 = arith.addf %283, %282 : vector<8x128xf32>
    %285 = arith.divf %283, %284 : vector<8x128xf32>
    %286 = math.tanh %280 : vector<8x128xf32>
    %287 = vector.extract_strided_slice %285 {offsets = [0, 0], sizes = [8, 32], strides = [1, 1]} : vector<8x128xf32> to vector<8x32xf32>
    %288 = vector.extract_strided_slice %285 {offsets = [0, 32], sizes = [8, 32], strides = [1, 1]} : vector<8x128xf32> to vector<8x32xf32>
    %289 = vector.extract_strided_slice %286 {offsets = [0, 64], sizes = [8, 32], strides = [1, 1]} : vector<8x128xf32> to vector<8x32xf32>
    %290 = vector.extract_strided_slice %285 {offsets = [0, 96], sizes = [8, 32], strides = [1, 1]} : vector<8x128xf32> to vector<8x32xf32>
    %291 = arith.mulf %288, %275 : vector<8x32xf32>
    %292 = arith.mulf %287, %289 : vector<8x32xf32>
    %293 = arith.addf %291, %292 : vector<8x32xf32>
    %294 = math.tanh %293 : vector<8x32xf32>
    %295 = arith.mulf %290, %294 : vector<8x32xf32>
    %296 = vector.extract_strided_slice %167 {offsets = [56, 0], sizes = [8, 128], strides = [1, 1]} : vector<64x128xf32> to vector<8x128xf32>
    %cst_59 = arith.constant dense<0.000000e+00> : vector<8x128xf32>
    %297 = tpu.matmul %295, %5, %cst_59 {dimension_numbers = #tpu.dot_dimension_numbers<[1], [0], [0], [1], [0, 0, 1, 1], [], []>} : vector<8x32xf32>, vector<32x128xf32>, vector<8x128xf32> -> vector<8x128xf32>
    %298 = arith.addf %296, %297 : vector<8x128xf32>
    %299 = arith.negf %298 : vector<8x128xf32>
    %300 = math.exp %299 : vector<8x128xf32>
    %cst_60 = arith.constant 1.000000e+00 : f32
    %301 = vector.broadcast %cst_60 : f32 to vector<8x128xf32>
    %302 = arith.addf %301, %300 : vector<8x128xf32>
    %303 = arith.divf %301, %302 : vector<8x128xf32>
    %304 = math.tanh %298 : vector<8x128xf32>
    %305 = vector.extract_strided_slice %303 {offsets = [0, 0], sizes = [8, 32], strides = [1, 1]} : vector<8x128xf32> to vector<8x32xf32>
    %306 = vector.extract_strided_slice %303 {offsets = [0, 32], sizes = [8, 32], strides = [1, 1]} : vector<8x128xf32> to vector<8x32xf32>
    %307 = vector.extract_strided_slice %304 {offsets = [0, 64], sizes = [8, 32], strides = [1, 1]} : vector<8x128xf32> to vector<8x32xf32>
    %308 = vector.extract_strided_slice %303 {offsets = [0, 96], sizes = [8, 32], strides = [1, 1]} : vector<8x128xf32> to vector<8x32xf32>
    %309 = arith.mulf %306, %293 : vector<8x32xf32>
    %310 = arith.mulf %305, %307 : vector<8x32xf32>
    %311 = arith.addf %309, %310 : vector<8x32xf32>
    %312 = math.tanh %311 : vector<8x32xf32>
    %313 = arith.mulf %308, %312 : vector<8x32xf32>
    %c0_61 = arith.constant 0 : index
    %c0_62 = arith.constant 0 : index
    %314 = vector.load %arg1[%c0_61, %c0_62] : memref<80x32xf32, #tpu.memory_space<vmem>>, vector<80x32xf32>
    %c0_63 = arith.constant 0 : index
    %c0_64 = arith.constant 0 : index
    %315 = vector.load %arg10[%c0_63, %c0_64] : memref<32x128xf32, #tpu.memory_space<vmem>>, vector<32x128xf32>
    %c0_65 = arith.constant 0 : index
    %c0_66 = arith.constant 0 : index
    %316 = vector.load %arg11[%c0_65, %c0_66] : memref<32x128xf32, #tpu.memory_space<vmem>>, vector<32x128xf32>
    %c0_67 = arith.constant 0 : index
    %c0_68 = arith.constant 0 : index
    %317 = vector.load %arg12[%c0_67, %c0_68] : memref<1x128xf32, #tpu.memory_space<vmem>>, vector<1x128xf32>
    %c0_69 = arith.constant 0 : index
    %c0_70 = arith.constant 0 : index
    %318 = vector.load %arg13[%c0_69, %c0_70] : memref<32x128xf32, #tpu.memory_space<vmem>>, vector<32x128xf32>
    %c0_71 = arith.constant 0 : index
    %c0_72 = arith.constant 0 : index
    %319 = vector.load %arg14[%c0_71, %c0_72] : memref<32x128xf32, #tpu.memory_space<vmem>>, vector<32x128xf32>
    %c0_73 = arith.constant 0 : index
    %c0_74 = arith.constant 0 : index
    %320 = vector.load %arg15[%c0_73, %c0_74] : memref<1x128xf32, #tpu.memory_space<vmem>>, vector<1x128xf32>
    %cst_75 = arith.constant dense<0.000000e+00> : vector<80x128xf32>
    %321 = tpu.matmul %314, %315, %cst_75 {dimension_numbers = #tpu.dot_dimension_numbers<[1], [0], [0], [1], [0, 0, 1, 1], [], []>} : vector<80x32xf32>, vector<32x128xf32>, vector<80x128xf32> -> vector<80x128xf32>
    %322 = vector.broadcast %317 : vector<1x128xf32> to vector<80x128xf32>
    %323 = arith.addf %321, %322 : vector<80x128xf32>
    %cst_76 = arith.constant 0.000000e+00 : f32
    %324 = vector.broadcast %cst_76 : f32 to vector<8x32xf32>
    %cst_77 = arith.constant 0.000000e+00 : f32
    %325 = vector.broadcast %cst_77 : f32 to vector<8x32xf32>
    %326 = vector.extract_strided_slice %323 {offsets = [0, 0], sizes = [8, 128], strides = [1, 1]} : vector<80x128xf32> to vector<8x128xf32>
    %cst_78 = arith.constant dense<0.000000e+00> : vector<8x128xf32>
    %327 = tpu.matmul %324, %316, %cst_78 {dimension_numbers = #tpu.dot_dimension_numbers<[1], [0], [0], [1], [0, 0, 1, 1], [], []>} : vector<8x32xf32>, vector<32x128xf32>, vector<8x128xf32> -> vector<8x128xf32>
    %328 = arith.addf %326, %327 : vector<8x128xf32>
    %329 = arith.negf %328 : vector<8x128xf32>
    %330 = math.exp %329 : vector<8x128xf32>
    %cst_79 = arith.constant 1.000000e+00 : f32
    %331 = vector.broadcast %cst_79 : f32 to vector<8x128xf32>
    %332 = arith.addf %331, %330 : vector<8x128xf32>
    %333 = arith.divf %331, %332 : vector<8x128xf32>
    %334 = math.tanh %328 : vector<8x128xf32>
    %335 = vector.extract_strided_slice %333 {offsets = [0, 0], sizes = [8, 32], strides = [1, 1]} : vector<8x128xf32> to vector<8x32xf32>
    %336 = vector.extract_strided_slice %333 {offsets = [0, 32], sizes = [8, 32], strides = [1, 1]} : vector<8x128xf32> to vector<8x32xf32>
    %337 = vector.extract_strided_slice %334 {offsets = [0, 64], sizes = [8, 32], strides = [1, 1]} : vector<8x128xf32> to vector<8x32xf32>
    %338 = vector.extract_strided_slice %333 {offsets = [0, 96], sizes = [8, 32], strides = [1, 1]} : vector<8x128xf32> to vector<8x32xf32>
    %339 = arith.mulf %336, %325 : vector<8x32xf32>
    %340 = arith.mulf %335, %337 : vector<8x32xf32>
    %341 = arith.addf %339, %340 : vector<8x32xf32>
    %342 = math.tanh %341 : vector<8x32xf32>
    %343 = arith.mulf %338, %342 : vector<8x32xf32>
    %c0_80 = arith.constant 0 : index
    %c0_81 = arith.constant 0 : index
    %344 = vector.load %arg23[%c0_80, %c0_81] : memref<80x32xf32, #tpu.memory_space<vmem>>, vector<8x32xf32>
    tpu.vector_store %arg23[%c0_80, %c0_81], %343 {strides = array<i32>} : memref<80x32xf32, #tpu.memory_space<vmem>>, vector<8x32xf32>,
    %345 = vector.extract_strided_slice %323 {offsets = [8, 0], sizes = [8, 128], strides = [1, 1]} : vector<80x128xf32> to vector<8x128xf32>
    %cst_82 = arith.constant dense<0.000000e+00> : vector<8x128xf32>
    %346 = tpu.matmul %343, %316, %cst_82 {dimension_numbers = #tpu.dot_dimension_numbers<[1], [0], [0], [1], [0, 0, 1, 1], [], []>} : vector<8x32xf32>, vector<32x128xf32>, vector<8x128xf32> -> vector<8x128xf32>
    %347 = arith.addf %345, %346 : vector<8x128xf32>
    %348 = arith.negf %347 : vector<8x128xf32>
    %349 = math.exp %348 : vector<8x128xf32>
    %cst_83 = arith.constant 1.000000e+00 : f32
    %350 = vector.broadcast %cst_83 : f32 to vector<8x128xf32>
    %351 = arith.addf %350, %349 : vector<8x128xf32>
    %352 = arith.divf %350, %351 : vector<8x128xf32>
    %353 = math.tanh %347 : vector<8x128xf32>
    %354 = vector.extract_strided_slice %352 {offsets = [0, 0], sizes = [8, 32], strides = [1, 1]} : vector<8x128xf32> to vector<8x32xf32>
    %355 = vector.extract_strided_slice %352 {offsets = [0, 32], sizes = [8, 32], strides = [1, 1]} : vector<8x128xf32> to vector<8x32xf32>
    %356 = vector.extract_strided_slice %353 {offsets = [0, 64], sizes = [8, 32], strides = [1, 1]} : vector<8x128xf32> to vector<8x32xf32>
    %357 = vector.extract_strided_slice %352 {offsets = [0, 96], sizes = [8, 32], strides = [1, 1]} : vector<8x128xf32> to vector<8x32xf32>
    %358 = arith.mulf %355, %341 : vector<8x32xf32>
    %359 = arith.mulf %354, %356 : vector<8x32xf32>
    %360 = arith.addf %358, %359 : vector<8x32xf32>
    %361 = math.tanh %360 : vector<8x32xf32>
    %362 = arith.mulf %357, %361 : vector<8x32xf32>
    %c8_84 = arith.constant 8 : index
    %c0_85 = arith.constant 0 : index
    %363 = vector.load %arg23[%c8_84, %c0_85] : memref<80x32xf32, #tpu.memory_space<vmem>>, vector<8x32xf32>
    tpu.vector_store %arg23[%c8_84, %c0_85], %362 {strides = array<i32>} : memref<80x32xf32, #tpu.memory_space<vmem>>, vector<8x32xf32>,
    %364 = vector.extract_strided_slice %323 {offsets = [16, 0], sizes = [8, 128], strides = [1, 1]} : vector<80x128xf32> to vector<8x128xf32>
    %cst_86 = arith.constant dense<0.000000e+00> : vector<8x128xf32>
    %365 = tpu.matmul %362, %316, %cst_86 {dimension_numbers = #tpu.dot_dimension_numbers<[1], [0], [0], [1], [0, 0, 1, 1], [], []>} : vector<8x32xf32>, vector<32x128xf32>, vector<8x128xf32> -> vector<8x128xf32>
    %366 = arith.addf %364, %365 : vector<8x128xf32>
    %367 = arith.negf %366 : vector<8x128xf32>
    %368 = math.exp %367 : vector<8x128xf32>
    %cst_87 = arith.constant 1.000000e+00 : f32
    %369 = vector.broadcast %cst_87 : f32 to vector<8x128xf32>
    %370 = arith.addf %369, %368 : vector<8x128xf32>
    %371 = arith.divf %369, %370 : vector<8x128xf32>
    %372 = math.tanh %366 : vector<8x128xf32>
    %373 = vector.extract_strided_slice %371 {offsets = [0, 0], sizes = [8, 32], strides = [1, 1]} : vector<8x128xf32> to vector<8x32xf32>
    %374 = vector.extract_strided_slice %371 {offsets = [0, 32], sizes = [8, 32], strides = [1, 1]} : vector<8x128xf32> to vector<8x32xf32>
    %375 = vector.extract_strided_slice %372 {offsets = [0, 64], sizes = [8, 32], strides = [1, 1]} : vector<8x128xf32> to vector<8x32xf32>
    %376 = vector.extract_strided_slice %371 {offsets = [0, 96], sizes = [8, 32], strides = [1, 1]} : vector<8x128xf32> to vector<8x32xf32>
    %377 = arith.mulf %374, %360 : vector<8x32xf32>
    %378 = arith.mulf %373, %375 : vector<8x32xf32>
    %379 = arith.addf %377, %378 : vector<8x32xf32>
    %380 = math.tanh %379 : vector<8x32xf32>
    %381 = arith.mulf %376, %380 : vector<8x32xf32>
    %c16_88 = arith.constant 16 : index
    %c0_89 = arith.constant 0 : index
    %382 = vector.load %arg23[%c16_88, %c0_89] : memref<80x32xf32, #tpu.memory_space<vmem>>, vector<8x32xf32>
    tpu.vector_store %arg23[%c16_88, %c0_89], %381 {strides = array<i32>} : memref<80x32xf32, #tpu.memory_space<vmem>>, vector<8x32xf32>,
    %383 = vector.extract_strided_slice %323 {offsets = [24, 0], sizes = [8, 128], strides = [1, 1]} : vector<80x128xf32> to vector<8x128xf32>
    %cst_90 = arith.constant dense<0.000000e+00> : vector<8x128xf32>
    %384 = tpu.matmul %381, %316, %cst_90 {dimension_numbers = #tpu.dot_dimension_numbers<[1], [0], [0], [1], [0, 0, 1, 1], [], []>} : vector<8x32xf32>, vector<32x128xf32>, vector<8x128xf32> -> vector<8x128xf32>
    %385 = arith.addf %383, %384 : vector<8x128xf32>
    %386 = arith.negf %385 : vector<8x128xf32>
    %387 = math.exp %386 : vector<8x128xf32>
    %cst_91 = arith.constant 1.000000e+00 : f32
    %388 = vector.broadcast %cst_91 : f32 to vector<8x128xf32>
    %389 = arith.addf %388, %387 : vector<8x128xf32>
    %390 = arith.divf %388, %389 : vector<8x128xf32>
    %391 = math.tanh %385 : vector<8x128xf32>
    %392 = vector.extract_strided_slice %390 {offsets = [0, 0], sizes = [8, 32], strides = [1, 1]} : vector<8x128xf32> to vector<8x32xf32>
    %393 = vector.extract_strided_slice %390 {offsets = [0, 32], sizes = [8, 32], strides = [1, 1]} : vector<8x128xf32> to vector<8x32xf32>
    %394 = vector.extract_strided_slice %391 {offsets = [0, 64], sizes = [8, 32], strides = [1, 1]} : vector<8x128xf32> to vector<8x32xf32>
    %395 = vector.extract_strided_slice %390 {offsets = [0, 96], sizes = [8, 32], strides = [1, 1]} : vector<8x128xf32> to vector<8x32xf32>
    %396 = arith.mulf %393, %379 : vector<8x32xf32>
    %397 = arith.mulf %392, %394 : vector<8x32xf32>
    %398 = arith.addf %396, %397 : vector<8x32xf32>
    %399 = math.tanh %398 : vector<8x32xf32>
    %400 = arith.mulf %395, %399 : vector<8x32xf32>
    %c24_92 = arith.constant 24 : index
    %c0_93 = arith.constant 0 : index
    %401 = vector.load %arg23[%c24_92, %c0_93] : memref<80x32xf32, #tpu.memory_space<vmem>>, vector<8x32xf32>
    tpu.vector_store %arg23[%c24_92, %c0_93], %400 {strides = array<i32>} : memref<80x32xf32, #tpu.memory_space<vmem>>, vector<8x32xf32>,
    %402 = vector.extract_strided_slice %323 {offsets = [32, 0], sizes = [8, 128], strides = [1, 1]} : vector<80x128xf32> to vector<8x128xf32>
    %cst_94 = arith.constant dense<0.000000e+00> : vector<8x128xf32>
    %403 = tpu.matmul %400, %316, %cst_94 {dimension_numbers = #tpu.dot_dimension_numbers<[1], [0], [0], [1], [0, 0, 1, 1], [], []>} : vector<8x32xf32>, vector<32x128xf32>, vector<8x128xf32> -> vector<8x128xf32>
    %404 = arith.addf %402, %403 : vector<8x128xf32>
    %405 = arith.negf %404 : vector<8x128xf32>
    %406 = math.exp %405 : vector<8x128xf32>
    %cst_95 = arith.constant 1.000000e+00 : f32
    %407 = vector.broadcast %cst_95 : f32 to vector<8x128xf32>
    %408 = arith.addf %407, %406 : vector<8x128xf32>
    %409 = arith.divf %407, %408 : vector<8x128xf32>
    %410 = math.tanh %404 : vector<8x128xf32>
    %411 = vector.extract_strided_slice %409 {offsets = [0, 0], sizes = [8, 32], strides = [1, 1]} : vector<8x128xf32> to vector<8x32xf32>
    %412 = vector.extract_strided_slice %409 {offsets = [0, 32], sizes = [8, 32], strides = [1, 1]} : vector<8x128xf32> to vector<8x32xf32>
    %413 = vector.extract_strided_slice %410 {offsets = [0, 64], sizes = [8, 32], strides = [1, 1]} : vector<8x128xf32> to vector<8x32xf32>
    %414 = vector.extract_strided_slice %409 {offsets = [0, 96], sizes = [8, 32], strides = [1, 1]} : vector<8x128xf32> to vector<8x32xf32>
    %415 = arith.mulf %412, %398 : vector<8x32xf32>
    %416 = arith.mulf %411, %413 : vector<8x32xf32>
    %417 = arith.addf %415, %416 : vector<8x32xf32>
    %418 = math.tanh %417 : vector<8x32xf32>
    %419 = arith.mulf %414, %418 : vector<8x32xf32>
    %c32_96 = arith.constant 32 : index
    %c0_97 = arith.constant 0 : index
    %420 = vector.load %arg23[%c32_96, %c0_97] : memref<80x32xf32, #tpu.memory_space<vmem>>, vector<8x32xf32>
    tpu.vector_store %arg23[%c32_96, %c0_97], %419 {strides = array<i32>} : memref<80x32xf32, #tpu.memory_space<vmem>>, vector<8x32xf32>,
    %421 = vector.extract_strided_slice %323 {offsets = [40, 0], sizes = [8, 128], strides = [1, 1]} : vector<80x128xf32> to vector<8x128xf32>
    %cst_98 = arith.constant dense<0.000000e+00> : vector<8x128xf32>
    %422 = tpu.matmul %419, %316, %cst_98 {dimension_numbers = #tpu.dot_dimension_numbers<[1], [0], [0], [1], [0, 0, 1, 1], [], []>} : vector<8x32xf32>, vector<32x128xf32>, vector<8x128xf32> -> vector<8x128xf32>
    %423 = arith.addf %421, %422 : vector<8x128xf32>
    %424 = arith.negf %423 : vector<8x128xf32>
    %425 = math.exp %424 : vector<8x128xf32>
    %cst_99 = arith.constant 1.000000e+00 : f32
    %426 = vector.broadcast %cst_99 : f32 to vector<8x128xf32>
    %427 = arith.addf %426, %425 : vector<8x128xf32>
    %428 = arith.divf %426, %427 : vector<8x128xf32>
    %429 = math.tanh %423 : vector<8x128xf32>
    %430 = vector.extract_strided_slice %428 {offsets = [0, 0], sizes = [8, 32], strides = [1, 1]} : vector<8x128xf32> to vector<8x32xf32>
    %431 = vector.extract_strided_slice %428 {offsets = [0, 32], sizes = [8, 32], strides = [1, 1]} : vector<8x128xf32> to vector<8x32xf32>
    %432 = vector.extract_strided_slice %429 {offsets = [0, 64], sizes = [8, 32], strides = [1, 1]} : vector<8x128xf32> to vector<8x32xf32>
    %433 = vector.extract_strided_slice %428 {offsets = [0, 96], sizes = [8, 32], strides = [1, 1]} : vector<8x128xf32> to vector<8x32xf32>
    %434 = arith.mulf %431, %417 : vector<8x32xf32>
    %435 = arith.mulf %430, %432 : vector<8x32xf32>
    %436 = arith.addf %434, %435 : vector<8x32xf32>
    %437 = math.tanh %436 : vector<8x32xf32>
    %438 = arith.mulf %433, %437 : vector<8x32xf32>
    %c40_100 = arith.constant 40 : index
    %c0_101 = arith.constant 0 : index
    %439 = vector.load %arg23[%c40_100, %c0_101] : memref<80x32xf32, #tpu.memory_space<vmem>>, vector<8x32xf32>
    tpu.vector_store %arg23[%c40_100, %c0_101], %438 {strides = array<i32>} : memref<80x32xf32, #tpu.memory_space<vmem>>, vector<8x32xf32>,
    %440 = vector.extract_strided_slice %323 {offsets = [48, 0], sizes = [8, 128], strides = [1, 1]} : vector<80x128xf32> to vector<8x128xf32>
    %cst_102 = arith.constant dense<0.000000e+00> : vector<8x128xf32>
    %441 = tpu.matmul %438, %316, %cst_102 {dimension_numbers = #tpu.dot_dimension_numbers<[1], [0], [0], [1], [0, 0, 1, 1], [], []>} : vector<8x32xf32>, vector<32x128xf32>, vector<8x128xf32> -> vector<8x128xf32>
    %442 = arith.addf %440, %441 : vector<8x128xf32>
    %443 = arith.negf %442 : vector<8x128xf32>
    %444 = math.exp %443 : vector<8x128xf32>
    %cst_103 = arith.constant 1.000000e+00 : f32
    %445 = vector.broadcast %cst_103 : f32 to vector<8x128xf32>
    %446 = arith.addf %445, %444 : vector<8x128xf32>
    %447 = arith.divf %445, %446 : vector<8x128xf32>
    %448 = math.tanh %442 : vector<8x128xf32>
    %449 = vector.extract_strided_slice %447 {offsets = [0, 0], sizes = [8, 32], strides = [1, 1]} : vector<8x128xf32> to vector<8x32xf32>
    %450 = vector.extract_strided_slice %447 {offsets = [0, 32], sizes = [8, 32], strides = [1, 1]} : vector<8x128xf32> to vector<8x32xf32>
    %451 = vector.extract_strided_slice %448 {offsets = [0, 64], sizes = [8, 32], strides = [1, 1]} : vector<8x128xf32> to vector<8x32xf32>
    %452 = vector.extract_strided_slice %447 {offsets = [0, 96], sizes = [8, 32], strides = [1, 1]} : vector<8x128xf32> to vector<8x32xf32>
    %453 = arith.mulf %450, %436 : vector<8x32xf32>
    %454 = arith.mulf %449, %451 : vector<8x32xf32>
    %455 = arith.addf %453, %454 : vector<8x32xf32>
    %456 = math.tanh %455 : vector<8x32xf32>
    %457 = arith.mulf %452, %456 : vector<8x32xf32>
    %c48_104 = arith.constant 48 : index
    %c0_105 = arith.constant 0 : index
    %458 = vector.load %arg23[%c48_104, %c0_105] : memref<80x32xf32, #tpu.memory_space<vmem>>, vector<8x32xf32>
    tpu.vector_store %arg23[%c48_104, %c0_105], %457 {strides = array<i32>} : memref<80x32xf32, #tpu.memory_space<vmem>>, vector<8x32xf32>,
    %459 = vector.extract_strided_slice %323 {offsets = [56, 0], sizes = [8, 128], strides = [1, 1]} : vector<80x128xf32> to vector<8x128xf32>
    %cst_106 = arith.constant dense<0.000000e+00> : vector<8x128xf32>
    %460 = tpu.matmul %457, %316, %cst_106 {dimension_numbers = #tpu.dot_dimension_numbers<[1], [0], [0], [1], [0, 0, 1, 1], [], []>} : vector<8x32xf32>, vector<32x128xf32>, vector<8x128xf32> -> vector<8x128xf32>
    %461 = arith.addf %459, %460 : vector<8x128xf32>
    %462 = arith.negf %461 : vector<8x128xf32>
    %463 = math.exp %462 : vector<8x128xf32>
    %cst_107 = arith.constant 1.000000e+00 : f32
    %464 = vector.broadcast %cst_107 : f32 to vector<8x128xf32>
    %465 = arith.addf %464, %463 : vector<8x128xf32>
    %466 = arith.divf %464, %465 : vector<8x128xf32>
    %467 = math.tanh %461 : vector<8x128xf32>
    %468 = vector.extract_strided_slice %466 {offsets = [0, 0], sizes = [8, 32], strides = [1, 1]} : vector<8x128xf32> to vector<8x32xf32>
    %469 = vector.extract_strided_slice %466 {offsets = [0, 32], sizes = [8, 32], strides = [1, 1]} : vector<8x128xf32> to vector<8x32xf32>
    %470 = vector.extract_strided_slice %467 {offsets = [0, 64], sizes = [8, 32], strides = [1, 1]} : vector<8x128xf32> to vector<8x32xf32>
    %471 = vector.extract_strided_slice %466 {offsets = [0, 96], sizes = [8, 32], strides = [1, 1]} : vector<8x128xf32> to vector<8x32xf32>
    %472 = arith.mulf %469, %455 : vector<8x32xf32>
    %473 = arith.mulf %468, %470 : vector<8x32xf32>
    %474 = arith.addf %472, %473 : vector<8x32xf32>
    %475 = math.tanh %474 : vector<8x32xf32>
    %476 = arith.mulf %471, %475 : vector<8x32xf32>
    %c56_108 = arith.constant 56 : index
    %c0_109 = arith.constant 0 : index
    %477 = vector.load %arg23[%c56_108, %c0_109] : memref<80x32xf32, #tpu.memory_space<vmem>>, vector<8x32xf32>
    tpu.vector_store %arg23[%c56_108, %c0_109], %476 {strides = array<i32>} : memref<80x32xf32, #tpu.memory_space<vmem>>, vector<8x32xf32>,
    %478 = vector.extract_strided_slice %323 {offsets = [64, 0], sizes = [8, 128], strides = [1, 1]} : vector<80x128xf32> to vector<8x128xf32>
    %cst_110 = arith.constant dense<0.000000e+00> : vector<8x128xf32>
    %479 = tpu.matmul %476, %316, %cst_110 {dimension_numbers = #tpu.dot_dimension_numbers<[1], [0], [0], [1], [0, 0, 1, 1], [], []>} : vector<8x32xf32>, vector<32x128xf32>, vector<8x128xf32> -> vector<8x128xf32>
    %480 = arith.addf %478, %479 : vector<8x128xf32>
    %481 = arith.negf %480 : vector<8x128xf32>
    %482 = math.exp %481 : vector<8x128xf32>
    %cst_111 = arith.constant 1.000000e+00 : f32
    %483 = vector.broadcast %cst_111 : f32 to vector<8x128xf32>
    %484 = arith.addf %483, %482 : vector<8x128xf32>
    %485 = arith.divf %483, %484 : vector<8x128xf32>
    %486 = math.tanh %480 : vector<8x128xf32>
    %487 = vector.extract_strided_slice %485 {offsets = [0, 0], sizes = [8, 32], strides = [1, 1]} : vector<8x128xf32> to vector<8x32xf32>
    %488 = vector.extract_strided_slice %485 {offsets = [0, 32], sizes = [8, 32], strides = [1, 1]} : vector<8x128xf32> to vector<8x32xf32>
    %489 = vector.extract_strided_slice %486 {offsets = [0, 64], sizes = [8, 32], strides = [1, 1]} : vector<8x128xf32> to vector<8x32xf32>
    %490 = vector.extract_strided_slice %485 {offsets = [0, 96], sizes = [8, 32], strides = [1, 1]} : vector<8x128xf32> to vector<8x32xf32>
    %491 = arith.mulf %488, %474 : vector<8x32xf32>
    %492 = arith.mulf %487, %489 : vector<8x32xf32>
    %493 = arith.addf %491, %492 : vector<8x32xf32>
    %494 = math.tanh %493 : vector<8x32xf32>
    %495 = arith.mulf %490, %494 : vector<8x32xf32>
    %c64 = arith.constant 64 : index
    %c0_112 = arith.constant 0 : index
    %496 = vector.load %arg23[%c64, %c0_112] : memref<80x32xf32, #tpu.memory_space<vmem>>, vector<8x32xf32>
    tpu.vector_store %arg23[%c64, %c0_112], %495 {strides = array<i32>} : memref<80x32xf32, #tpu.memory_space<vmem>>, vector<8x32xf32>,
    %497 = vector.extract_strided_slice %323 {offsets = [72, 0], sizes = [8, 128], strides = [1, 1]} : vector<80x128xf32> to vector<8x128xf32>
    %cst_113 = arith.constant dense<0.000000e+00> : vector<8x128xf32>
    %498 = tpu.matmul %495, %316, %cst_113 {dimension_numbers = #tpu.dot_dimension_numbers<[1], [0], [0], [1], [0, 0, 1, 1], [], []>} : vector<8x32xf32>, vector<32x128xf32>, vector<8x128xf32> -> vector<8x128xf32>
    %499 = arith.addf %497, %498 : vector<8x128xf32>
    %500 = arith.negf %499 : vector<8x128xf32>
    %501 = math.exp %500 : vector<8x128xf32>
    %cst_114 = arith.constant 1.000000e+00 : f32
    %502 = vector.broadcast %cst_114 : f32 to vector<8x128xf32>
    %503 = arith.addf %502, %501 : vector<8x128xf32>
    %504 = arith.divf %502, %503 : vector<8x128xf32>
    %505 = math.tanh %499 : vector<8x128xf32>
    %506 = vector.extract_strided_slice %504 {offsets = [0, 0], sizes = [8, 32], strides = [1, 1]} : vector<8x128xf32> to vector<8x32xf32>
    %507 = vector.extract_strided_slice %504 {offsets = [0, 32], sizes = [8, 32], strides = [1, 1]} : vector<8x128xf32> to vector<8x32xf32>
    %508 = vector.extract_strided_slice %505 {offsets = [0, 64], sizes = [8, 32], strides = [1, 1]} : vector<8x128xf32> to vector<8x32xf32>
    %509 = vector.extract_strided_slice %504 {offsets = [0, 96], sizes = [8, 32], strides = [1, 1]} : vector<8x128xf32> to vector<8x32xf32>
    %510 = arith.mulf %507, %493 : vector<8x32xf32>
    %511 = arith.mulf %506, %508 : vector<8x32xf32>
    %512 = arith.addf %510, %511 : vector<8x32xf32>
    %513 = math.tanh %512 : vector<8x32xf32>
    %514 = arith.mulf %509, %513 : vector<8x32xf32>
    %c72 = arith.constant 72 : index
    %c0_115 = arith.constant 0 : index
    %515 = vector.load %arg23[%c72, %c0_115] : memref<80x32xf32, #tpu.memory_space<vmem>>, vector<8x32xf32>
    tpu.vector_store %arg23[%c72, %c0_115], %514 {strides = array<i32>} : memref<80x32xf32, #tpu.memory_space<vmem>>, vector<8x32xf32>,
    %c0_116 = arith.constant 0 : index
    %c0_117 = arith.constant 0 : index
    %516 = vector.load %arg23[%c0_116, %c0_117] : memref<80x32xf32, #tpu.memory_space<vmem>>, vector<80x32xf32>
    %cst_118 = arith.constant dense<0.000000e+00> : vector<80x128xf32>
    %517 = tpu.matmul %516, %318, %cst_118 {dimension_numbers = #tpu.dot_dimension_numbers<[1], [0], [0], [1], [0, 0, 1, 1], [], []>} : vector<80x32xf32>, vector<32x128xf32>, vector<80x128xf32> -> vector<80x128xf32>
    %518 = vector.broadcast %320 : vector<1x128xf32> to vector<80x128xf32>
    %519 = arith.addf %517, %518 : vector<80x128xf32>
    %cst_119 = arith.constant 0.000000e+00 : f32
    %520 = vector.broadcast %cst_119 : f32 to vector<8x32xf32>
    %cst_120 = arith.constant 0.000000e+00 : f32
    %521 = vector.broadcast %cst_120 : f32 to vector<8x32xf32>
    %522 = vector.extract_strided_slice %519 {offsets = [0, 0], sizes = [8, 128], strides = [1, 1]} : vector<80x128xf32> to vector<8x128xf32>
    %cst_121 = arith.constant dense<0.000000e+00> : vector<8x128xf32>
    %523 = tpu.matmul %520, %319, %cst_121 {dimension_numbers = #tpu.dot_dimension_numbers<[1], [0], [0], [1], [0, 0, 1, 1], [], []>} : vector<8x32xf32>, vector<32x128xf32>, vector<8x128xf32> -> vector<8x128xf32>
    %524 = arith.addf %522, %523 : vector<8x128xf32>
    %525 = arith.negf %524 : vector<8x128xf32>
    %526 = math.exp %525 : vector<8x128xf32>
    %cst_122 = arith.constant 1.000000e+00 : f32
    %527 = vector.broadcast %cst_122 : f32 to vector<8x128xf32>
    %528 = arith.addf %527, %526 : vector<8x128xf32>
    %529 = arith.divf %527, %528 : vector<8x128xf32>
    %530 = math.tanh %524 : vector<8x128xf32>
    %531 = vector.extract_strided_slice %529 {offsets = [0, 0], sizes = [8, 32], strides = [1, 1]} : vector<8x128xf32> to vector<8x32xf32>
    %532 = vector.extract_strided_slice %529 {offsets = [0, 32], sizes = [8, 32], strides = [1, 1]} : vector<8x128xf32> to vector<8x32xf32>
    %533 = vector.extract_strided_slice %530 {offsets = [0, 64], sizes = [8, 32], strides = [1, 1]} : vector<8x128xf32> to vector<8x32xf32>
    %534 = vector.extract_strided_slice %529 {offsets = [0, 96], sizes = [8, 32], strides = [1, 1]} : vector<8x128xf32> to vector<8x32xf32>
    %535 = arith.mulf %532, %521 : vector<8x32xf32>
    %536 = arith.mulf %531, %533 : vector<8x32xf32>
    %537 = arith.addf %535, %536 : vector<8x32xf32>
    %538 = math.tanh %537 : vector<8x32xf32>
    %539 = arith.mulf %534, %538 : vector<8x32xf32>
    %540 = vector.extract_strided_slice %519 {offsets = [8, 0], sizes = [8, 128], strides = [1, 1]} : vector<80x128xf32> to vector<8x128xf32>
    %cst_123 = arith.constant dense<0.000000e+00> : vector<8x128xf32>
    %541 = tpu.matmul %539, %319, %cst_123 {dimension_numbers = #tpu.dot_dimension_numbers<[1], [0], [0], [1], [0, 0, 1, 1], [], []>} : vector<8x32xf32>, vector<32x128xf32>, vector<8x128xf32> -> vector<8x128xf32>
    %542 = arith.addf %540, %541 : vector<8x128xf32>
    %543 = arith.negf %542 : vector<8x128xf32>
    %544 = math.exp %543 : vector<8x128xf32>
    %cst_124 = arith.constant 1.000000e+00 : f32
    %545 = vector.broadcast %cst_124 : f32 to vector<8x128xf32>
    %546 = arith.addf %545, %544 : vector<8x128xf32>
    %547 = arith.divf %545, %546 : vector<8x128xf32>
    %548 = math.tanh %542 : vector<8x128xf32>
    %549 = vector.extract_strided_slice %547 {offsets = [0, 0], sizes = [8, 32], strides = [1, 1]} : vector<8x128xf32> to vector<8x32xf32>
    %550 = vector.extract_strided_slice %547 {offsets = [0, 32], sizes = [8, 32], strides = [1, 1]} : vector<8x128xf32> to vector<8x32xf32>
    %551 = vector.extract_strided_slice %548 {offsets = [0, 64], sizes = [8, 32], strides = [1, 1]} : vector<8x128xf32> to vector<8x32xf32>
    %552 = vector.extract_strided_slice %547 {offsets = [0, 96], sizes = [8, 32], strides = [1, 1]} : vector<8x128xf32> to vector<8x32xf32>
    %553 = arith.mulf %550, %537 : vector<8x32xf32>
    %554 = arith.mulf %549, %551 : vector<8x32xf32>
    %555 = arith.addf %553, %554 : vector<8x32xf32>
    %556 = math.tanh %555 : vector<8x32xf32>
    %557 = arith.mulf %552, %556 : vector<8x32xf32>
    %558 = vector.extract_strided_slice %519 {offsets = [16, 0], sizes = [8, 128], strides = [1, 1]} : vector<80x128xf32> to vector<8x128xf32>
    %cst_125 = arith.constant dense<0.000000e+00> : vector<8x128xf32>
    %559 = tpu.matmul %557, %319, %cst_125 {dimension_numbers = #tpu.dot_dimension_numbers<[1], [0], [0], [1], [0, 0, 1, 1], [], []>} : vector<8x32xf32>, vector<32x128xf32>, vector<8x128xf32> -> vector<8x128xf32>
    %560 = arith.addf %558, %559 : vector<8x128xf32>
    %561 = arith.negf %560 : vector<8x128xf32>
    %562 = math.exp %561 : vector<8x128xf32>
    %cst_126 = arith.constant 1.000000e+00 : f32
    %563 = vector.broadcast %cst_126 : f32 to vector<8x128xf32>
    %564 = arith.addf %563, %562 : vector<8x128xf32>
    %565 = arith.divf %563, %564 : vector<8x128xf32>
    %566 = math.tanh %560 : vector<8x128xf32>
    %567 = vector.extract_strided_slice %565 {offsets = [0, 0], sizes = [8, 32], strides = [1, 1]} : vector<8x128xf32> to vector<8x32xf32>
    %568 = vector.extract_strided_slice %565 {offsets = [0, 32], sizes = [8, 32], strides = [1, 1]} : vector<8x128xf32> to vector<8x32xf32>
    %569 = vector.extract_strided_slice %566 {offsets = [0, 64], sizes = [8, 32], strides = [1, 1]} : vector<8x128xf32> to vector<8x32xf32>
    %570 = vector.extract_strided_slice %565 {offsets = [0, 96], sizes = [8, 32], strides = [1, 1]} : vector<8x128xf32> to vector<8x32xf32>
    %571 = arith.mulf %568, %555 : vector<8x32xf32>
    %572 = arith.mulf %567, %569 : vector<8x32xf32>
    %573 = arith.addf %571, %572 : vector<8x32xf32>
    %574 = math.tanh %573 : vector<8x32xf32>
    %575 = arith.mulf %570, %574 : vector<8x32xf32>
    %576 = vector.extract_strided_slice %519 {offsets = [24, 0], sizes = [8, 128], strides = [1, 1]} : vector<80x128xf32> to vector<8x128xf32>
    %cst_127 = arith.constant dense<0.000000e+00> : vector<8x128xf32>
    %577 = tpu.matmul %575, %319, %cst_127 {dimension_numbers = #tpu.dot_dimension_numbers<[1], [0], [0], [1], [0, 0, 1, 1], [], []>} : vector<8x32xf32>, vector<32x128xf32>, vector<8x128xf32> -> vector<8x128xf32>
    %578 = arith.addf %576, %577 : vector<8x128xf32>
    %579 = arith.negf %578 : vector<8x128xf32>
    %580 = math.exp %579 : vector<8x128xf32>
    %cst_128 = arith.constant 1.000000e+00 : f32
    %581 = vector.broadcast %cst_128 : f32 to vector<8x128xf32>
    %582 = arith.addf %581, %580 : vector<8x128xf32>
    %583 = arith.divf %581, %582 : vector<8x128xf32>
    %584 = math.tanh %578 : vector<8x128xf32>
    %585 = vector.extract_strided_slice %583 {offsets = [0, 0], sizes = [8, 32], strides = [1, 1]} : vector<8x128xf32> to vector<8x32xf32>
    %586 = vector.extract_strided_slice %583 {offsets = [0, 32], sizes = [8, 32], strides = [1, 1]} : vector<8x128xf32> to vector<8x32xf32>
    %587 = vector.extract_strided_slice %584 {offsets = [0, 64], sizes = [8, 32], strides = [1, 1]} : vector<8x128xf32> to vector<8x32xf32>
    %588 = vector.extract_strided_slice %583 {offsets = [0, 96], sizes = [8, 32], strides = [1, 1]} : vector<8x128xf32> to vector<8x32xf32>
    %589 = arith.mulf %586, %573 : vector<8x32xf32>
    %590 = arith.mulf %585, %587 : vector<8x32xf32>
    %591 = arith.addf %589, %590 : vector<8x32xf32>
    %592 = math.tanh %591 : vector<8x32xf32>
    %593 = arith.mulf %588, %592 : vector<8x32xf32>
    %594 = vector.extract_strided_slice %519 {offsets = [32, 0], sizes = [8, 128], strides = [1, 1]} : vector<80x128xf32> to vector<8x128xf32>
    %cst_129 = arith.constant dense<0.000000e+00> : vector<8x128xf32>
    %595 = tpu.matmul %593, %319, %cst_129 {dimension_numbers = #tpu.dot_dimension_numbers<[1], [0], [0], [1], [0, 0, 1, 1], [], []>} : vector<8x32xf32>, vector<32x128xf32>, vector<8x128xf32> -> vector<8x128xf32>
    %596 = arith.addf %594, %595 : vector<8x128xf32>
    %597 = arith.negf %596 : vector<8x128xf32>
    %598 = math.exp %597 : vector<8x128xf32>
    %cst_130 = arith.constant 1.000000e+00 : f32
    %599 = vector.broadcast %cst_130 : f32 to vector<8x128xf32>
    %600 = arith.addf %599, %598 : vector<8x128xf32>
    %601 = arith.divf %599, %600 : vector<8x128xf32>
    %602 = math.tanh %596 : vector<8x128xf32>
    %603 = vector.extract_strided_slice %601 {offsets = [0, 0], sizes = [8, 32], strides = [1, 1]} : vector<8x128xf32> to vector<8x32xf32>
    %604 = vector.extract_strided_slice %601 {offsets = [0, 32], sizes = [8, 32], strides = [1, 1]} : vector<8x128xf32> to vector<8x32xf32>
    %605 = vector.extract_strided_slice %602 {offsets = [0, 64], sizes = [8, 32], strides = [1, 1]} : vector<8x128xf32> to vector<8x32xf32>
    %606 = vector.extract_strided_slice %601 {offsets = [0, 96], sizes = [8, 32], strides = [1, 1]} : vector<8x128xf32> to vector<8x32xf32>
    %607 = arith.mulf %604, %591 : vector<8x32xf32>
    %608 = arith.mulf %603, %605 : vector<8x32xf32>
    %609 = arith.addf %607, %608 : vector<8x32xf32>
    %610 = math.tanh %609 : vector<8x32xf32>
    %611 = arith.mulf %606, %610 : vector<8x32xf32>
    %612 = vector.extract_strided_slice %519 {offsets = [40, 0], sizes = [8, 128], strides = [1, 1]} : vector<80x128xf32> to vector<8x128xf32>
    %cst_131 = arith.constant dense<0.000000e+00> : vector<8x128xf32>
    %613 = tpu.matmul %611, %319, %cst_131 {dimension_numbers = #tpu.dot_dimension_numbers<[1], [0], [0], [1], [0, 0, 1, 1], [], []>} : vector<8x32xf32>, vector<32x128xf32>, vector<8x128xf32> -> vector<8x128xf32>
    %614 = arith.addf %612, %613 : vector<8x128xf32>
    %615 = arith.negf %614 : vector<8x128xf32>
    %616 = math.exp %615 : vector<8x128xf32>
    %cst_132 = arith.constant 1.000000e+00 : f32
    %617 = vector.broadcast %cst_132 : f32 to vector<8x128xf32>
    %618 = arith.addf %617, %616 : vector<8x128xf32>
    %619 = arith.divf %617, %618 : vector<8x128xf32>
    %620 = math.tanh %614 : vector<8x128xf32>
    %621 = vector.extract_strided_slice %619 {offsets = [0, 0], sizes = [8, 32], strides = [1, 1]} : vector<8x128xf32> to vector<8x32xf32>
    %622 = vector.extract_strided_slice %619 {offsets = [0, 32], sizes = [8, 32], strides = [1, 1]} : vector<8x128xf32> to vector<8x32xf32>
    %623 = vector.extract_strided_slice %620 {offsets = [0, 64], sizes = [8, 32], strides = [1, 1]} : vector<8x128xf32> to vector<8x32xf32>
    %624 = vector.extract_strided_slice %619 {offsets = [0, 96], sizes = [8, 32], strides = [1, 1]} : vector<8x128xf32> to vector<8x32xf32>
    %625 = arith.mulf %622, %609 : vector<8x32xf32>
    %626 = arith.mulf %621, %623 : vector<8x32xf32>
    %627 = arith.addf %625, %626 : vector<8x32xf32>
    %628 = math.tanh %627 : vector<8x32xf32>
    %629 = arith.mulf %624, %628 : vector<8x32xf32>
    %630 = vector.extract_strided_slice %519 {offsets = [48, 0], sizes = [8, 128], strides = [1, 1]} : vector<80x128xf32> to vector<8x128xf32>
    %cst_133 = arith.constant dense<0.000000e+00> : vector<8x128xf32>
    %631 = tpu.matmul %629, %319, %cst_133 {dimension_numbers = #tpu.dot_dimension_numbers<[1], [0], [0], [1], [0, 0, 1, 1], [], []>} : vector<8x32xf32>, vector<32x128xf32>, vector<8x128xf32> -> vector<8x128xf32>
    %632 = arith.addf %630, %631 : vector<8x128xf32>
    %633 = arith.negf %632 : vector<8x128xf32>
    %634 = math.exp %633 : vector<8x128xf32>
    %cst_134 = arith.constant 1.000000e+00 : f32
    %635 = vector.broadcast %cst_134 : f32 to vector<8x128xf32>
    %636 = arith.addf %635, %634 : vector<8x128xf32>
    %637 = arith.divf %635, %636 : vector<8x128xf32>
    %638 = math.tanh %632 : vector<8x128xf32>
    %639 = vector.extract_strided_slice %637 {offsets = [0, 0], sizes = [8, 32], strides = [1, 1]} : vector<8x128xf32> to vector<8x32xf32>
    %640 = vector.extract_strided_slice %637 {offsets = [0, 32], sizes = [8, 32], strides = [1, 1]} : vector<8x128xf32> to vector<8x32xf32>
    %641 = vector.extract_strided_slice %638 {offsets = [0, 64], sizes = [8, 32], strides = [1, 1]} : vector<8x128xf32> to vector<8x32xf32>
    %642 = vector.extract_strided_slice %637 {offsets = [0, 96], sizes = [8, 32], strides = [1, 1]} : vector<8x128xf32> to vector<8x32xf32>
    %643 = arith.mulf %640, %627 : vector<8x32xf32>
    %644 = arith.mulf %639, %641 : vector<8x32xf32>
    %645 = arith.addf %643, %644 : vector<8x32xf32>
    %646 = math.tanh %645 : vector<8x32xf32>
    %647 = arith.mulf %642, %646 : vector<8x32xf32>
    %648 = vector.extract_strided_slice %519 {offsets = [56, 0], sizes = [8, 128], strides = [1, 1]} : vector<80x128xf32> to vector<8x128xf32>
    %cst_135 = arith.constant dense<0.000000e+00> : vector<8x128xf32>
    %649 = tpu.matmul %647, %319, %cst_135 {dimension_numbers = #tpu.dot_dimension_numbers<[1], [0], [0], [1], [0, 0, 1, 1], [], []>} : vector<8x32xf32>, vector<32x128xf32>, vector<8x128xf32> -> vector<8x128xf32>
    %650 = arith.addf %648, %649 : vector<8x128xf32>
    %651 = arith.negf %650 : vector<8x128xf32>
    %652 = math.exp %651 : vector<8x128xf32>
    %cst_136 = arith.constant 1.000000e+00 : f32
    %653 = vector.broadcast %cst_136 : f32 to vector<8x128xf32>
    %654 = arith.addf %653, %652 : vector<8x128xf32>
    %655 = arith.divf %653, %654 : vector<8x128xf32>
    %656 = math.tanh %650 : vector<8x128xf32>
    %657 = vector.extract_strided_slice %655 {offsets = [0, 0], sizes = [8, 32], strides = [1, 1]} : vector<8x128xf32> to vector<8x32xf32>
    %658 = vector.extract_strided_slice %655 {offsets = [0, 32], sizes = [8, 32], strides = [1, 1]} : vector<8x128xf32> to vector<8x32xf32>
    %659 = vector.extract_strided_slice %656 {offsets = [0, 64], sizes = [8, 32], strides = [1, 1]} : vector<8x128xf32> to vector<8x32xf32>
    %660 = vector.extract_strided_slice %655 {offsets = [0, 96], sizes = [8, 32], strides = [1, 1]} : vector<8x128xf32> to vector<8x32xf32>
    %661 = arith.mulf %658, %645 : vector<8x32xf32>
    %662 = arith.mulf %657, %659 : vector<8x32xf32>
    %663 = arith.addf %661, %662 : vector<8x32xf32>
    %664 = math.tanh %663 : vector<8x32xf32>
    %665 = arith.mulf %660, %664 : vector<8x32xf32>
    %666 = vector.extract_strided_slice %519 {offsets = [64, 0], sizes = [8, 128], strides = [1, 1]} : vector<80x128xf32> to vector<8x128xf32>
    %cst_137 = arith.constant dense<0.000000e+00> : vector<8x128xf32>
    %667 = tpu.matmul %665, %319, %cst_137 {dimension_numbers = #tpu.dot_dimension_numbers<[1], [0], [0], [1], [0, 0, 1, 1], [], []>} : vector<8x32xf32>, vector<32x128xf32>, vector<8x128xf32> -> vector<8x128xf32>
    %668 = arith.addf %666, %667 : vector<8x128xf32>
    %669 = arith.negf %668 : vector<8x128xf32>
    %670 = math.exp %669 : vector<8x128xf32>
    %cst_138 = arith.constant 1.000000e+00 : f32
    %671 = vector.broadcast %cst_138 : f32 to vector<8x128xf32>
    %672 = arith.addf %671, %670 : vector<8x128xf32>
    %673 = arith.divf %671, %672 : vector<8x128xf32>
    %674 = math.tanh %668 : vector<8x128xf32>
    %675 = vector.extract_strided_slice %673 {offsets = [0, 0], sizes = [8, 32], strides = [1, 1]} : vector<8x128xf32> to vector<8x32xf32>
    %676 = vector.extract_strided_slice %673 {offsets = [0, 32], sizes = [8, 32], strides = [1, 1]} : vector<8x128xf32> to vector<8x32xf32>
    %677 = vector.extract_strided_slice %674 {offsets = [0, 64], sizes = [8, 32], strides = [1, 1]} : vector<8x128xf32> to vector<8x32xf32>
    %678 = vector.extract_strided_slice %673 {offsets = [0, 96], sizes = [8, 32], strides = [1, 1]} : vector<8x128xf32> to vector<8x32xf32>
    %679 = arith.mulf %676, %663 : vector<8x32xf32>
    %680 = arith.mulf %675, %677 : vector<8x32xf32>
    %681 = arith.addf %679, %680 : vector<8x32xf32>
    %682 = math.tanh %681 : vector<8x32xf32>
    %683 = arith.mulf %678, %682 : vector<8x32xf32>
    %684 = vector.extract_strided_slice %519 {offsets = [72, 0], sizes = [8, 128], strides = [1, 1]} : vector<80x128xf32> to vector<8x128xf32>
    %cst_139 = arith.constant dense<0.000000e+00> : vector<8x128xf32>
    %685 = tpu.matmul %683, %319, %cst_139 {dimension_numbers = #tpu.dot_dimension_numbers<[1], [0], [0], [1], [0, 0, 1, 1], [], []>} : vector<8x32xf32>, vector<32x128xf32>, vector<8x128xf32> -> vector<8x128xf32>
    %686 = arith.addf %684, %685 : vector<8x128xf32>
    %687 = arith.negf %686 : vector<8x128xf32>
    %688 = math.exp %687 : vector<8x128xf32>
    %cst_140 = arith.constant 1.000000e+00 : f32
    %689 = vector.broadcast %cst_140 : f32 to vector<8x128xf32>
    %690 = arith.addf %689, %688 : vector<8x128xf32>
    %691 = arith.divf %689, %690 : vector<8x128xf32>
    %692 = math.tanh %686 : vector<8x128xf32>
    %693 = vector.extract_strided_slice %691 {offsets = [0, 0], sizes = [8, 32], strides = [1, 1]} : vector<8x128xf32> to vector<8x32xf32>
    %694 = vector.extract_strided_slice %691 {offsets = [0, 32], sizes = [8, 32], strides = [1, 1]} : vector<8x128xf32> to vector<8x32xf32>
    %695 = vector.extract_strided_slice %692 {offsets = [0, 64], sizes = [8, 32], strides = [1, 1]} : vector<8x128xf32> to vector<8x32xf32>
    %696 = vector.extract_strided_slice %691 {offsets = [0, 96], sizes = [8, 32], strides = [1, 1]} : vector<8x128xf32> to vector<8x32xf32>
    %697 = arith.mulf %694, %681 : vector<8x32xf32>
    %698 = arith.mulf %693, %695 : vector<8x32xf32>
    %699 = arith.addf %697, %698 : vector<8x32xf32>
    %700 = math.tanh %699 : vector<8x32xf32>
    %701 = arith.mulf %696, %700 : vector<8x32xf32>
    %c0_141 = arith.constant 0 : index
    %c0_142 = arith.constant 0 : index
    %702 = vector.load %arg2[%c0_141, %c0_142] : memref<8x64xf32, #tpu.memory_space<vmem>>, vector<8x64xf32>
    %c0_143 = arith.constant 0 : index
    %c0_144 = arith.constant 0 : index
    %703 = vector.load %arg16[%c0_143, %c0_144] : memref<64x32xf32, #tpu.memory_space<vmem>>, vector<64x32xf32>
    %cst_145 = arith.constant dense<0.000000e+00> : vector<8x32xf32>
    %704 = tpu.matmul %702, %703, %cst_145 {dimension_numbers = #tpu.dot_dimension_numbers<[1], [0], [0], [1], [0, 0, 1, 1], [], []>} : vector<8x64xf32>, vector<64x32xf32>, vector<8x32xf32> -> vector<8x32xf32>
    %c0_146 = arith.constant 0 : index
    %c0_147 = arith.constant 0 : index
    %705 = vector.load %arg17[%c0_146, %c0_147] : memref<32x32xf32, #tpu.memory_space<vmem>>, vector<32x32xf32>
    %cst_148 = arith.constant dense<0.000000e+00> : vector<8x32xf32>
    %706 = tpu.matmul %313, %705, %cst_148 {dimension_numbers = #tpu.dot_dimension_numbers<[1], [0], [0], [1], [0, 0, 1, 1], [], []>} : vector<8x32xf32>, vector<32x32xf32>, vector<8x32xf32> -> vector<8x32xf32>
    %707 = arith.addf %704, %706 : vector<8x32xf32>
    %c0_149 = arith.constant 0 : index
    %c0_150 = arith.constant 0 : index
    %708 = vector.load %arg18[%c0_149, %c0_150] : memref<1x32xf32, #tpu.memory_space<vmem>>, vector<1x32xf32>
    %709 = vector.broadcast %708 : vector<1x32xf32> to vector<8x32xf32>
    %710 = arith.addf %707, %709 : vector<8x32xf32>
    %711 = math.tanh %710 : vector<8x32xf32>
    %712 = tpu.transpose %701, [1, 0] : vector<8x32xf32> -> vector<32x8xf32>
    %cst_151 = arith.constant dense<0.000000e+00> : vector<8x8xf32>
    %713 = tpu.matmul %711, %712, %cst_151 {dimension_numbers = #tpu.dot_dimension_numbers<[1], [0], [0], [1], [0, 0, 1, 1], [], []>} : vector<8x32xf32>, vector<32x8xf32>, vector<8x8xf32> -> vector<8x8xf32>
    %c0_152 = arith.constant 0 : index
    %c0_153 = arith.constant 0 : index
    %714 = vector.load %arg3[%c0_152, %c0_153] : memref<8x8xf32, #tpu.memory_space<vmem>>, vector<8x8xf32>
    %715 = arith.addf %713, %714 : vector<8x8xf32>
    %cst_154 = arith.constant dense<0xFF800000> : vector<8xf32>
    %716 = vector.multi_reduction <maximumf>, %715, %cst_154 [1] : vector<8x8xf32> to vector<8xf32>
    %717 = vector.shape_cast %716 : vector<8xf32> to vector<8x1xf32>
    %718 = vector.broadcast %717 : vector<8x1xf32> to vector<8x8xf32>
    %719 = arith.subf %715, %718 : vector<8x8xf32>
    %720 = math.exp %719 : vector<8x8xf32>
    %cst_155 = arith.constant dense<0.000000e+00> : vector<8xf32>
    %721 = vector.multi_reduction <add>, %720, %cst_155 [1] : vector<8x8xf32> to vector<8xf32>
    %722 = vector.shape_cast %721 : vector<8xf32> to vector<8x1xf32>
    %723 = tpu.reciprocal %722 {approx = true} : vector<8x1xf32> -> vector<8x1xf32>
    %724 = vector.broadcast %723 : vector<8x1xf32> to vector<8x8xf32>
    %725 = arith.mulf %720, %724 : vector<8x8xf32>
    %cst_156 = arith.constant dense<0.000000e+00> : vector<8x32xf32>
    %726 = tpu.matmul %725, %701, %cst_156 {dimension_numbers = #tpu.dot_dimension_numbers<[1], [0], [0], [1], [0, 0, 1, 1], [], []>} : vector<8x8xf32>, vector<8x32xf32>, vector<8x32xf32> -> vector<8x32xf32>
    %c0_157 = arith.constant 0 : index
    %c0_158 = arith.constant 0 : index
    %727 = vector.load %arg19[%c0_157, %c0_158] : memref<32x32xf32, #tpu.memory_space<vmem>>, vector<32x32xf32>
    %cst_159 = arith.constant dense<0.000000e+00> : vector<8x32xf32>
    %728 = tpu.matmul %726, %727, %cst_159 {dimension_numbers = #tpu.dot_dimension_numbers<[1], [0], [0], [1], [0, 0, 1, 1], [], []>} : vector<8x32xf32>, vector<32x32xf32>, vector<8x32xf32> -> vector<8x32xf32>
    %c0_160 = arith.constant 0 : index
    %c0_161 = arith.constant 0 : index
    %729 = vector.load %arg20[%c0_160, %c0_161] : memref<1x32xf32, #tpu.memory_space<vmem>>, vector<1x32xf32>
    %730 = vector.broadcast %729 : vector<1x32xf32> to vector<8x32xf32>
    %731 = arith.addf %728, %730 : vector<8x32xf32>
    %732 = math.tanh %731 : vector<8x32xf32>
    %733 = arith.addf %711, %732 : vector<8x32xf32>
    %c0_162 = arith.constant 0 : index
    %c0_163 = arith.constant 0 : index
    %734 = vector.load %arg21[%c0_162, %c0_163] : memref<8x32xf32, #tpu.memory_space<vmem>>, vector<8x32xf32>
    tpu.vector_store %arg21[%c0_162, %c0_163], %733 {strides = array<i32>} : memref<8x32xf32, #tpu.memory_space<vmem>>, vector<8x32xf32>,
    return
  }
}

</mosaic_0001>

<bundles_post_ra>
// kernel: memory_network_forward.1
= control target key start
LH: loop header
LB: loop body
LE: loop exit
PB: predicated region body
PF: predicated region fallthrough
CT: control target
= control target key end

     0   :  { %s7261_s0 = inlined_call_operand.vmem [shape: f32[64,32], index: 0, kind: input, shape index: {}]   ;;  %s7262_s1 = inlined_call_operand.vmem [shape: f32[80,32], index: 1, kind: input, shape index: {}]   ;;  %s7263_s2 = inlined_call_operand.vmem [shape: f32[8,64], index: 2, kind: input, shape index: {}]   ;;  %s7264_s3 = inlined_call_operand.vmem [shape: f32[8,8], index: 3, kind: input, shape index: {}]   ;;  %s7265_s4 = inlined_call_operand.vmem [shape: f32[32,128], index: 4, kind: input, shape index: {}]   ;;  %s7266_s5 = inlined_call_operand.vmem [shape: f32[32,128], index: 5, kind: input, shape index: {}]   ;;  %s7267_s6 = inlined_call_operand.vmem [shape: f32[1,128], index: 6, kind: input, shape index: {}]   ;;  %s7268_s7 = inlined_call_operand.vmem [shape: f32[32,128], index: 7, kind: input, shape index: {}]   ;;  %s7269_s8 = inlined_call_operand.vmem [shape: f32[32,128], index: 8, kind: input, shape index: {}]   ;;  %s7270_s9 = inlined_call_operand.vmem [shape: f32[1,128], index: 9, kind: input, shape index: {}]   ;;  %s7271_s10 = inlined_call_operand.vmem [shape: f32[32,128], index: 10, kind: input, shape index: {}]   ;;  %s7272_s11 = inlined_call_operand.vmem [shape: f32[32,128], index: 11, kind: input, shape index: {}]   ;;  %s7273_s12 = inlined_call_operand.vmem [shape: f32[1,128], index: 12, kind: input, shape index: {}]   ;;  %s7274_s13 = inlined_call_operand.vmem [shape: f32[32,128], index: 13, kind: input, shape index: {}]   ;;  %s7275_s14 = inlined_call_operand.vmem [shape: f32[32,128], index: 14, kind: input, shape index: {}]   ;;  %s7276_s15 = inlined_call_operand.vmem [shape: f32[1,128], index: 15, kind: input, shape index: {}]   ;;  %s7277_s16 = inlined_call_operand.vmem [shape: f32[64,32], index: 16, kind: input, shape index: {}]   ;;  %s7278_s17 = inlined_call_operand.vmem [shape: f32[32,32], index: 17, kind: input, shape index: {}]   ;;  %s7279_s18 = inlined_call_operand.vmem [shape: f32[1,32], index: 18, kind: input, shape index: {}]   ;;  %s7280_s19 = inlined_call_operand.vmem [shape: f32[32,32], index: 19, kind: input, shape index: {}]   ;;  %s7281_s20 = inlined_call_operand.vmem [shape: f32[1,32], index: 20, kind: input, shape index: {}]   ;;  %s7282_s21 = inlined_call_operand.hbm [shape: f32[8,32], index: 21, kind: output, shape index: {}]  }
   0x1   :  { %7287 = sst [smem:[#allocation7_spill]] %s7261_s0 }
   0x2   :  { %7288 = sst [smem:[#allocation8_spill]] %s7262_s1 }
   0x3   :  { %7289 = sst [smem:[#allocation9_spill]] %s7263_s2 }
   0x4   :  { %7290 = sst [smem:[#allocation10_spill]] %s7264_s3 }
   0x5   :  { %7291 = sst [smem:[#allocation11_spill]] %s7265_s4 }
   0x6   :  { %7292 = sst [smem:[#allocation12_spill]] %s7266_s5 }
   0x7   :  { %s7293_s26 = sld [smem:[#allocation11_spill]]  ;;  %s7294_s0 = sld [smem:[#allocation12_spill]]  ;;  %vm101_vm0 = vcmask 261120   ;;  %v6278_v4 = vmov 0.0|0.0   ;;  %vm6279_vm1 = vmmov 0   ;;  %v6280_v13 = vmov 0.0  }
   0x8   :  { %5688 = vmatprep.subr.bf16.mxu1 %v6278_v4  ;;  %s7295_s25 = sld [smem:[#allocation7_spill]]  ;;  %5175 = vmatprep.mubr.msk.f32.mxu1 %vm6279_vm1, %v6280_v13 }
   0xd   :  { %v77_v0 = vld [vmem:[%s7293_s26] sm:$0xff]  ;;  %v78_v1 = vld [vmem:[%s7293_s26 + $0x8] sm:$0xff]  ;;  %v79_v6 = vld [vmem:[%s7293_s26 + $0x10] sm:$0xff] }
   0xe   :  { %v81_v2 = vld [vmem:[%s7294_s0] sm:$0xff]  ;;  %v5680_v3 = vpack.c.bf16 %v78_v1, %v77_v0  ;;  %v82_v5 = vld [vmem:[%s7294_s0 + $0x8] sm:$0xff]  ;;  %v80_v7 = vld [vmem:[%s7293_s26 + $0x18] sm:$0xff] }
   0xf   :  { %v6413_v8 = vpack.c.bf16 %v82_v5, %v81_v2  ;;  %v5684_v9 = vpack.c.bf16 %v80_v7, %v79_v6  ;;  %v69_v10 = vld [vmem:[%s7295_s25] sm:$0xff]  ;;  %v83_v11 = vld [vmem:[%s7294_s0 + $0x10] sm:$0xff]  ;;  %v84_v12 = vld [vmem:[%s7294_s0 + $0x18] sm:$0xff] }
  0x10   :  { %5681 = vmatprep.subr.bf16.mxu0 %v5680_v3  ;;  %5155 = vmatprep.mubr.msk.f32.mxu0 %vm101_vm0, %v69_v10 }
  0x11   :  { %26 = vsyncpa [#allocation5], 0  ;;  %5683 = vmatpush3.bf16.msra.mxu0 %v5680_v3  ;;  %5690 = vmatpush3.bf16.msra.mxu1 %v6413_v8  ;;  %v6428_v14 = vpack.c.bf16 %v84_v12, %v83_v11  ;;  %v70_v15 = vld [vmem:[%s7295_s25 + $0x8] sm:$0xff]  ;;  %v6452_v16 = vld [vmem:[%s7267_s6] ss:$0 sm:$0xff]  ;;  %s6281_s5 = smov 64  }
  0x12   :  { %5685 = vmatprep.subr.bf16.mxu0 %v5684_v9  ;;  %5691 = vmatprep.subr.bf16.mxu1 %v6278_v4  ;;  %s6282_s6 = smov 32   ;;  %v71_v51 = vld [vmem:[%s7295_s25 + $0x10] sm:$0xff]  ;;  %v72_v52 = vld [vmem:[%s7295_s25 + $0x18] sm:$0xff]  ;;  %v73_v53 = vld [vmem:[%s7295_s25 + $0x20] sm:$0xff]  ;;  %s7296_s4 = sld [smem:[#allocation8_spill]]  ;;  %vm4427_vm2 = vcmask 523264  }
  0x13   :  { %v74_v54 = vld [vmem:[%s7295_s25 + $0x28] sm:$0xff]  ;;  %v75_v55 = vld [vmem:[%s7295_s25 + $0x30] sm:$0xff]  ;;  %v76_v56 = vld [vmem:[%s7295_s25 + $0x38] sm:$0xff]  ;;  %s7297_s30 = sld [smem:[#allocation9_spill]]  ;;  %vm4589_vm3 = vcmask 64512  }
  0x15   :  { %5687 = vmatpush3.bf16.msra.mxu0 %v5684_v9  ;;  %5693 = vmatpush3.bf16.msra.mxu1 %v6428_v14 }
  0x16   :  { %5694 = vmatprep.subr.bf16.mxu1 %v6278_v4  ;;  %5700 = vmatprep.subr.bf16.mxu0 %v6278_v4 }
  0x18   :  { %5156 = vmatmul.mubr.msk.f32.vlgmr.msra.gmra.mrb[0].mxu0 %vm101_vm0, %v70_v15  ;;  %5176 = vmatmul.mubr.f32.vlgmr.msra.gmra.mrb[0].mxu1 %v6280_v13 }
  0x19   :  { %5696 = vmatpush3.bf16.msra.mxu1 %v6413_v8  ;;  %5186 = vmatprep.mubr.msk.f32.mxu1 %vm6279_vm1, %v6280_v13 }
  0x1a   :  { %5697 = vmatprep.subr.bf16.mxu1 %v6278_v4  ;;  %5702 = vmatpush3.bf16.msra.mxu0 %v6413_v8 }
  0x1b   :  { %5703 = vmatprep.subr.bf16.mxu0 %v6278_v4  ;;  %5158 = vmatprep.mubr.msk.f32.mxu0 %vm101_vm0, %v71_v51 }
  0x1c   :  { %5159 = vmatmul.mubr.msk.f32.gmra.mrb[2].mxu0 %vm101_vm0, %v72_v52 }
  0x1d   :  { %5699 = vmatpush3.bf16.msra.mxu1 %v6428_v14  ;;  %5161 = vmatprep.mubr.msk.f32.mxu0 %vm101_vm0, %v73_v53 }
  0x1e   :  { %5705 = vmatpush3.bf16.msra.mxu0 %v6428_v14  ;;  %5706 = vmatprep.subr.bf16.mxu1 %v6278_v4 }
  0x1f   :  { %5712 = vmatprep.subr.bf16.mxu0 %v6278_v4 }
  0x20   :  { %5162 = vmatmul.mubr.msk.f32.gmra.mrb[4].mxu0 %vm101_vm0, %v74_v54 }
  0x21   :  { %5164 = vmatprep.mubr.msk.f32.mxu0 %vm101_vm0, %v75_v55 }
  0x24   :  { %5165 = vmatmul.mubr.msk.f32.gmra.mrb[6].mxu0 %vm101_vm0, %v76_v56 }
  0x25   :  { %5197 = vmatprep.mubr.msk.f32.mxu0 %vm6279_vm1, %v6280_v13 }
  0xeb   :  { %v5157_v17 = vpop.f32.mrb[0].mxu0  ;;  %v300_v18 = vpop.f32.mrb[0].mxu1 }
  0xec   :  { %v192_v19 = vpop.f32.mrb[1].mxu0  ;;  %v5177_v20 = vpop.f32.mrb[1].mxu1  ;;  %v198_v37 = vadd.f32 %v5157_v17, %v6452_v16 }
  0xed   :  { %v193_v21 = vadd.f32 %v6452_v16, %v192_v19 }
  0xef   :  { %v304_v22 = vadd.f32 %v300_v18, %v193_v21  ;;  %v5160_v60 = vpop.f32.mrb[2].mxu0 }
  0xf0   :  { %v202_v61 = vpop.f32.mrb[3].mxu0 }
  0xf1   :  { %5958 = vtanh.f32 %v304_v22  ;;  %v4785_v24 = vmul.f32 -1.442695, %v304_v22  ;;  %v203_v3 = vadd.f32 %v6452_v16, %v202_v61 }
  0xf3   :  { %5960 = vpow2.f32 %v4785_v24  ;;  %v6498_v62 = vpop.f32.mrb[4].mxu0 }
  0xf4   :  { %v6500_v63 = vpop.f32.mrb[5].mxu0 }
  0xf7   :  { %v6502_v0 = vpop.f32.mrb[6].mxu0 }
  0xf8   :  { %v6504_v1 = vpop.f32.mrb[7].mxu0 }
  0xfb   :  { %v5959_v23 = vpop.eup %5958 }
  0xfc   :  { %314 = vrot.lane.b32.xlu0 %v5959_v23, %s6281_s5 }
  0xfd   :  { %v5961_v25 = vpop.eup %5960 }
  0xfe   :  { %v308_v26 = vadd.f32 1.0, %v5961_v25 }
 0x100   :  { %5962 = vrcp.f32 %v308_v26  ;;  %v208_v26 = vadd.f32 %v5160_v60, %v6452_v16 }
 0x10a   :  { %v5963_v27 = vpop.eup %5962 }
 0x10b   :  { %v312_v30 = vmul.f32 0.0, %v5963_v27 }
 0x16e   :  { %v315_v28 = vpop.permute.xlu0 %314 }
 0x16f   :  { %v317_v29 = vmul.f32 %v5963_v27, %v315_v28 }
 0x171   :  { %319 = vrot.lane.b32.xlu0 %v317_v29, %s6282_s6 }
 0x1e3   :  { %v320_v31 = vpop.permute.xlu0 %319 }
 0x1e4   :  { %v322_v32 = vadd.f32 %v320_v31, %v312_v30 }
 0x1e6   :  { %5964 = vtanh.f32 %v322_v32 }
 0x1f0   :  { %v5965_v33 = vpop.eup %5964 }
 0x1f1   :  { %325 = vrot.lane.b32.xlu1 %v5965_v33, %s6281_s5 }
 0x263   :  { %v326_v34 = vpop.permute.xlu1 %325 }
 0x264   :  { %v328_v35 = vmul.f32 %v5963_v27, %v326_v34 }
 0x266   :  { %330 = vrot.lane.b32.xlu1 %v328_v35, %s6282_s6 }
 0x2d8   :  { %v331_v36 = vpop.permute.xlu1 %330 }
 0x2d9   :  { %333 = vst.msk [vmem:[#allocation2] sm:$0xff] %vm101_vm0, %v331_v36  ;;  %5187 = vmatmul.mubr.msk.f32.vlgmr.msra.gmra.mrb[2].mxu1 %vm101_vm0, %v331_v36 }
 0x2da   :  { %5708 = vmatpush3.bf16.msra.mxu1 %v6413_v8  ;;  %5208 = vmatprep.mubr.msk.f32.mxu1 %vm6279_vm1, %v6280_v13 }
 0x2db   :  { %5709 = vmatprep.subr.bf16.mxu1 %v6278_v4 }
 0x2de   :  { %5711 = vmatpush3.bf16.msra.mxu1 %v6428_v14 }
 0x2df   :  { %5718 = vmatprep.subr.bf16.mxu1 %v6278_v4 }
 0x3ac   :  { %v402_v38 = vpop.f32.mrb[2].mxu1 }
 0x3ad   :  { %v406_v39 = vadd.f32 %v402_v38, %v198_v37  ;;  %v5188_v40 = vpop.f32.mrb[3].mxu1 }
 0x3af   :  { %5966 = vtanh.f32 %v406_v39  ;;  %v4787_v42 = vmul.f32 -1.442695, %v406_v39 }
 0x3b1   :  { %5968 = vpow2.f32 %v4787_v42 }
 0x3b9   :  { %v5967_v41 = vpop.eup %5966 }
 0x3ba   :  { %416 = vrot.lane.b32.xlu0 %v5967_v41, %s6281_s5 }
 0x3bb   :  { %v5969_v43 = vpop.eup %5968 }
 0x3bc   :  { %v410_v44 = vadd.f32 1.0, %v5969_v43 }
 0x3be   :  { %5970 = vrcp.f32 %v410_v44  ;;  %v213_v44 = vadd.f32 %v6452_v16, %v6500_v63  ;;  %v218_v63 = vadd.f32 %v6498_v62, %v6452_v16 }
 0x3c8   :  { %v5971_v45 = vpop.eup %5970 }
 0x3c9   :  { %v414_v48 = vmul.f32 %v5971_v45, %v322_v32 }
 0x42c   :  { %v417_v46 = vpop.permute.xlu0 %416 }
 0x42d   :  { %v419_v47 = vmul.f32 %v5971_v45, %v417_v46 }
 0x42f   :  { %421 = vrot.lane.b32.xlu1 %v419_v47, %s6282_s6 }
 0x4a1   :  { %v422_v49 = vpop.permute.xlu1 %421 }
 0x4a2   :  { %v424_v50 = vadd.f32 %v422_v49, %v414_v48 }
 0x4a4   :  { %5972 = vtanh.f32 %v424_v50 }
 0x4ae   :  { %v5973_v57 = vpop.eup %5972 }
 0x4af   :  { %427 = vrot.lane.b32.xlu0 %v5973_v57, %s6281_s5 }
 0x521   :  { %v428_v58 = vpop.permute.xlu0 %427 }
 0x522   :  { %v430_v59 = vmul.f32 %v5971_v45, %v428_v58 }
 0x524   :  { %432 = vrot.lane.b32.xlu1 %v430_v59, %s6282_s6 }
 0x596   :  { %v433_v2 = vpop.permute.xlu1 %432 }
 0x597   :  { %435 = vst.msk [vmem:[#allocation2 + $0x8] sm:$0xff] %vm101_vm0, %v433_v2  ;;  %5198 = vmatmul.mubr.msk.f32.vlgmr.msra.gmra.mrb[8].mxu0 %vm101_vm0, %v433_v2 }
 0x598   :  { %5714 = vmatpush3.bf16.msra.mxu0 %v6413_v8  ;;  %5219 = vmatprep.mubr.msk.f32.mxu0 %vm6279_vm1, %v6280_v13 }
 0x599   :  { %5715 = vmatprep.subr.bf16.mxu0 %v6278_v4 }
 0x59c   :  { %5717 = vmatpush3.bf16.msra.mxu0 %v6428_v14 }
 0x59d   :  { %5724 = vmatprep.subr.bf16.mxu0 %v6278_v4 }
 0x66a   :  { %v504_v5 = vpop.f32.mrb[8].mxu0 }
 0x66b   :  { %v508_v6 = vadd.f32 %v504_v5, %v203_v3  ;;  %v5199_v7 = vpop.f32.mrb[9].mxu0 }
 0x66d   :  { %5974 = vtanh.f32 %v508_v6  ;;  %v4789_v10 = vmul.f32 -1.442695, %v508_v6 }
 0x66f   :  { %5976 = vpow2.f32 %v4789_v10 }
 0x677   :  { %v5975_v9 = vpop.eup %5974 }
 0x678   :  { %518 = vrot.lane.b32.xlu0 %v5975_v9, %s6281_s5 }
 0x679   :  { %v5977_v11 = vpop.eup %5976 }
 0x67a   :  { %v512_v12 = vadd.f32 1.0, %v5977_v11 }
 0x67c   :  { %5978 = vrcp.f32 %v512_v12 }
 0x686   :  { %v5979_v15 = vpop.eup %5978 }
 0x687   :  { %v516_v19 = vmul.f32 %v5979_v15, %v424_v50 }
 0x6ea   :  { %v519_v17 = vpop.permute.xlu0 %518 }
 0x6eb   :  { %v521_v18 = vmul.f32 %v5979_v15, %v519_v17  ;;  %v86_v17 = vld [vmem:[%s7268_s7] sm:$0xff] }
 0x6ed   :  { %523 = vrot.lane.b32.xlu1 %v521_v18, %s6282_s6  ;;  %v87_v18 = vld [vmem:[%s7268_s7 + $0x8] sm:$0xff] }
 0x75f   :  { %v524_v20 = vpop.permute.xlu1 %523 }
 0x760   :  { %v526_v21 = vadd.f32 %v524_v20, %v516_v19  ;;  %v5736_v19 = vpack.c.bf16 %v87_v18, %v86_v17 }
 0x762   :  { %5980 = vtanh.f32 %v526_v21 }
 0x76c   :  { %v5981_v22 = vpop.eup %5980 }
 0x76d   :  { %529 = vrot.lane.b32.xlu0 %v5981_v22, %s6281_s5 }
 0x7df   :  { %v530_v23 = vpop.permute.xlu0 %529 }
 0x7e0   :  { %v532_v24 = vmul.f32 %v5979_v15, %v530_v23  ;;  %v88_v23 = vld [vmem:[%s7268_s7 + $0x10] sm:$0xff] }
 0x7e2   :  { %534 = vrot.lane.b32.xlu1 %v532_v24, %s6282_s6  ;;  %v89_v24 = vld [vmem:[%s7268_s7 + $0x18] sm:$0xff] }
 0x854   :  { %v535_v25 = vpop.permute.xlu1 %534 }
 0x855   :  { %537 = vst.msk [vmem:[#allocation2 + $0x10] sm:$0xff] %vm101_vm0, %v535_v25  ;;  %5209 = vmatmul.mubr.msk.f32.vlgmr.msra.gmra.mrb[4].mxu1 %vm101_vm0, %v535_v25  ;;  %v5740_v25 = vpack.c.bf16 %v89_v24, %v88_v23 }
 0x856   :  { %5720 = vmatpush3.bf16.msra.mxu1 %v6413_v8  ;;  %5230 = vmatprep.mubr.msk.f32.mxu1 %vm6279_vm1, %v6280_v13 }
 0x857   :  { %5721 = vmatprep.subr.bf16.mxu1 %v6278_v4 }
 0x85a   :  { %5723 = vmatpush3.bf16.msra.mxu1 %v6428_v14 }
 0x85b   :  { %5730 = vmatprep.subr.bf16.mxu1 %v6278_v4 }
 0x928   :  { %v606_v27 = vpop.f32.mrb[4].mxu1 }
 0x929   :  { %v610_v28 = vadd.f32 %v606_v27, %v208_v26  ;;  %v5210_v29 = vpop.f32.mrb[5].mxu1  ;;  %v1048_v27 = vld [vmem:[#allocation2] sm:$0xff] }
 0x92a   :  { %v1050_v29 = vld [vmem:[#allocation2 + $0x10] sm:$0xff] }
 0x92b   :  { %5982 = vtanh.f32 %v610_v28  ;;  %v4791_v31 = vmul.f32 -1.442695, %v610_v28  ;;  %v1049_v28 = vld [vmem:[#allocation2 + $0x8] sm:$0xff] }
 0x92d   :  { %5984 = vpow2.f32 %v4791_v31 }
 0x935   :  { %v5983_v30 = vpop.eup %5982 }
 0x936   :  { %620 = vrot.lane.b32.xlu0 %v5983_v30, %s6281_s5 }
 0x937   :  { %v5985_v32 = vpop.eup %5984 }
 0x938   :  { %v614_v33 = vadd.f32 1.0, %v5985_v32 }
 0x93a   :  { %5986 = vrcp.f32 %v614_v33  ;;  %v223_v33 = vadd.f32 %v6452_v16, %v6504_v1 }
 0x944   :  { %v5987_v34 = vpop.eup %5986 }
 0x945   :  { %v618_v37 = vmul.f32 %v5987_v34, %v526_v21 }
 0x9a8   :  { %v621_v35 = vpop.permute.xlu0 %620 }
 0x9a9   :  { %v623_v36 = vmul.f32 %v5987_v34, %v621_v35 }
 0x9ab   :  { %625 = vrot.lane.b32.xlu1 %v623_v36, %s6282_s6 }
 0xa1d   :  { %v626_v38 = vpop.permute.xlu1 %625 }
 0xa1e   :  { %v628_v39 = vadd.f32 %v626_v38, %v618_v37 }
 0xa20   :  { %5988 = vtanh.f32 %v628_v39 }
 0xa2a   :  { %v5989_v40 = vpop.eup %5988 }
 0xa2b   :  { %631 = vrot.lane.b32.xlu0 %v5989_v40, %s6281_s5 }
 0xa9d   :  { %v632_v41 = vpop.permute.xlu0 %631 }
 0xa9e   :  { %v634_v42 = vmul.f32 %v5987_v34, %v632_v41 }
 0xaa0   :  { %636 = vrot.lane.b32.xlu1 %v634_v42, %s6282_s6 }
 0xb12   :  { %v637_v43 = vpop.permute.xlu1 %636 }
 0xb13   :  { %639 = vst.msk [vmem:[#allocation2 + $0x18] sm:$0xff] %vm101_vm0, %v637_v43  ;;  %5220 = vmatmul.mubr.msk.f32.vlgmr.msra.gmra.mrb[10].mxu0 %vm101_vm0, %v637_v43 }
 0xb14   :  { %5726 = vmatpush3.bf16.msra.mxu0 %v6413_v8  ;;  %5241 = vmatprep.mubr.msk.f32.mxu0 %vm6279_vm1, %v6280_v13 }
 0xb15   :  { %5727 = vmatprep.subr.bf16.mxu0 %v6278_v4 }
 0xb18   :  { %5729 = vmatpush3.bf16.msra.mxu0 %v6428_v14 }
 0xb19   :  { %5737 = vmatprep.subr.bf16.mxu0 %v5736_v19 }
 0xb1a   :  { %v1051_v30 = vld [vmem:[#allocation2 + $0x18] sm:$0xff] }
 0xbe6   :  { %v708_v45 = vpop.f32.mrb[10].mxu0 }
 0xbe7   :  { %v712_v46 = vadd.f32 %v708_v45, %v213_v44  ;;  %v5221_v47 = vpop.f32.mrb[11].mxu0 }
 0xbe9   :  { %5990 = vtanh.f32 %v712_v46  ;;  %v4793_v49 = vmul.f32 -1.442695, %v712_v46 }
 0xbeb   :  { %5992 = vpow2.f32 %v4793_v49 }
 0xbf3   :  { %v5991_v48 = vpop.eup %5990 }
 0xbf4   :  { %722 = vrot.lane.b32.xlu0 %v5991_v48, %s6281_s5 }
 0xbf5   :  { %v5993_v50 = vpop.eup %5992 }
 0xbf6   :  { %v716_v51 = vadd.f32 1.0, %v5993_v50 }
 0xbf8   :  { %5994 = vrcp.f32 %v716_v51 }
 0xc02   :  { %v5995_v52 = vpop.eup %5994 }
 0xc03   :  { %v720_v55 = vmul.f32 %v5995_v52, %v628_v39 }
 0xc66   :  { %v723_v53 = vpop.permute.xlu0 %722 }
 0xc67   :  { %v725_v54 = vmul.f32 %v5995_v52, %v723_v53  ;;  %v90_v53 = vld [vmem:[%s7269_s8] sm:$0xff] }
 0xc69   :  { %727 = vrot.lane.b32.xlu1 %v725_v54, %s6282_s6  ;;  %v91_v54 = vld [vmem:[%s7269_s8 + $0x8] sm:$0xff] }
 0xcdb   :  { %v728_v56 = vpop.permute.xlu1 %727 }
 0xcdc   :  { %v730_v57 = vadd.f32 %v728_v56, %v720_v55  ;;  %v6604_v55 = vpack.c.bf16 %v91_v54, %v90_v53  ;;  %v92_v56 = vld [vmem:[%s7269_s8 + $0x10] sm:$0xff] }
 0xcde   :  { %5996 = vtanh.f32 %v730_v57 }
 0xce8   :  { %v5997_v58 = vpop.eup %5996 }
 0xce9   :  { %733 = vrot.lane.b32.xlu0 %v5997_v58, %s6281_s5 }
 0xd5b   :  { %v734_v59 = vpop.permute.xlu0 %733 }
 0xd5c   :  { %v736_v60 = vmul.f32 %v5995_v52, %v734_v59 }
 0xd5e   :  { %738 = vrot.lane.b32.xlu1 %v736_v60, %s6282_s6 }
 0xdd0   :  { %v739_v61 = vpop.permute.xlu1 %738 }
 0xdd1   :  { %741 = vst.msk [vmem:[#allocation2 + $0x20] sm:$0xff] %vm101_vm0, %v739_v61  ;;  %5231 = vmatmul.mubr.msk.f32.vlgmr.msra.gmra.mrb[6].mxu1 %vm101_vm0, %v739_v61 }
 0xdd2   :  { %5732 = vmatpush3.bf16.msra.mxu1 %v6413_v8  ;;  %5252 = vmatprep.mubr.msk.f32.mxu1 %vm6279_vm1, %v6280_v13 }
 0xdd3   :  { %5733 = vmatprep.subr.bf16.mxu1 %v6278_v4 }
 0xdd6   :  { %5735 = vmatpush3.bf16.msra.mxu1 %v6428_v14 }
 0xdd7   :  { %5744 = vmatprep.subr.bf16.mxu1 %v6278_v4 }
 0xdd8   :  { %v1052_v31 = vld [vmem:[#allocation2 + $0x20] sm:$0xff] }
 0xea4   :  { %v810_v2 = vpop.f32.mrb[6].mxu1 }
 0xea5   :  { %v814_v3 = vadd.f32 %v810_v2, %v218_v63  ;;  %v5232_v5 = vpop.f32.mrb[7].mxu1  ;;  %v228_v2 = vadd.f32 %v6502_v0, %v6452_v16 }
 0xea7   :  { %5998 = vtanh.f32 %v814_v3  ;;  %v4795_v8 = vmul.f32 -1.442695, %v814_v3 }
 0xea9   :  { %6000 = vpow2.f32 %v4795_v8  ;;  %v6640_v8 = vld [vmem:[%s7270_s9] ss:$0 sm:$0xff] }
 0xeb1   :  { %v5999_v6 = vpop.eup %5998 }
 0xeb2   :  { %824 = vrot.lane.b32.xlu0 %v5999_v6, %s6281_s5 }
 0xeb3   :  { %v6001_v7 = vpop.eup %6000 }
 0xeb4   :  { %v818_v9 = vadd.f32 1.0, %v6001_v7 }
 0xeb6   :  { %6002 = vrcp.f32 %v818_v9 }
 0xec0   :  { %v6003_v10 = vpop.eup %6002 }
 0xec1   :  { %v822_v12 = vmul.f32 %v6003_v10, %v730_v57  ;;  %v93_v57 = vld [vmem:[%s7269_s8 + $0x18] sm:$0xff] }
 0xec2   :  { %v6614_v58 = vpack.c.bf16 %v93_v57, %v92_v56 }
 0xf24   :  { %v825_v11 = vpop.permute.xlu0 %824 }
 0xf25   :  { %v827_v14 = vmul.f32 %v6003_v10, %v825_v11 }
 0xf27   :  { %829 = vrot.lane.b32.xlu1 %v827_v14, %s6282_s6 }
 0xf99   :  { %v830_v15 = vpop.permute.xlu1 %829 }
 0xf9a   :  { %v832_v62 = vadd.f32 %v830_v15, %v822_v12 }
 0xf9c   :  { %6004 = vtanh.f32 %v832_v62 }
 0xfa6   :  { %v6005_v20 = vpop.eup %6004 }
 0xfa7   :  { %835 = vrot.lane.b32.xlu0 %v6005_v20, %s6281_s5 }
0x1019   :  { %v836_v21 = vpop.permute.xlu0 %835 }
0x101a   :  { %v838_v22 = vmul.f32 %v6003_v10, %v836_v21 }
0x101c   :  { %840 = vrot.lane.b32.xlu1 %v838_v22, %s6282_s6 }
0x108e   :  { %v841_v26 = vpop.permute.xlu1 %840 }
0x108f   :  { %843 = vst.msk [vmem:[#allocation2 + $0x28] sm:$0xff] %vm101_vm0, %v841_v26  ;;  %5242 = vmatmul.mubr.msk.f32.vlgmr.msra.gmra.mrb[12].mxu0 %vm101_vm0, %v841_v26 }
0x1090   :  { %5739 = vmatpush3.bf16.msra.mxu0 %v5736_v19  ;;  %5263 = vmatprep.mubr.msk.f32.mxu0 %vm101_vm0, %v1048_v27 }
0x1091   :  { %5741 = vmatprep.subr.bf16.mxu0 %v5740_v25 }
0x1094   :  { %5743 = vmatpush3.bf16.msra.mxu0 %v5740_v25 }
0x1095   :  { %5756 = vmatprep.subr.bf16.mxu0 %v6278_v4 }
0x1096   :  { %v1053_v32 = vld [vmem:[#allocation2 + $0x28] sm:$0xff] }
0x1097   :  { %5264 = vmatmul.mubr.msk.f32.vlgmr.msra.gmra.mrb[14].mxu0 %vm101_vm0, %v1049_v28 }
0x1098   :  { %5266 = vmatprep.mubr.msk.f32.mxu0 %vm101_vm0, %v1050_v29  ;;  %5758 = vmatpush3.bf16.msra.mxu0 %v6604_v55 }
0x1099   :  { %5759 = vmatprep.subr.bf16.mxu0 %v6278_v4 }
0x109b   :  { %5267 = vmatmul.mubr.msk.f32.gmra.mrb[16].mxu0 %vm101_vm0, %v1051_v30 }
0x109c   :  { %5269 = vmatprep.mubr.msk.f32.mxu0 %vm101_vm0, %v1052_v31  ;;  %5761 = vmatpush3.bf16.msra.mxu0 %v6614_v58 }
0x109d   :  { %5768 = vmatprep.subr.bf16.mxu0 %v6278_v4 }
0x109f   :  { %5270 = vmatmul.mubr.msk.f32.gmra.mrb[18].mxu0 %vm101_vm0, %v1053_v32 }
0x1162   :  { %v912_v34 = vpop.f32.mrb[12].mxu0 }
0x1163   :  { %v916_v35 = vadd.f32 %v912_v34, %v223_v33  ;;  %v5243_v36 = vpop.f32.mrb[13].mxu0 }
0x1165   :  { %6006 = vtanh.f32 %v916_v35  ;;  %v4797_v44 = vmul.f32 -1.442695, %v916_v35 }
0x1167   :  { %6008 = vpow2.f32 %v4797_v44 }
0x116a   :  { %v6582_v37 = vpop.f32.mrb[14].mxu0 }
0x116b   :  { %v1152_v38 = vpop.f32.mrb[15].mxu0 }
0x116c   :  { %v1153_v7 = vadd.f32 %v6640_v8, %v1152_v38 }
0x116e   :  { %v6584_v39 = vpop.f32.mrb[16].mxu0 }
0x116f   :  { %v6007_v40 = vpop.eup %6006  ;;  %v6586_v41 = vpop.f32.mrb[17].mxu0 }
0x1170   :  { %926 = vrot.lane.b32.xlu0 %v6007_v40, %s6281_s5  ;;  %v1158_v40 = vadd.f32 %v6582_v37, %v6640_v8 }
0x1171   :  { %v6009_v1 = vpop.eup %6008 }
0x1172   :  { %v6589_v42 = vpop.f32.mrb[18].mxu0  ;;  %v920_v45 = vadd.f32 1.0, %v6009_v1 }
0x1173   :  { %v6591_v43 = vpop.f32.mrb[19].mxu0 }
0x1174   :  { %6010 = vrcp.f32 %v920_v45 }
0x117e   :  { %v6011_v46 = vpop.eup %6010 }
0x117f   :  { %v924_v49 = vmul.f32 %v6011_v46, %v832_v62 }
0x11e2   :  { %v927_v47 = vpop.permute.xlu0 %926 }
0x11e3   :  { %v929_v48 = vmul.f32 %v6011_v46, %v927_v47 }
0x11e5   :  { %931 = vrot.lane.b32.xlu1 %v929_v48, %s6282_s6 }
0x1257   :  { %v932_v50 = vpop.permute.xlu1 %931 }
0x1258   :  { %v6594_v51 = vadd.f32 %v932_v50, %v924_v49 }
0x125a   :  { %6012 = vtanh.f32 %v6594_v51 }
0x1264   :  { %v6013_v52 = vpop.eup %6012 }
0x1265   :  { %937 = vrot.lane.b32.xlu0 %v6013_v52, %s6281_s5 }
0x12d7   :  { %v938_v59 = vpop.permute.xlu0 %937 }
0x12d8   :  { %v940_v60 = vmul.f32 %v6011_v46, %v938_v59 }
0x12da   :  { %942 = vrot.lane.b32.xlu1 %v940_v60, %s6282_s6 }
0x134c   :  { %v943_v61 = vpop.permute.xlu1 %942 }
0x134d   :  { %945 = vst.msk [vmem:[#allocation2 + $0x30] sm:$0xff] %vm101_vm0, %v943_v61  ;;  %5253 = vmatmul.mubr.msk.f32.vlgmr.msra.gmra.mrb[8].mxu1 %vm101_vm0, %v943_v61 }
0x134e   :  { %5746 = vmatpush3.bf16.msra.mxu1 %v6604_v55  ;;  %5283 = vmatprep.mubr.msk.f32.mxu1 %vm6279_vm1, %v6280_v13 }
0x134f   :  { %5747 = vmatprep.subr.bf16.mxu1 %v6278_v4 }
0x1352   :  { %5749 = vmatpush3.bf16.msra.mxu1 %v6614_v58 }
0x1353   :  { %5750 = vmatprep.subr.bf16.mxu1 %v6278_v4 }
0x1354   :  { %v1054_v63 = vld [vmem:[#allocation2 + $0x30] sm:$0xff] }
0x1355   :  { %5284 = vmatmul.mubr.f32.vlgmr.msra.gmra.mrb[10].mxu1 %v6280_v13  ;;  %5272 = vmatprep.mubr.msk.f32.mxu0 %vm101_vm0, %v1054_v63 }
0x1356   :  { %5752 = vmatpush3.bf16.msra.mxu1 %v6604_v55  ;;  %5294 = vmatprep.mubr.msk.f32.mxu1 %vm6279_vm1, %v6280_v13 }
0x1357   :  { %5753 = vmatprep.subr.bf16.mxu1 %v6278_v4 }
0x135a   :  { %5755 = vmatpush3.bf16.msra.mxu1 %v6614_v58 }
0x135b   :  { %5762 = vmatprep.subr.bf16.mxu1 %v6278_v4 }
0x1420   :  { %v1014_v3 = vpop.f32.mrb[8].mxu1 }
0x1421   :  { %v1018_v5 = vadd.f32 %v1014_v3, %v228_v2  ;;  %v5254_v6 = vpop.f32.mrb[9].mxu1 }
0x1423   :  { %v4799_v23 = vmul.f32 -1.442695, %v1018_v5 }
0x1428   :  { %v1257_v9 = vpop.f32.mrb[10].mxu1 }
0x1429   :  { %v1261_v10 = vadd.f32 %v1257_v9, %v1153_v7  ;;  %v5285_v11 = vpop.f32.mrb[11].mxu1 }
0x142b   :  { %6014 = vtanh.f32 %v1261_v10  ;;  %v4809_v12 = vmul.f32 -1.442695, %v1261_v10 }
0x142d   :  { %6016 = vpow2.f32 %v4809_v12 }
0x1435   :  { %v6015_v14 = vpop.eup %6014 }
0x1436   :  { %1271 = vrot.lane.b32.xlu0 %v6015_v14, %s6281_s5 }
0x1437   :  { %v6017_v16 = vpop.eup %6016 }
0x1438   :  { %v1265_v0 = vadd.f32 1.0, %v6017_v16 }
0x143a   :  { %6018 = vrcp.f32 %v1265_v0 }
0x1444   :  { %v6019_v15 = vpop.eup %6018 }
0x1445   :  { %v1269_v18 = vmul.f32 0.0, %v6019_v15 }
0x14a8   :  { %v1272_v62 = vpop.permute.xlu0 %1271 }
0x14a9   :  { %v1274_v17 = vmul.f32 %v6019_v15, %v1272_v62 }
0x14ab   :  { %1276 = vrot.lane.b32.xlu1 %v1274_v17, %s6282_s6 }
0x151d   :  { %v1277_v19 = vpop.permute.xlu1 %1276 }
0x151e   :  { %v1279_v20 = vadd.f32 %v1277_v19, %v1269_v18 }
0x1520   :  { %6020 = vtanh.f32 %v1279_v20 }
0x1521   :  { %6022 = vtanh.f32 %v1018_v5  ;;  %v1163_v5 = vadd.f32 %v6640_v8, %v6586_v41 }
0x1522   :  { %6024 = vpow2.f32 %v4799_v23 }
0x152a   :  { %v6021_v21 = vpop.eup %6020 }
0x152b   :  { %1282 = vrot.lane.b32.xlu0 %v6021_v21, %s6281_s5  ;;  %v6023_v22 = vpop.eup %6022 }
0x152c   :  { %v6025_v24 = vpop.eup %6024 }
0x152d   :  { %v1022_v25 = vadd.f32 1.0, %v6025_v24 }
0x152f   :  { %1028 = vrot.lane.b32.xlu0 %v6023_v22, %s6281_s5  ;;  %6026 = vrcp.f32 %v1022_v25  ;;  %v1168_v22 = vadd.f32 %v6584_v39, %v6640_v8 }
0x1539   :  { %v6027_v28 = vpop.eup %6026 }
0x153a   :  { %v1026_v32 = vmul.f32 %v6027_v28, %v6594_v51 }
0x159d   :  { %v1283_v26 = vpop.permute.xlu0 %1282 }
0x159e   :  { %v1285_v27 = vmul.f32 %v6019_v15, %v1283_v26 }
0x15a0   :  { %1287 = vrot.lane.b32.xlu1 %v1285_v27, %s6282_s6 }
0x15a1   :  { %v1029_v29 = vpop.permute.xlu0 %1028 }
0x15a2   :  { %v1031_v30 = vmul.f32 %v6027_v28, %v1029_v29 }
0x15a4   :  { %1033 = vrot.lane.b32.xlu0 %v1031_v30, %s6282_s6 }
0x1612   :  { %v1288_v31 = vpop.permute.xlu1 %1287 }
0x1613   :  { %5295 = vmatmul.mubr.msk.f32.vlgmr.msra.gmra.mrb[12].mxu1 %vm101_vm0, %v1288_v31 }
0x1614   :  { %5764 = vmatpush3.bf16.msra.mxu1 %v6604_v55  ;;  %5316 = vmatprep.mubr.msk.f32.mxu1 %vm6279_vm1, %v6280_v13 }
0x1615   :  { %5765 = vmatprep.subr.bf16.mxu1 %v6278_v4 }
0x1616   :  { %v1034_v33 = vpop.permute.xlu0 %1033 }
0x1617   :  { %v1036_v34 = vadd.f32 %v1034_v33, %v1026_v32 }
0x1618   :  { %5767 = vmatpush3.bf16.msra.mxu1 %v6614_v58 }
0x1619   :  { %6028 = vtanh.f32 %v1036_v34  ;;  %5774 = vmatprep.subr.bf16.mxu1 %v6278_v4 }
0x1623   :  { %v6029_v35 = vpop.eup %6028 }
0x1624   :  { %1039 = vrot.lane.b32.xlu0 %v6029_v35, %s6281_s5 }
0x1696   :  { %v1040_v36 = vpop.permute.xlu0 %1039 }
0x1697   :  { %v1042_v38 = vmul.f32 %v6027_v28, %v1040_v36 }
0x1699   :  { %1044 = vrot.lane.b32.xlu0 %v1042_v38, %s6282_s6 }
0x16e6   :  { %v1357_v44 = vpop.f32.mrb[12].mxu1 }
0x16e7   :  { %v1361_v1 = vadd.f32 %v1357_v44, %v1158_v40  ;;  %v5296_v45 = vpop.f32.mrb[13].mxu1  ;;  %v1173_v44 = vadd.f32 %v6640_v8, %v6591_v43 }
0x16e9   :  { %6030 = vtanh.f32 %v1361_v1  ;;  %v4811_v49 = vmul.f32 -1.442695, %v1361_v1 }
0x16eb   :  { %6032 = vpow2.f32 %v4811_v49 }
0x16f3   :  { %v6031_v46 = vpop.eup %6030 }
0x16f4   :  { %1371 = vrot.lane.b32.xlu1 %v6031_v46, %s6281_s5 }
0x16f5   :  { %v6033_v50 = vpop.eup %6032 }
0x16f6   :  { %v1365_v37 = vadd.f32 1.0, %v6033_v50 }
0x16f8   :  { %6034 = vrcp.f32 %v1365_v37 }
0x1702   :  { %v6035_v51 = vpop.eup %6034 }
0x1703   :  { %v1369_v54 = vmul.f32 %v6035_v51, %v1279_v20 }
0x170b   :  { %v1045_v47 = vpop.permute.xlu0 %1044 }
0x170c   :  { %1047 = vst.msk [vmem:[#allocation2 + $0x38] sm:$0xff] %vm101_vm0, %v1045_v47 }
0x1713   :  { %v1055_v48 = vld [vmem:[#allocation2 + $0x38] sm:$0xff] }
0x1714   :  { %5273 = vmatmul.mubr.msk.f32.gmra.mrb[20].mxu0 %vm101_vm0, %v1055_v48 }
0x1715   :  { %5305 = vmatprep.mubr.msk.f32.mxu0 %vm6279_vm1, %v6280_v13 }
0x1766   :  { %v1372_v52 = vpop.permute.xlu1 %1371 }
0x1767   :  { %v1374_v53 = vmul.f32 %v6035_v51, %v1372_v52 }
0x1769   :  { %1376 = vrot.lane.b32.xlu1 %v1374_v53, %s6282_s6 }
0x17db   :  { %v1377_v56 = vpop.permute.xlu1 %1376 }
0x17dc   :  { %v1379_v57 = vadd.f32 %v1377_v56, %v1369_v54 }
0x17de   :  { %6036 = vtanh.f32 %v1379_v57 }
0x17e7   :  { %v6667_v59 = vpop.f32.mrb[20].mxu0 }
0x17e8   :  { %v6037_v60 = vpop.eup %6036  ;;  %v6669_v61 = vpop.f32.mrb[21].mxu0 }
0x17e9   :  { %1382 = vrot.lane.b32.xlu1 %v6037_v60, %s6281_s5 }
0x185b   :  { %v1383_v63 = vpop.permute.xlu1 %1382 }
0x185c   :  { %v1385_v2 = vmul.f32 %v6035_v51, %v1383_v63 }
0x185e   :  { %1387 = vrot.lane.b32.xlu1 %v1385_v2, %s6282_s6  ;;  %v1178_v2 = vadd.f32 %v6589_v42, %v6640_v8 }
0x18d0   :  { %v1388_v3 = vpop.permute.xlu1 %1387 }
0x18d1   :  { %5306 = vmatmul.mubr.msk.f32.vlgmr.msra.gmra.mrb[22].mxu0 %vm101_vm0, %v1388_v3 }
0x18d2   :  { %5770 = vmatpush3.bf16.msra.mxu0 %v6604_v55  ;;  %5327 = vmatprep.mubr.msk.f32.mxu0 %vm6279_vm1, %v6280_v13 }
0x18d3   :  { %5771 = vmatprep.subr.bf16.mxu0 %v6278_v4 }
0x18d6   :  { %5773 = vmatpush3.bf16.msra.mxu0 %v6614_v58 }
0x18d7   :  { %5780 = vmatprep.subr.bf16.mxu0 %v6278_v4 }
0x19a4   :  { %v1457_v6 = vpop.f32.mrb[22].mxu0 }
0x19a5   :  { %v1461_v7 = vadd.f32 %v1457_v6, %v1163_v5  ;;  %v5307_v9 = vpop.f32.mrb[23].mxu0 }
0x19a7   :  { %6038 = vtanh.f32 %v1461_v7  ;;  %v4813_v11 = vmul.f32 -1.442695, %v1461_v7 }
0x19a9   :  { %6040 = vpow2.f32 %v4813_v11 }
0x19b1   :  { %v6039_v10 = vpop.eup %6038 }
0x19b2   :  { %1471 = vrot.lane.b32.xlu0 %v6039_v10, %s6281_s5 }
0x19b3   :  { %v6041_v14 = vpop.eup %6040 }
0x19b4   :  { %v1465_v12 = vadd.f32 1.0, %v6041_v14 }
0x19b6   :  { %6042 = vrcp.f32 %v1465_v12 }
0x19c0   :  { %v6043_v16 = vpop.eup %6042 }
0x19c1   :  { %v1469_v62 = vmul.f32 %v6043_v16, %v1379_v57 }
0x1a24   :  { %v1472_v0 = vpop.permute.xlu0 %1471 }
0x1a25   :  { %v1474_v15 = vmul.f32 %v6043_v16, %v1472_v0 }
0x1a27   :  { %1476 = vrot.lane.b32.xlu1 %v1474_v15, %s6282_s6 }
0x1a99   :  { %v1477_v17 = vpop.permute.xlu1 %1476 }
0x1a9a   :  { %v1479_v41 = vadd.f32 %v1477_v17, %v1469_v62 }
0x1a9c   :  { %6044 = vtanh.f32 %v1479_v41 }
0x1aa6   :  { %v6045_v18 = vpop.eup %6044 }
0x1aa7   :  { %1482 = vrot.lane.b32.xlu0 %v6045_v18, %s6281_s5 }
0x1b19   :  { %v1483_v19 = vpop.permute.xlu0 %1482 }
0x1b1a   :  { %v1485_v20 = vmul.f32 %v6043_v16, %v1483_v19 }
0x1b1c   :  { %1487 = vrot.lane.b32.xlu1 %v1485_v20, %s6282_s6 }
0x1b8e   :  { %v1488_v21 = vpop.permute.xlu1 %1487 }
0x1b8f   :  { %5317 = vmatmul.mubr.msk.f32.vlgmr.msra.gmra.mrb[14].mxu1 %vm101_vm0, %v1488_v21 }
0x1b90   :  { %5776 = vmatpush3.bf16.msra.mxu1 %v6604_v55  ;;  %5338 = vmatprep.mubr.msk.f32.mxu1 %vm6279_vm1, %v6280_v13 }
0x1b91   :  { %5777 = vmatprep.subr.bf16.mxu1 %v6278_v4 }
0x1b94   :  { %5779 = vmatpush3.bf16.msra.mxu1 %v6614_v58 }
0x1b95   :  { %5786 = vmatprep.subr.bf16.mxu1 %v6278_v4 }
0x1c62   :  { %v1557_v23 = vpop.f32.mrb[14].mxu1 }
0x1c63   :  { %v1561_v24 = vadd.f32 %v1557_v23, %v1168_v22  ;;  %v5318_v25 = vpop.f32.mrb[15].mxu1 }
0x1c65   :  { %6046 = vtanh.f32 %v1561_v24  ;;  %v4815_v27 = vmul.f32 -1.442695, %v1561_v24 }
0x1c67   :  { %6048 = vpow2.f32 %v4815_v27 }
0x1c6f   :  { %v6047_v26 = vpop.eup %6046 }
0x1c70   :  { %1571 = vrot.lane.b32.xlu0 %v6047_v26, %s6281_s5 }
0x1c71   :  { %v6049_v28 = vpop.eup %6048 }
0x1c72   :  { %v1565_v29 = vadd.f32 1.0, %v6049_v28 }
0x1c74   :  { %6050 = vrcp.f32 %v1565_v29 }
0x1c7e   :  { %v6051_v30 = vpop.eup %6050 }
0x1c7f   :  { %v1569_v33 = vmul.f32 %v6051_v30, %v1479_v41  ;;  %v1183_v41 = vadd.f32 %v6640_v8, %v6669_v61 }
0x1ce2   :  { %v1572_v31 = vpop.permute.xlu0 %1571 }
0x1ce3   :  { %v1574_v32 = vmul.f32 %v6051_v30, %v1572_v31  ;;  %v1997_v31 = vld [vmem:[%s7271_s10 + $0x8] sm:$0xff] }
0x1ce5   :  { %1576 = vrot.lane.b32.xlu1 %v1574_v32, %s6282_s6  ;;  %v1998_v32 = vld [vmem:[%s7271_s10 + $0x10] sm:$0xff] }
0x1d57   :  { %v1577_v34 = vpop.permute.xlu1 %1576 }
0x1d58   :  { %v1579_v39 = vadd.f32 %v1577_v34, %v1569_v33  ;;  %v1999_v34 = vld [vmem:[%s7271_s10 + $0x18] sm:$0xff] }
0x1d5a   :  { %6052 = vtanh.f32 %v1579_v39 }
0x1d64   :  { %v6053_v35 = vpop.eup %6052 }
0x1d65   :  { %1582 = vrot.lane.b32.xlu0 %v6053_v35, %s6281_s5 }
0x1dd7   :  { %v1583_v36 = vpop.permute.xlu0 %1582 }
0x1dd8   :  { %v1585_v38 = vmul.f32 %v6051_v30, %v1583_v36  ;;  %v1996_v30 = vld [vmem:[%s7271_s10] sm:$0xff] }
0x1dd9   :  { %v5792_v33 = vpack.c.bf16 %v1997_v31, %v1996_v30  ;;  %v2000_v36 = vld [vmem:[%s7272_s11] sm:$0xff] }
0x1dda   :  { %1587 = vrot.lane.b32.xlu1 %v1585_v38, %s6282_s6  ;;  %v2001_v38 = vld [vmem:[%s7272_s11 + $0x8] sm:$0xff] }
0x1e4c   :  { %v1588_v40 = vpop.permute.xlu1 %1587 }
0x1e4d   :  { %5328 = vmatmul.mubr.msk.f32.vlgmr.msra.gmra.mrb[24].mxu0 %vm101_vm0, %v1588_v40  ;;  %v1986_v40 = vld [vmem:[%s7296_s4] sm:$0xff] }
0x1e4e   :  { %5782 = vmatpush3.bf16.msra.mxu0 %v6604_v55  ;;  %5349 = vmatprep.mubr.msk.f32.mxu0 %vm6279_vm1, %v6280_v13 }
0x1e4f   :  { %5783 = vmatprep.subr.bf16.mxu0 %v6278_v4 }
0x1e52   :  { %5785 = vmatpush3.bf16.msra.mxu0 %v6614_v58 }
0x1e53   :  { %5793 = vmatprep.subr.bf16.mxu0 %v5792_v33 }
0x1f20   :  { %v1657_v1 = vpop.f32.mrb[24].mxu0 }
0x1f21   :  { %v1661_v45 = vadd.f32 %v1657_v1, %v1173_v44  ;;  %v5329_v46 = vpop.f32.mrb[25].mxu0  ;;  %v1987_v44 = vld [vmem:[%s7296_s4 + $0x8] sm:$0xff]  ;;  %v6758_v1 = vpack.c.bf16 %v2001_v38, %v2000_v36 }
0x1f22   :  { %v2003_v46 = vld [vmem:[%s7272_s11 + $0x18] sm:$0xff] }
0x1f23   :  { %6054 = vtanh.f32 %v1661_v45  ;;  %v4817_v48 = vmul.f32 -1.442695, %v1661_v45  ;;  %v2002_v45 = vld [vmem:[%s7272_s11 + $0x10] sm:$0xff] }
0x1f25   :  { %6056 = vpow2.f32 %v4817_v48 }
0x1f2d   :  { %v6055_v47 = vpop.eup %6054 }
0x1f2e   :  { %1671 = vrot.lane.b32.xlu0 %v6055_v47, %s6281_s5  ;;  %v6770_v47 = vpack.c.bf16 %v2003_v46, %v2002_v45 }
0x1f2f   :  { %v6057_v49 = vpop.eup %6056 }
0x1f30   :  { %v1665_v50 = vadd.f32 1.0, %v6057_v49 }
0x1f32   :  { %6058 = vrcp.f32 %v1665_v50 }
0x1f3c   :  { %v6059_v37 = vpop.eup %6058 }
0x1f3d   :  { %v1669_v53 = vmul.f32 %v6059_v37, %v1579_v39  ;;  %v5796_v39 = vpack.c.bf16 %v1999_v34, %v1998_v32 }
0x1fa0   :  { %v1672_v51 = vpop.permute.xlu0 %1671 }
0x1fa1   :  { %v1674_v52 = vmul.f32 %v6059_v37, %v1672_v51 }
0x1fa3   :  { %1676 = vrot.lane.b32.xlu1 %v1674_v52, %s6282_s6  ;;  %v1188_v52 = vadd.f32 %v6667_v59, %v6640_v8 }
0x2015   :  { %v1677_v54 = vpop.permute.xlu1 %1676 }
0x2016   :  { %v1679_v43 = vadd.f32 %v1677_v54, %v1669_v53 }
0x2018   :  { %6060 = vtanh.f32 %v1679_v43 }
0x2022   :  { %v6061_v56 = vpop.eup %6060 }
0x2023   :  { %1682 = vrot.lane.b32.xlu0 %v6061_v56, %s6281_s5  ;;  %v6796_v56 = vld [vmem:[%s7273_s12] ss:$0 sm:$0xff] }
0x2095   :  { %v1683_v57 = vpop.permute.xlu0 %1682 }
0x2096   :  { %v1685_v60 = vmul.f32 %v6059_v37, %v1683_v57 }
0x2098   :  { %1687 = vrot.lane.b32.xlu1 %v1685_v60, %s6282_s6 }
0x210a   :  { %v1688_v63 = vpop.permute.xlu1 %1687 }
0x210b   :  { %5339 = vmatmul.mubr.msk.f32.vlgmr.msra.gmra.mrb[16].mxu1 %vm101_vm0, %v1688_v63 }
0x210c   :  { %5788 = vmatpush3.bf16.msra.mxu1 %v6604_v55  ;;  %5360 = vmatprep.mubr.msk.f32.mxu1 %vm6279_vm1, %v6280_v13 }
0x210d   :  { %5789 = vmatprep.subr.bf16.mxu1 %v6278_v4 }
0x2110   :  { %5791 = vmatpush3.bf16.msra.mxu1 %v6614_v58 }
0x2111   :  { %5800 = vmatprep.subr.bf16.mxu1 %v6278_v4 }
0x21de   :  { %v1757_v3 = vpop.f32.mrb[16].mxu1 }
0x21df   :  { %v1761_v5 = vadd.f32 %v1757_v3, %v1178_v2  ;;  %v5340_v6 = vpop.f32.mrb[17].mxu1 }
0x21e1   :  { %6062 = vtanh.f32 %v1761_v5  ;;  %v4819_v55 = vmul.f32 -1.442695, %v1761_v5 }
0x21e3   :  { %6064 = vpow2.f32 %v4819_v55 }
0x21eb   :  { %v6063_v7 = vpop.eup %6062 }
0x21ec   :  { %1771 = vrot.lane.b32.xlu0 %v6063_v7, %s6281_s5 }
0x21ed   :  { %v6065_v9 = vpop.eup %6064 }
0x21ee   :  { %v1765_v10 = vadd.f32 1.0, %v6065_v9 }
0x21f0   :  { %6066 = vrcp.f32 %v1765_v10 }
0x21fa   :  { %v6067_v11 = vpop.eup %6066 }
0x21fb   :  { %v1769_v12 = vmul.f32 %v6067_v11, %v1679_v43 }
0x225e   :  { %v1772_v14 = vpop.permute.xlu0 %1771 }
0x225f   :  { %v1774_v58 = vmul.f32 %v6067_v11, %v1772_v14 }
0x2261   :  { %1776 = vrot.lane.b32.xlu1 %v1774_v58, %s6282_s6 }
0x22d3   :  { %v1777_v16 = vpop.permute.xlu1 %1776 }
0x22d4   :  { %v1779_v42 = vadd.f32 %v1777_v16, %v1769_v12 }
0x22d6   :  { %6068 = vtanh.f32 %v1779_v42 }
0x22e0   :  { %v6069_v0 = vpop.eup %6068 }
0x22e1   :  { %1782 = vrot.lane.b32.xlu0 %v6069_v0, %s6281_s5 }
0x2353   :  { %v1783_v15 = vpop.permute.xlu0 %1782 }
0x2354   :  { %v1785_v62 = vmul.f32 %v6067_v11, %v1783_v15 }
0x2356   :  { %1787 = vrot.lane.b32.xlu1 %v1785_v62, %s6282_s6 }
0x23c8   :  { %v1788_v17 = vpop.permute.xlu1 %1787 }
0x23c9   :  { %5350 = vmatmul.mubr.msk.f32.vlgmr.msra.gmra.mrb[26].mxu0 %vm101_vm0, %v1788_v17 }
0x23ca   :  { %5795 = vmatpush3.bf16.msra.mxu0 %v5792_v33  ;;  %5371 = vmatprep.mubr.msk.f32.mxu0 %vm101_vm0, %v1986_v40 }
0x23cb   :  { %5797 = vmatprep.subr.bf16.mxu0 %v5796_v39 }
0x23ce   :  { %5799 = vmatpush3.bf16.msra.mxu0 %v5796_v39 }
0x23cf   :  { %5818 = vmatprep.subr.bf16.mxu0 %v6278_v4 }
0x23d1   :  { %5372 = vmatmul.mubr.msk.f32.vlgmr.msra.gmra.mrb[28].mxu0 %vm101_vm0, %v1987_v44 }
0x23d2   :  { %5820 = vmatpush3.bf16.msra.mxu0 %v6758_v1 }
0x23d3   :  { %5821 = vmatprep.subr.bf16.mxu0 %v6278_v4 }
0x23d6   :  { %5823 = vmatpush3.bf16.msra.mxu0 %v6770_v47 }
0x23d7   :  { %5830 = vmatprep.subr.bf16.mxu0 %v6278_v4 }
0x249c   :  { %v1857_v18 = vpop.f32.mrb[26].mxu0 }
0x249d   :  { %v1861_v19 = vadd.f32 %v1857_v18, %v1183_v41  ;;  %v5351_v20 = vpop.f32.mrb[27].mxu0 }
0x249f   :  { %6070 = vtanh.f32 %v1861_v19  ;;  %v4821_v22 = vmul.f32 -1.442695, %v1861_v19 }
0x24a1   :  { %6072 = vpow2.f32 %v4821_v22 }
0x24a4   :  { %v5373_v37 = vpop.f32.mrb[28].mxu0 }
0x24a5   :  { %v2116_v51 = vpop.f32.mrb[29].mxu0 }
0x24a6   :  { %v2117_v57 = vadd.f32 %v6796_v56, %v2116_v51 }
0x24a9   :  { %v6071_v21 = vpop.eup %6070 }
0x24aa   :  { %1871 = vrot.lane.b32.xlu0 %v6071_v21, %s6281_s5 }
0x24ab   :  { %v6073_v23 = vpop.eup %6072 }
0x24ac   :  { %v1865_v24 = vadd.f32 1.0, %v6073_v23 }
0x24ae   :  { %6074 = vrcp.f32 %v1865_v24 }
0x24b8   :  { %v6075_v25 = vpop.eup %6074 }
0x24b9   :  { %v1869_v28 = vmul.f32 %v6075_v25, %v1779_v42  ;;  %v2122_v42 = vadd.f32 %v5373_v37, %v6796_v56 }
0x251c   :  { %v1872_v26 = vpop.permute.xlu0 %1871 }
0x251d   :  { %v1874_v27 = vmul.f32 %v6075_v25, %v1872_v26  ;;  %v1988_v26 = vld [vmem:[%s7296_s4 + $0x10] sm:$0xff] }
0x251e   :  { %5374 = vmatprep.mubr.msk.f32.mxu0 %vm101_vm0, %v1988_v26 }
0x251f   :  { %1876 = vrot.lane.b32.xlu1 %v1874_v27, %s6282_s6  ;;  %v1989_v27 = vld [vmem:[%s7296_s4 + $0x18] sm:$0xff] }
0x2520   :  { %5375 = vmatmul.mubr.msk.f32.gmra.mrb[30].mxu0 %vm101_vm0, %v1989_v27 }
0x2591   :  { %v1877_v29 = vpop.permute.xlu1 %1876 }
0x2592   :  { %v6729_v61 = vadd.f32 %v1877_v29, %v1869_v28 }
0x2594   :  { %6076 = vtanh.f32 %v6729_v61 }
0x259e   :  { %v6077_v35 = vpop.eup %6076 }
0x259f   :  { %1882 = vrot.lane.b32.xlu0 %v6077_v35, %s6281_s5 }
0x25f3   :  { %v5376_v31 = vpop.f32.mrb[30].mxu0 }
0x25f4   :  { %v2126_v32 = vpop.f32.mrb[31].mxu0 }
0x25f5   :  { %v2127_v34 = vadd.f32 %v6796_v56, %v2126_v32 }
0x2611   :  { %v1883_v48 = vpop.permute.xlu0 %1882 }
0x2612   :  { %v1885_v49 = vmul.f32 %v6075_v25, %v1883_v48 }
0x2614   :  { %1887 = vrot.lane.b32.xlu1 %v1885_v49, %s6282_s6 }
0x2686   :  { %v1888_v50 = vpop.permute.xlu1 %1887 }
0x2687   :  { %5361 = vmatmul.mubr.msk.f32.vlgmr.msra.gmra.mrb[18].mxu1 %vm101_vm0, %v1888_v50 }
0x2688   :  { %5802 = vmatpush3.bf16.msra.mxu1 %v6758_v1  ;;  %5394 = vmatprep.mubr.msk.f32.mxu1 %vm6279_vm1, %v6280_v13 }
0x2689   :  { %5803 = vmatprep.subr.bf16.mxu1 %v6278_v4 }
0x268c   :  { %5805 = vmatpush3.bf16.msra.mxu1 %v6770_v47 }
0x268d   :  { %5806 = vmatprep.subr.bf16.mxu1 %v6278_v4 }
0x268f   :  { %5395 = vmatmul.mubr.f32.vlgmr.msra.gmra.mrb[20].mxu1 %v6280_v13 }
0x2690   :  { %5808 = vmatpush3.bf16.msra.mxu1 %v6758_v1  ;;  %5405 = vmatprep.mubr.msk.f32.mxu1 %vm6279_vm1, %v6280_v13 }
0x2691   :  { %5809 = vmatprep.subr.bf16.mxu1 %v6278_v4 }
0x2694   :  { %5811 = vmatpush3.bf16.msra.mxu1 %v6770_v47 }
0x2695   :  { %5812 = vmatprep.subr.bf16.mxu1 %v6278_v4 }
0x275a   :  { %v1957_v53 = vpop.f32.mrb[18].mxu1 }
0x275b   :  { %v6791_v54 = vadd.f32 %v1957_v53, %v1188_v52  ;;  %v5362_v43 = vpop.f32.mrb[19].mxu1  ;;  %v1990_v52 = vld [vmem:[%s7296_s4 + $0x20] sm:$0xff]  ;;  %v1991_v53 = vld [vmem:[%s7296_s4 + $0x28] sm:$0xff] }
0x275c   :  { %v1992_v43 = vld [vmem:[%s7296_s4 + $0x30] sm:$0xff]  ;;  %5377 = vmatprep.mubr.msk.f32.mxu0 %vm101_vm0, %v1990_v52 }
0x275d   :  { %5378 = vmatmul.mubr.msk.f32.gmra.mrb[32].mxu0 %vm101_vm0, %v1991_v53 }
0x275e   :  { %5380 = vmatprep.mubr.msk.f32.mxu0 %vm101_vm0, %v1992_v43 }
0x2762   :  { %v2231_v60 = vpop.f32.mrb[20].mxu1 }
0x2763   :  { %v2235_v63 = vadd.f32 %v2231_v60, %v2117_v57  ;;  %v5396_v2 = vpop.f32.mrb[21].mxu1  ;;  %v1993_v57 = vld [vmem:[%s7296_s4 + $0x38] sm:$0xff]  ;;  %v1994_v60 = vld [vmem:[%s7296_s4 + $0x40] sm:$0xff] }
0x2764   :  { %5381 = vmatmul.mubr.msk.f32.gmra.mrb[34].mxu0 %vm101_vm0, %v1993_v57 }
0x2765   :  { %6078 = vtanh.f32 %v2235_v63  ;;  %v4835_v5 = vmul.f32 -1.442695, %v2235_v63  ;;  %5383 = vmatprep.mubr.msk.f32.mxu0 %vm101_vm0, %v1994_v60  ;;  %v1995_v63 = vld [vmem:[%s7296_s4 + $0x48] sm:$0xff]  ;;  %s7298_s4 = sld [smem:[#allocation10_spill]] }
0x2767   :  { %6080 = vpow2.f32 %v4835_v5 }
0x2768   :  { %5384 = vmatmul.mubr.msk.f32.gmra.mrb[36].mxu0 %vm101_vm0, %v1995_v63 }
0x2769   :  { %5427 = vmatprep.mubr.msk.f32.mxu0 %vm6279_vm1, %v6280_v13 }
0x276f   :  { %v6079_v3 = vpop.eup %6078 }
0x2770   :  { %2245 = vrot.lane.b32.xlu0 %v6079_v3, %s6281_s5 }
0x2771   :  { %v6081_v8 = vpop.eup %6080 }
0x2772   :  { %v2239_v59 = vadd.f32 1.0, %v6081_v8 }
0x2774   :  { %6082 = vrcp.f32 %v2239_v59 }
0x277e   :  { %v6083_v6 = vpop.eup %6082 }
0x277f   :  { %v2243_v9 = vmul.f32 0.0, %v6083_v6 }
0x27e2   :  { %v2246_v7 = vpop.permute.xlu0 %2245 }
0x27e3   :  { %v2248_v55 = vmul.f32 %v6083_v6, %v2246_v7 }
0x27e5   :  { %2250 = vrot.lane.b32.xlu1 %v2248_v55, %s6282_s6 }
0x2830   :  { %v6863_v8 = vpop.f32.mrb[32].mxu0 }
0x2831   :  { %v2136_v59 = vpop.f32.mrb[33].mxu0 }
0x2857   :  { %v2251_v10 = vpop.permute.xlu1 %2250 }
0x2858   :  { %v2253_v11 = vadd.f32 %v2251_v10, %v2243_v9 }
0x285a   :  { %6084 = vtanh.f32 %v2253_v11 }
0x2864   :  { %v6085_v14 = vpop.eup %6084 }
0x2865   :  { %2256 = vrot.lane.b32.xlu0 %v6085_v14, %s6281_s5 }
0x28d7   :  { %v2257_v58 = vpop.permute.xlu0 %2256 }
0x28d8   :  { %v2259_v12 = vmul.f32 %v6083_v6, %v2257_v58  ;;  %v6865_v6 = vpop.f32.mrb[34].mxu0 }
0x28d9   :  { %v6867_v7 = vpop.f32.mrb[35].mxu0 }
0x28da   :  { %2261 = vrot.lane.b32.xlu1 %v2259_v12, %s6282_s6  ;;  %v6869_v55 = vpop.f32.mrb[36].mxu0 }
0x28db   :  { %v6871_v9 = vpop.f32.mrb[37].mxu0 }
0x294c   :  { %v2262_v16 = vpop.permute.xlu1 %2261 }
0x294d   :  { %2264 = vst.msk [vmem:[#allocation3] sm:$0xff] %vm101_vm0, %v2262_v16  ;;  %5406 = vmatmul.mubr.msk.f32.vlgmr.msra.gmra.mrb[22].mxu1 %vm101_vm0, %v2262_v16 }
0x294e   :  { %5814 = vmatpush3.bf16.msra.mxu1 %v6758_v1  ;;  %5416 = vmatprep.mubr.msk.f32.mxu1 %vm6279_vm1, %v6280_v13 }
0x294f   :  { %5815 = vmatprep.subr.bf16.mxu1 %v6278_v4 }
0x2952   :  { %5817 = vmatpush3.bf16.msra.mxu1 %v6770_v47 }
0x2953   :  { %5824 = vmatprep.subr.bf16.mxu1 %v6278_v4 }
0x2a20   :  { %v2333_v0 = vpop.f32.mrb[22].mxu1 }
0x2a21   :  { %v2337_v15 = vadd.f32 %v2333_v0, %v2122_v42  ;;  %v5407_v62 = vpop.f32.mrb[23].mxu1 }
0x2a23   :  { %6086 = vtanh.f32 %v2337_v15  ;;  %v4837_v41 = vmul.f32 -1.442695, %v2337_v15 }
0x2a25   :  { %6088 = vpow2.f32 %v4837_v41 }
0x2a2d   :  { %v6087_v17 = vpop.eup %6086 }
0x2a2e   :  { %2347 = vrot.lane.b32.xlu0 %v6087_v17, %s6281_s5 }
0x2a2f   :  { %v6089_v18 = vpop.eup %6088 }
0x2a30   :  { %v2341_v19 = vadd.f32 1.0, %v6089_v18 }
0x2a32   :  { %6090 = vrcp.f32 %v2341_v19 }
0x2a3c   :  { %v6091_v20 = vpop.eup %6090 }
0x2a3d   :  { %v2345_v23 = vmul.f32 %v6091_v20, %v2253_v11  ;;  %v2132_v11 = vadd.f32 %v5376_v31, %v6796_v56 }
0x2aa0   :  { %v2348_v21 = vpop.permute.xlu0 %2347 }
0x2aa1   :  { %v2350_v22 = vmul.f32 %v6091_v20, %v2348_v21 }
0x2aa3   :  { %2352 = vrot.lane.b32.xlu1 %v2350_v22, %s6282_s6 }
0x2b15   :  { %v2353_v24 = vpop.permute.xlu1 %2352 }
0x2b16   :  { %v2355_v25 = vadd.f32 %v2353_v24, %v2345_v23 }
0x2b18   :  { %6092 = vtanh.f32 %v2355_v25 }
0x2b22   :  { %v6093_v28 = vpop.eup %6092 }
0x2b23   :  { %2358 = vrot.lane.b32.xlu0 %v6093_v28, %s6281_s5 }
0x2b95   :  { %v2359_v29 = vpop.permute.xlu0 %2358 }
0x2b96   :  { %v2361_v30 = vmul.f32 %v6091_v20, %v2359_v29 }
0x2b98   :  { %2363 = vrot.lane.b32.xlu1 %v2361_v30, %s6282_s6 }
0x2c0a   :  { %v2364_v33 = vpop.permute.xlu1 %2363 }
0x2c0b   :  { %2366 = vst.msk [vmem:[#allocation3 + $0x8] sm:$0xff] %vm101_vm0, %v2364_v33  ;;  %5417 = vmatmul.mubr.msk.f32.vlgmr.msra.gmra.mrb[24].mxu1 %vm101_vm0, %v2364_v33 }
0x2c0c   :  { %5826 = vmatpush3.bf16.msra.mxu1 %v6758_v1  ;;  %5438 = vmatprep.mubr.msk.f32.mxu1 %vm6279_vm1, %v6280_v13 }
0x2c0d   :  { %5827 = vmatprep.subr.bf16.mxu1 %v6278_v4 }
0x2c10   :  { %5829 = vmatpush3.bf16.msra.mxu1 %v6770_v47 }
0x2c11   :  { %5836 = vmatprep.subr.bf16.mxu1 %v6278_v4 }
0x2cde   :  { %v2435_v39 = vpop.f32.mrb[24].mxu1 }
0x2cdf   :  { %v2439_v35 = vadd.f32 %v2435_v39, %v2127_v34  ;;  %v5418_v36 = vpop.f32.mrb[25].mxu1 }
0x2ce1   :  { %6094 = vtanh.f32 %v2439_v35  ;;  %v4839_v40 = vmul.f32 -1.442695, %v2439_v35 }
0x2ce3   :  { %6096 = vpow2.f32 %v4839_v40 }
0x2ceb   :  { %v6095_v38 = vpop.eup %6094 }
0x2cec   :  { %2449 = vrot.lane.b32.xlu0 %v6095_v38, %s6281_s5 }
0x2ced   :  { %v6097_v44 = vpop.eup %6096 }
0x2cee   :  { %v2443_v45 = vadd.f32 1.0, %v6097_v44 }
0x2cf0   :  { %6098 = vrcp.f32 %v2443_v45 }
0x2cfa   :  { %v6099_v46 = vpop.eup %6098 }
0x2cfb   :  { %v2447_v50 = vmul.f32 %v6099_v46, %v2355_v25  ;;  %v2137_v25 = vadd.f32 %v6796_v56, %v2136_v59 }
0x2d5e   :  { %v2450_v48 = vpop.permute.xlu0 %2449 }
0x2d5f   :  { %v2452_v49 = vmul.f32 %v6099_v46, %v2450_v48  ;;  %v2142_v48 = vadd.f32 %v6863_v8, %v6796_v56 }
0x2d61   :  { %2454 = vrot.lane.b32.xlu1 %v2452_v49, %s6282_s6 }
0x2dd3   :  { %v2455_v37 = vpop.permute.xlu1 %2454 }
0x2dd4   :  { %v2457_v51 = vadd.f32 %v2455_v37, %v2447_v50 }
0x2dd6   :  { %6100 = vtanh.f32 %v2457_v51 }
0x2de0   :  { %v6101_v2 = vpop.eup %6100 }
0x2de1   :  { %2460 = vrot.lane.b32.xlu0 %v6101_v2, %s6281_s5 }
0x2e53   :  { %v2461_v3 = vpop.permute.xlu0 %2460 }
0x2e54   :  { %v2463_v5 = vmul.f32 %v6099_v46, %v2461_v3 }
0x2e56   :  { %2465 = vrot.lane.b32.xlu1 %v2463_v5, %s6282_s6 }
0x2ec8   :  { %v2466_v10 = vpop.permute.xlu1 %2465 }
0x2ec9   :  { %2468 = vst.msk [vmem:[#allocation3 + $0x10] sm:$0xff] %vm101_vm0, %v2466_v10  ;;  %5428 = vmatmul.mubr.msk.f32.vlgmr.msra.gmra.mrb[38].mxu0 %vm101_vm0, %v2466_v10 }
0x2eca   :  { %5832 = vmatpush3.bf16.msra.mxu0 %v6758_v1  ;;  %5449 = vmatprep.mubr.msk.f32.mxu0 %vm6279_vm1, %v6280_v13 }
0x2ecb   :  { %5833 = vmatprep.subr.bf16.mxu0 %v6278_v4 }
0x2ece   :  { %5835 = vmatpush3.bf16.msra.mxu0 %v6770_v47 }
0x2ecf   :  { %5842 = vmatprep.subr.bf16.mxu0 %v6278_v4 }
0x2f9c   :  { %v2537_v14 = vpop.f32.mrb[38].mxu0 }
0x2f9d   :  { %v2541_v58 = vadd.f32 %v2537_v14, %v2132_v11  ;;  %v5429_v12 = vpop.f32.mrb[39].mxu0  ;;  %v2147_v14 = vadd.f32 %v6796_v56, %v6867_v7 }
0x2f9f   :  { %6102 = vtanh.f32 %v2541_v58  ;;  %v4841_v42 = vmul.f32 -1.442695, %v2541_v58 }
0x2fa1   :  { %6104 = vpow2.f32 %v4841_v42 }
0x2fa9   :  { %v6103_v16 = vpop.eup %6102 }
0x2faa   :  { %2551 = vrot.lane.b32.xlu0 %v6103_v16, %s6281_s5 }
0x2fab   :  { %v6105_v0 = vpop.eup %6104 }
0x2fac   :  { %v2545_v15 = vadd.f32 1.0, %v6105_v0 }
0x2fae   :  { %6106 = vrcp.f32 %v2545_v15 }
0x2fb8   :  { %v6107_v62 = vpop.eup %6106 }
0x2fb9   :  { %v2549_v18 = vmul.f32 %v6107_v62, %v2457_v51 }
0x301c   :  { %v2552_v17 = vpop.permute.xlu0 %2551 }
0x301d   :  { %v2554_v41 = vmul.f32 %v6107_v62, %v2552_v17 }
0x301f   :  { %2556 = vrot.lane.b32.xlu1 %v2554_v41, %s6282_s6 }
0x3091   :  { %v2557_v19 = vpop.permute.xlu1 %2556 }
0x3092   :  { %v2559_v20 = vadd.f32 %v2557_v19, %v2549_v18 }
0x3094   :  { %6108 = vtanh.f32 %v2559_v20 }
0x309e   :  { %v6109_v21 = vpop.eup %6108 }
0x309f   :  { %2562 = vrot.lane.b32.xlu0 %v6109_v21, %s6281_s5 }
0x3111   :  { %v2563_v22 = vpop.permute.xlu0 %2562 }
0x3112   :  { %v2565_v23 = vmul.f32 %v6107_v62, %v2563_v22 }
0x3114   :  { %2567 = vrot.lane.b32.xlu1 %v2565_v23, %s6282_s6 }
0x3186   :  { %v2568_v24 = vpop.permute.xlu1 %2567 }
0x3187   :  { %2570 = vst.msk [vmem:[#allocation3 + $0x18] sm:$0xff] %vm101_vm0, %v2568_v24  ;;  %5439 = vmatmul.mubr.msk.f32.vlgmr.msra.gmra.mrb[26].mxu1 %vm101_vm0, %v2568_v24 }
0x3188   :  { %5838 = vmatpush3.bf16.msra.mxu1 %v6758_v1  ;;  %5460 = vmatprep.mubr.msk.f32.mxu1 %vm6279_vm1, %v6280_v13 }
0x3189   :  { %5839 = vmatprep.subr.bf16.mxu1 %v6278_v4 }
0x318c   :  { %5841 = vmatpush3.bf16.msra.mxu1 %v6770_v47 }
0x318d   :  { %5848 = vmatprep.subr.bf16.mxu1 %v6278_v4 }
0x325a   :  { %v2639_v26 = vpop.f32.mrb[26].mxu1 }
0x325b   :  { %v2643_v27 = vadd.f32 %v2639_v26, %v2137_v25  ;;  %v5440_v28 = vpop.f32.mrb[27].mxu1  ;;  %v2152_v25 = vadd.f32 %v6865_v6, %v6796_v56 }
0x325d   :  { %6110 = vtanh.f32 %v2643_v27  ;;  %v4843_v30 = vmul.f32 -1.442695, %v2643_v27 }
0x325f   :  { %6112 = vpow2.f32 %v4843_v30 }
0x3267   :  { %v6111_v29 = vpop.eup %6110 }
0x3268   :  { %2653 = vrot.lane.b32.xlu0 %v6111_v29, %s6281_s5 }
0x3269   :  { %v6113_v31 = vpop.eup %6112 }
0x326a   :  { %v2647_v32 = vadd.f32 1.0, %v6113_v31 }
0x326c   :  { %6114 = vrcp.f32 %v2647_v32 }
0x3276   :  { %v6115_v33 = vpop.eup %6114 }
0x3277   :  { %v2651_v35 = vmul.f32 %v6115_v33, %v2559_v20 }
0x32da   :  { %v2654_v34 = vpop.permute.xlu0 %2653 }
0x32db   :  { %v2656_v39 = vmul.f32 %v6115_v33, %v2654_v34 }
0x32dd   :  { %2658 = vrot.lane.b32.xlu1 %v2656_v39, %s6282_s6 }
0x334f   :  { %v2659_v36 = vpop.permute.xlu1 %2658 }
0x3350   :  { %v2661_v38 = vadd.f32 %v2659_v36, %v2651_v35  ;;  %v2005_v35 = vld [vmem:[%s7274_s13] sm:$0xff]  ;;  %v2006_v36 = vld [vmem:[%s7274_s13 + $0x8] sm:$0xff] }
0x3352   :  { %6116 = vtanh.f32 %v2661_v38 }
0x335c   :  { %v6117_v40 = vpop.eup %6116 }
0x335d   :  { %2664 = vrot.lane.b32.xlu0 %v6117_v40, %s6281_s5 }
0x33cf   :  { %v2665_v44 = vpop.permute.xlu0 %2664 }
0x33d0   :  { %v2667_v45 = vmul.f32 %v6115_v33, %v2665_v44 }
0x33d2   :  { %2669 = vrot.lane.b32.xlu1 %v2667_v45, %s6282_s6 }
0x3444   :  { %v2670_v46 = vpop.permute.xlu1 %2669 }
0x3445   :  { %2672 = vst.msk [vmem:[#allocation3 + $0x20] sm:$0xff] %vm101_vm0, %v2670_v46  ;;  %5450 = vmatmul.mubr.msk.f32.vlgmr.msra.gmra.mrb[40].mxu0 %vm101_vm0, %v2670_v46  ;;  %v2007_v46 = vld [vmem:[%s7274_s13 + $0x10] sm:$0xff] }
0x3446   :  { %5844 = vmatpush3.bf16.msra.mxu0 %v6758_v1  ;;  %5471 = vmatprep.mubr.msk.f32.mxu0 %vm6279_vm1, %v6280_v13 }
0x3447   :  { %5845 = vmatprep.subr.bf16.mxu0 %v6278_v4 }
0x344a   :  { %5847 = vmatpush3.bf16.msra.mxu0 %v6770_v47 }
0x344b   :  { %5854 = vmatprep.subr.bf16.mxu0 %v6278_v4 }
0x3518   :  { %v2741_v49 = vpop.f32.mrb[40].mxu0 }
0x3519   :  { %v2745_v50 = vadd.f32 %v2741_v49, %v2142_v48  ;;  %v5451_v37 = vpop.f32.mrb[41].mxu0  ;;  %v2008_v48 = vld [vmem:[%s7274_s13 + $0x18] sm:$0xff] }
0x351a   :  { %v5864_v49 = vpack.c.bf16 %v2008_v48, %v2007_v46  ;;  %v3183_v37 = vld [vmem:[#allocation3] sm:$0xff] }
0x351b   :  { %6118 = vtanh.f32 %v2745_v50  ;;  %v4845_v52 = vmul.f32 -1.442695, %v2745_v50 }
0x351d   :  { %6120 = vpow2.f32 %v4845_v52  ;;  %v3185_v52 = vld [vmem:[#allocation3 + $0x10] sm:$0xff] }
0x3525   :  { %v6119_v51 = vpop.eup %6118 }
0x3526   :  { %2755 = vrot.lane.b32.xlu0 %v6119_v51, %s6281_s5  ;;  %v3184_v51 = vld [vmem:[#allocation3 + $0x8] sm:$0xff] }
0x3527   :  { %v6121_v53 = vpop.eup %6120 }
0x3528   :  { %v2749_v43 = vadd.f32 1.0, %v6121_v53  ;;  %v3186_v53 = vld [vmem:[#allocation3 + $0x18] sm:$0xff] }
0x352a   :  { %6122 = vrcp.f32 %v2749_v43  ;;  %v3187_v43 = vld [vmem:[#allocation3 + $0x20] sm:$0xff] }
0x3534   :  { %v6123_v57 = vpop.eup %6122 }
0x3535   :  { %v2753_v2 = vmul.f32 %v6123_v57, %v2661_v38  ;;  %v5860_v38 = vpack.c.bf16 %v2006_v36, %v2005_v35 }
0x3598   :  { %v2756_v60 = vpop.permute.xlu0 %2755 }
0x3599   :  { %v2758_v63 = vmul.f32 %v6123_v57, %v2756_v60 }
0x359b   :  { %2760 = vrot.lane.b32.xlu1 %v2758_v63, %s6282_s6 }
0x360d   :  { %v2761_v3 = vpop.permute.xlu1 %2760 }
0x360e   :  { %v2763_v5 = vadd.f32 %v2761_v3, %v2753_v2  ;;  %v2157_v2 = vadd.f32 %v6796_v56, %v6871_v9 }
0x3610   :  { %6124 = vtanh.f32 %v2763_v5 }
0x361a   :  { %v6125_v8 = vpop.eup %6124 }
0x361b   :  { %2766 = vrot.lane.b32.xlu0 %v6125_v8, %s6281_s5 }
0x368d   :  { %v2767_v59 = vpop.permute.xlu0 %2766 }
0x368e   :  { %v2769_v10 = vmul.f32 %v6123_v57, %v2767_v59 }
0x3690   :  { %2771 = vrot.lane.b32.xlu1 %v2769_v10, %s6282_s6 }
0x3702   :  { %v2772_v11 = vpop.permute.xlu1 %2771 }
0x3703   :  { %2774 = vst.msk [vmem:[#allocation3 + $0x28] sm:$0xff] %vm101_vm0, %v2772_v11  ;;  %5461 = vmatmul.mubr.msk.f32.vlgmr.msra.gmra.mrb[28].mxu1 %vm101_vm0, %v2772_v11 }
0x3704   :  { %5850 = vmatpush3.bf16.msra.mxu1 %v6758_v1  ;;  %5482 = vmatprep.mubr.msk.f32.mxu1 %vm6279_vm1, %v6280_v13 }
0x3705   :  { %5851 = vmatprep.subr.bf16.mxu1 %v6278_v4 }
0x3708   :  { %5853 = vmatpush3.bf16.msra.mxu1 %v6770_v47 }
0x3709   :  { %5861 = vmatprep.subr.bf16.mxu1 %v5860_v38 }
0x370a   :  { %v3188_v57 = vld [vmem:[#allocation3 + $0x28] sm:$0xff] }
0x37d6   :  { %v2843_v58 = vpop.f32.mrb[28].mxu1 }
0x37d7   :  { %v2847_v12 = vadd.f32 %v2843_v58, %v2147_v14  ;;  %v5462_v16 = vpop.f32.mrb[29].mxu1 }
0x37d9   :  { %6126 = vtanh.f32 %v2847_v12  ;;  %v4847_v0 = vmul.f32 -1.442695, %v2847_v12 }
0x37db   :  { %6128 = vpow2.f32 %v4847_v0 }
0x37e3   :  { %v6127_v42 = vpop.eup %6126 }
0x37e4   :  { %2857 = vrot.lane.b32.xlu0 %v6127_v42, %s6281_s5 }
0x37e5   :  { %v6129_v15 = vpop.eup %6128 }
0x37e6   :  { %v2851_v62 = vadd.f32 1.0, %v6129_v15 }
0x37e8   :  { %6130 = vrcp.f32 %v2851_v62 }
0x37f2   :  { %v6131_v17 = vpop.eup %6130 }
0x37f3   :  { %v2855_v19 = vmul.f32 %v6131_v17, %v2763_v5 }
0x3856   :  { %v2858_v41 = vpop.permute.xlu0 %2857 }
0x3857   :  { %v2860_v18 = vmul.f32 %v6131_v17, %v2858_v41 }
0x3859   :  { %2862 = vrot.lane.b32.xlu1 %v2860_v18, %s6282_s6 }
0x38cb   :  { %v2863_v20 = vpop.permute.xlu1 %2862 }
0x38cc   :  { %v2865_v7 = vadd.f32 %v2863_v20, %v2855_v19 }
0x38ce   :  { %6132 = vtanh.f32 %v2865_v7 }
0x38d8   :  { %v6133_v21 = vpop.eup %6132 }
0x38d9   :  { %2868 = vrot.lane.b32.xlu0 %v6133_v21, %s6281_s5 }
0x394b   :  { %v2869_v22 = vpop.permute.xlu0 %2868 }
0x394c   :  { %v2871_v23 = vmul.f32 %v6131_v17, %v2869_v22  ;;  %v2009_v22 = vld [vmem:[%s7275_s14] sm:$0xff] }
0x394e   :  { %2873 = vrot.lane.b32.xlu1 %v2871_v23, %s6282_s6  ;;  %v2010_v23 = vld [vmem:[%s7275_s14 + $0x8] sm:$0xff] }
0x39c0   :  { %v2874_v24 = vpop.permute.xlu1 %2873 }
0x39c1   :  { %2876 = vst.msk [vmem:[#allocation3 + $0x30] sm:$0xff] %vm101_vm0, %v2874_v24  ;;  %5472 = vmatmul.mubr.msk.f32.vlgmr.msra.gmra.mrb[42].mxu0 %vm101_vm0, %v2874_v24  ;;  %v6991_v24 = vpack.c.bf16 %v2010_v23, %v2009_v22 }
0x39c2   :  { %5856 = vmatpush3.bf16.msra.mxu0 %v6758_v1  ;;  %5493 = vmatprep.mubr.msk.f32.mxu0 %vm6279_vm1, %v6280_v13 }
0x39c3   :  { %5857 = vmatprep.subr.bf16.mxu0 %v6278_v4 }
0x39c6   :  { %5859 = vmatpush3.bf16.msra.mxu0 %v6770_v47 }
0x39c7   :  { %5868 = vmatprep.subr.bf16.mxu0 %v6278_v4 }
0x39c8   :  { %v3189_v60 = vld [vmem:[#allocation3 + $0x30] sm:$0xff] }
0x3a94   :  { %v2945_v26 = vpop.f32.mrb[42].mxu0 }
0x3a95   :  { %v2949_v27 = vadd.f32 %v2945_v26, %v2152_v25  ;;  %v5473_v28 = vpop.f32.mrb[43].mxu0  ;;  %v2011_v25 = vld [vmem:[%s7275_s14 + $0x10] sm:$0xff]  ;;  %v2012_v26 = vld [vmem:[%s7275_s14 + $0x18] sm:$0xff] }
0x3a97   :  { %6134 = vtanh.f32 %v2949_v27  ;;  %v4849_v1 = vmul.f32 -1.442695, %v2949_v27  ;;  %v7001_v27 = vpack.c.bf16 %v2012_v26, %v2011_v25 }
0x3a99   :  { %6136 = vpow2.f32 %v4849_v1 }
0x3aa1   :  { %v6135_v29 = vpop.eup %6134 }
0x3aa2   :  { %2959 = vrot.lane.b32.xlu0 %v6135_v29, %s6281_s5 }
0x3aa3   :  { %v6137_v30 = vpop.eup %6136 }
0x3aa4   :  { %v2953_v31 = vadd.f32 1.0, %v6137_v30 }
0x3aa6   :  { %6138 = vrcp.f32 %v2953_v31  ;;  %v2162_v31 = vadd.f32 %v6869_v55, %v6796_v56 }
0x3ab0   :  { %v6139_v32 = vpop.eup %6138 }
0x3ab1   :  { %v2957_v34 = vmul.f32 %v6139_v32, %v2865_v7 }
0x3b14   :  { %v2960_v33 = vpop.permute.xlu0 %2959 }
0x3b15   :  { %v2962_v47 = vmul.f32 %v6139_v32, %v2960_v33 }
0x3b17   :  { %2964 = vrot.lane.b32.xlu1 %v2962_v47, %s6282_s6 }
0x3b89   :  { %v2965_v39 = vpop.permute.xlu1 %2964 }
0x3b8a   :  { %v2967_v6 = vadd.f32 %v2965_v39, %v2957_v34  ;;  %v7027_v34 = vld [vmem:[%s7276_s15] ss:$0 sm:$0xff] }
0x3b8c   :  { %6140 = vtanh.f32 %v2967_v6 }
0x3b96   :  { %v6141_v40 = vpop.eup %6140 }
0x3b97   :  { %2970 = vrot.lane.b32.xlu0 %v6141_v40, %s6281_s5 }
0x3c09   :  { %v2971_v44 = vpop.permute.xlu0 %2970 }
0x3c0a   :  { %v2973_v45 = vmul.f32 %v6139_v32, %v2971_v44 }
0x3c0c   :  { %2975 = vrot.lane.b32.xlu1 %v2973_v45, %s6282_s6 }
0x3c7e   :  { %v2976_v50 = vpop.permute.xlu1 %2975 }
0x3c7f   :  { %2978 = vst.msk [vmem:[#allocation3 + $0x38] sm:$0xff] %vm101_vm0, %v2976_v50  ;;  %5483 = vmatmul.mubr.msk.f32.vlgmr.msra.gmra.mrb[30].mxu1 %vm101_vm0, %v2976_v50 }
0x3c80   :  { %5863 = vmatpush3.bf16.msra.mxu1 %v5860_v38  ;;  %5504 = vmatprep.mubr.msk.f32.mxu1 %vm101_vm0, %v3183_v37 }
0x3c81   :  { %5865 = vmatprep.subr.bf16.mxu1 %v5864_v49 }
0x3c84   :  { %5867 = vmatpush3.bf16.msra.mxu1 %v5864_v49 }
0x3c85   :  { %5886 = vmatprep.subr.bf16.mxu1 %v6278_v4 }
0x3c86   :  { %v3190_v63 = vld [vmem:[#allocation3 + $0x38] sm:$0xff] }
0x3c87   :  { %5505 = vmatmul.mubr.msk.f32.vlgmr.msra.gmra.mrb[32].mxu1 %vm101_vm0, %v3184_v51 }
0x3c88   :  { %5507 = vmatprep.mubr.msk.f32.mxu1 %vm101_vm0, %v3185_v52  ;;  %5888 = vmatpush3.bf16.msra.mxu1 %v6991_v24 }
0x3c89   :  { %5889 = vmatprep.subr.bf16.mxu1 %v6278_v4 }
0x3c8b   :  { %5508 = vmatmul.mubr.msk.f32.gmra.mrb[34].mxu1 %vm101_vm0, %v3186_v53 }
0x3c8c   :  { %5510 = vmatprep.mubr.msk.f32.mxu1 %vm101_vm0, %v3187_v43  ;;  %5891 = vmatpush3.bf16.msra.mxu1 %v7001_v27 }
0x3c8d   :  { %5898 = vmatprep.subr.bf16.mxu1 %v6278_v4 }
0x3c8f   :  { %5511 = vmatmul.mubr.msk.f32.gmra.mrb[36].mxu1 %vm101_vm0, %v3188_v57 }
0x3c90   :  { %5513 = vmatprep.mubr.msk.f32.mxu1 %vm101_vm0, %v3189_v60 }
0x3c93   :  { %5514 = vmatmul.mubr.msk.f32.gmra.mrb[38].mxu1 %vm101_vm0, %v3190_v63 }
0x3d52   :  { %v3047_v3 = vpop.f32.mrb[30].mxu1 }
0x3d53   :  { %v3051_v5 = vadd.f32 %v3047_v3, %v2157_v2  ;;  %v5484_v8 = vpop.f32.mrb[31].mxu1 }
0x3d55   :  { %6142 = vtanh.f32 %v3051_v5  ;;  %v4851_v0 = vmul.f32 -1.442695, %v3051_v5 }
0x3d57   :  { %6144 = vpow2.f32 %v4851_v0 }
0x3d5a   :  { %v6965_v59 = vpop.f32.mrb[32].mxu1 }
0x3d5b   :  { %v3295_v10 = vpop.f32.mrb[33].mxu1  ;;  %v3301_v43 = vadd.f32 %v6965_v59, %v7027_v34 }
0x3d5c   :  { %v3296_v39 = vadd.f32 %v7027_v34, %v3295_v10 }
0x3d5e   :  { %v6967_v11 = vpop.f32.mrb[34].mxu1 }
0x3d5f   :  { %v6143_v14 = vpop.eup %6142  ;;  %v6969_v58 = vpop.f32.mrb[35].mxu1 }
0x3d60   :  { %3061 = vrot.lane.b32.xlu0 %v6143_v14, %s6281_s5 }
0x3d61   :  { %v6145_v15 = vpop.eup %6144 }
0x3d62   :  { %v6972_v12 = vpop.f32.mrb[36].mxu1  ;;  %v3055_v62 = vadd.f32 1.0, %v6145_v15 }
0x3d63   :  { %v6974_v16 = vpop.f32.mrb[37].mxu1 }
0x3d64   :  { %6146 = vrcp.f32 %v3055_v62 }
0x3d66   :  { %v6976_v42 = vpop.f32.mrb[38].mxu1 }
0x3d67   :  { %v6978_v9 = vpop.f32.mrb[39].mxu1 }
0x3d6e   :  { %v6147_v17 = vpop.eup %6146 }
0x3d6f   :  { %v3059_v19 = vmul.f32 %v6147_v17, %v2967_v6 }
0x3dd2   :  { %v3062_v41 = vpop.permute.xlu0 %3061 }
0x3dd3   :  { %v3064_v18 = vmul.f32 %v6147_v17, %v3062_v41 }
0x3dd5   :  { %3066 = vrot.lane.b32.xlu1 %v3064_v18, %s6282_s6 }
0x3e47   :  { %v3067_v20 = vpop.permute.xlu1 %3066 }
0x3e48   :  { %v6981_v7 = vadd.f32 %v3067_v20, %v3059_v19 }
0x3e4a   :  { %6148 = vtanh.f32 %v6981_v7 }
0x3e54   :  { %v6149_v21 = vpop.eup %6148 }
0x3e55   :  { %3072 = vrot.lane.b32.xlu0 %v6149_v21, %s6281_s5 }
0x3ec7   :  { %v3073_v28 = vpop.permute.xlu0 %3072 }
0x3ec8   :  { %v3075_v29 = vmul.f32 %v6147_v17, %v3073_v28 }
0x3eca   :  { %3077 = vrot.lane.b32.xlu1 %v3075_v29, %s6282_s6 }
0x3f3c   :  { %v3078_v1 = vpop.permute.xlu1 %3077 }
0x3f3d   :  { %3080 = vst.msk [vmem:[#allocation3 + $0x40] sm:$0xff] %vm101_vm0, %v3078_v1  ;;  %5494 = vmatmul.mubr.msk.f32.vlgmr.msra.gmra.mrb[44].mxu0 %vm101_vm0, %v3078_v1 }
0x3f3e   :  { %5870 = vmatpush3.bf16.msra.mxu0 %v6991_v24  ;;  %5527 = vmatprep.mubr.msk.f32.mxu0 %vm6279_vm1, %v6280_v13 }
0x3f3f   :  { %5871 = vmatprep.subr.bf16.mxu0 %v6278_v4 }
0x3f42   :  { %5873 = vmatpush3.bf16.msra.mxu0 %v7001_v27 }
0x3f43   :  { %5874 = vmatprep.subr.bf16.mxu0 %v6278_v4 }
0x3f44   :  { %v3191_v30 = vld [vmem:[#allocation3 + $0x40] sm:$0xff] }
0x3f45   :  { %5528 = vmatmul.mubr.f32.vlgmr.msra.gmra.mrb[46].mxu0 %v6280_v13  ;;  %5516 = vmatprep.mubr.msk.f32.mxu1 %vm101_vm0, %v3191_v30 }
0x3f46   :  { %5876 = vmatpush3.bf16.msra.mxu0 %v6991_v24  ;;  %5538 = vmatprep.mubr.msk.f32.mxu0 %vm6279_vm1, %v6280_v13 }
0x3f47   :  { %5877 = vmatprep.subr.bf16.mxu0 %v6278_v4 }
0x3f4a   :  { %5879 = vmatpush3.bf16.msra.mxu0 %v7001_v27 }
0x3f4b   :  { %5880 = vmatprep.subr.bf16.mxu0 %v6278_v4 }
0x4010   :  { %v3149_v32 = vpop.f32.mrb[44].mxu0 }
0x4011   :  { %v3153_v33 = vadd.f32 %v3149_v32, %v2162_v31  ;;  %v5495_v47 = vpop.f32.mrb[45].mxu0 }
0x4012   :  { %v3306_v47 = vadd.f32 %v7027_v34, %v6969_v58 }
0x4013   :  { %v4853_v18 = vmul.f32 -1.442695, %v3153_v33 }
0x4018   :  { %v3410_v6 = vpop.f32.mrb[46].mxu0 }
0x4019   :  { %v3414_v35 = vadd.f32 %v3410_v6, %v3296_v39  ;;  %v5529_v36 = vpop.f32.mrb[47].mxu0 }
0x401b   :  { %6150 = vtanh.f32 %v3414_v35  ;;  %v4865_v40 = vmul.f32 -1.442695, %v3414_v35 }
0x401d   :  { %6152 = vpow2.f32 %v4865_v40 }
0x4025   :  { %v6151_v38 = vpop.eup %6150 }
0x4026   :  { %3424 = vrot.lane.b32.xlu0 %v6151_v38, %s6281_s5 }
0x4027   :  { %v6153_v56 = vpop.eup %6152 }
0x4028   :  { %v3418_v55 = vadd.f32 1.0, %v6153_v56 }
0x402a   :  { %6154 = vrcp.f32 %v3418_v55 }
0x4034   :  { %v6155_v44 = vpop.eup %6154 }
0x4035   :  { %v3422_v48 = vmul.f32 0.0, %v6155_v44 }
0x4098   :  { %v3425_v45 = vpop.permute.xlu0 %3424 }
0x4099   :  { %v3427_v46 = vmul.f32 %v6155_v44, %v3425_v45 }
0x409b   :  { %3429 = vrot.lane.b32.xlu1 %v3427_v46, %s6282_s6 }
0x410d   :  { %v3430_v49 = vpop.permute.xlu1 %3429 }
0x410e   :  { %v3432_v50 = vadd.f32 %v3430_v49, %v3422_v48 }
0x4110   :  { %6156 = vtanh.f32 %v3432_v50 }
0x411a   :  { %v6157_v37 = vpop.eup %6156 }
0x411b   :  { %3435 = vrot.lane.b32.xlu0 %v6157_v37, %s6281_s5 }
0x418d   :  { %v3436_v51 = vpop.permute.xlu0 %3435 }
0x418e   :  { %v3438_v52 = vmul.f32 %v6155_v44, %v3436_v51 }
0x4190   :  { %3440 = vrot.lane.b32.xlu1 %v3438_v52, %s6282_s6 }
0x4202   :  { %v3441_v53 = vpop.permute.xlu1 %3440 }
0x4203   :  { %5539 = vmatmul.mubr.msk.f32.vlgmr.msra.gmra.mrb[48].mxu0 %vm101_vm0, %v3441_v53 }
0x4204   :  { %5882 = vmatpush3.bf16.msra.mxu0 %v6991_v24  ;;  %5549 = vmatprep.mubr.msk.f32.mxu0 %vm6279_vm1, %v6280_v13 }
0x4205   :  { %5883 = vmatprep.subr.bf16.mxu0 %v6278_v4 }
0x4208   :  { %5885 = vmatpush3.bf16.msra.mxu0 %v7001_v27 }
0x4209   :  { %5892 = vmatprep.subr.bf16.mxu0 %v6278_v4 }
0x42d6   :  { %v3510_v57 = vpop.f32.mrb[48].mxu0 }
0x42d7   :  { %v3514_v60 = vadd.f32 %v3510_v57, %v3301_v43  ;;  %v5540_v63 = vpop.f32.mrb[49].mxu0  ;;  %v3311_v57 = vadd.f32 %v6967_v11, %v7027_v34 }
0x42d9   :  { %6158 = vtanh.f32 %v3514_v60  ;;  %v4867_v3 = vmul.f32 -1.442695, %v3514_v60 }
0x42db   :  { %6160 = vpow2.f32 %v4867_v3 }
0x42e3   :  { %v6159_v2 = vpop.eup %6158 }
0x42e4   :  { %3524 = vrot.lane.b32.xlu0 %v6159_v2, %s6281_s5 }
0x42e5   :  { %v6161_v5 = vpop.eup %6160 }
0x42e6   :  { %v3518_v8 = vadd.f32 1.0, %v6161_v5 }
0x42e8   :  { %6162 = vrcp.f32 %v3518_v8 }
0x42f2   :  { %v6163_v10 = vpop.eup %6162 }
0x42f3   :  { %v3522_v15 = vmul.f32 %v6163_v10, %v3432_v50 }
0x4356   :  { %v3525_v14 = vpop.permute.xlu0 %3524 }
0x4357   :  { %v3527_v0 = vmul.f32 %v6163_v10, %v3525_v14 }
0x4359   :  { %3529 = vrot.lane.b32.xlu1 %v3527_v0, %s6282_s6 }
0x43cb   :  { %v3530_v62 = vpop.permute.xlu1 %3529 }
0x43cc   :  { %v3532_v59 = vadd.f32 %v3530_v62, %v3522_v15 }
0x43ce   :  { %6164 = vtanh.f32 %v3532_v59 }
0x43cf   :  { %6166 = vtanh.f32 %v3153_v33 }
0x43d0   :  { %6168 = vpow2.f32 %v4853_v18 }
0x43d8   :  { %v6165_v17 = vpop.eup %6164 }
0x43d9   :  { %3535 = vrot.lane.b32.xlu0 %v6165_v17, %s6281_s5  ;;  %v6167_v41 = vpop.eup %6166 }
0x43da   :  { %v6169_v19 = vpop.eup %6168 }
0x43db   :  { %v3157_v20 = vadd.f32 1.0, %v6169_v19 }
0x43dd   :  { %3163 = vrot.lane.b32.xlu0 %v6167_v41, %s6281_s5  ;;  %6170 = vrcp.f32 %v3157_v20  ;;  %v3316_v20 = vadd.f32 %v7027_v34, %v6974_v16 }
0x43e7   :  { %v6171_v23 = vpop.eup %6170 }
0x43e8   :  { %v3161_v29 = vmul.f32 %v6171_v23, %v6981_v7 }
0x444b   :  { %v3536_v21 = vpop.permute.xlu0 %3535 }
0x444c   :  { %v3538_v22 = vmul.f32 %v6163_v10, %v3536_v21 }
0x444e   :  { %3540 = vrot.lane.b32.xlu1 %v3538_v22, %s6282_s6 }
0x444f   :  { %v3164_v25 = vpop.permute.xlu0 %3163 }
0x4450   :  { %v3166_v26 = vmul.f32 %v6171_v23, %v3164_v25 }
0x4452   :  { %3168 = vrot.lane.b32.xlu0 %v3166_v26, %s6282_s6 }
0x44c0   :  { %v3541_v28 = vpop.permute.xlu1 %3540 }
0x44c1   :  { %5550 = vmatmul.mubr.msk.f32.vlgmr.msra.gmra.mrb[50].mxu0 %vm101_vm0, %v3541_v28 }
0x44c2   :  { %5894 = vmatpush3.bf16.msra.mxu0 %v6991_v24  ;;  %5571 = vmatprep.mubr.msk.f32.mxu0 %vm6279_vm1, %v6280_v13 }
0x44c3   :  { %5895 = vmatprep.subr.bf16.mxu0 %v6278_v4 }
0x44c4   :  { %v3169_v1 = vpop.permute.xlu0 %3168 }
0x44c5   :  { %v3171_v30 = vadd.f32 %v3169_v1, %v3161_v29 }
0x44c6   :  { %5897 = vmatpush3.bf16.msra.mxu0 %v7001_v27 }
0x44c7   :  { %6172 = vtanh.f32 %v3171_v30  ;;  %5904 = vmatprep.subr.bf16.mxu0 %v6278_v4 }
0x44d1   :  { %v6173_v31 = vpop.eup %6172 }
0x44d2   :  { %3174 = vrot.lane.b32.xlu0 %v6173_v31, %s6281_s5 }
0x4544   :  { %v3175_v32 = vpop.permute.xlu0 %3174 }
0x4545   :  { %v3177_v33 = vmul.f32 %v6171_v23, %v3175_v32 }
0x4547   :  { %3179 = vrot.lane.b32.xlu0 %v3177_v33, %s6282_s6 }
0x4594   :  { %v3610_v7 = vpop.f32.mrb[50].mxu0 }
0x4595   :  { %v3614_v39 = vadd.f32 %v3610_v7, %v3306_v47  ;;  %v5551_v6 = vpop.f32.mrb[51].mxu0 }
0x4597   :  { %6174 = vtanh.f32 %v3614_v39  ;;  %v4869_v40 = vmul.f32 -1.442695, %v3614_v39 }
0x4599   :  { %6176 = vpow2.f32 %v4869_v40 }
0x45a1   :  { %v6175_v35 = vpop.eup %6174 }
0x45a2   :  { %3624 = vrot.lane.b32.xlu1 %v6175_v35, %s6281_s5  ;;  %v3321_v35 = vadd.f32 %v6972_v12, %v7027_v34 }
0x45a3   :  { %v6177_v56 = vpop.eup %6176 }
0x45a4   :  { %v3618_v58 = vadd.f32 1.0, %v6177_v56 }
0x45a6   :  { %6178 = vrcp.f32 %v3618_v58 }
0x45b0   :  { %v6179_v55 = vpop.eup %6178 }
0x45b1   :  { %v3622_v46 = vmul.f32 %v6179_v55, %v3532_v59 }
0x45b9   :  { %v3180_v36 = vpop.permute.xlu0 %3179 }
0x45ba   :  { %3182 = vst.msk [vmem:[#allocation3 + $0x48] sm:$0xff] %vm101_vm0, %v3180_v36 }
0x45c1   :  { %v3192_v38 = vld [vmem:[#allocation3 + $0x48] sm:$0xff] }
0x45c2   :  { %5517 = vmatmul.mubr.msk.f32.gmra.mrb[40].mxu1 %vm101_vm0, %v3192_v38 }
0x45c3   :  { %5560 = vmatprep.mubr.msk.f32.mxu1 %vm6279_vm1, %v6280_v13 }
0x4614   :  { %v3625_v44 = vpop.permute.xlu1 %3624 }
0x4615   :  { %v3627_v45 = vmul.f32 %v6179_v55, %v3625_v44 }
0x4617   :  { %3629 = vrot.lane.b32.xlu1 %v3627_v45, %s6282_s6 }
0x4689   :  { %v3630_v48 = vpop.permute.xlu1 %3629 }
0x468a   :  { %v3632_v49 = vadd.f32 %v3630_v48, %v3622_v46 }
0x468c   :  { %6180 = vtanh.f32 %v3632_v49 }
0x4695   :  { %v7067_v50 = vpop.f32.mrb[40].mxu1 }
0x4696   :  { %v6181_v37 = vpop.eup %6180  ;;  %v7069_v51 = vpop.f32.mrb[41].mxu1 }
0x4697   :  { %3635 = vrot.lane.b32.xlu1 %v6181_v37, %s6281_s5 }
0x4709   :  { %v3636_v52 = vpop.permute.xlu1 %3635 }
0x470a   :  { %v3638_v53 = vmul.f32 %v6179_v55, %v3636_v52 }
0x470c   :  { %3640 = vrot.lane.b32.xlu1 %v3638_v53, %s6282_s6 }
0x477e   :  { %v3641_v43 = vpop.permute.xlu1 %3640 }
0x477f   :  { %5561 = vmatmul.mubr.msk.f32.vlgmr.msra.gmra.mrb[42].mxu1 %vm101_vm0, %v3641_v43 }
0x4780   :  { %5900 = vmatpush3.bf16.msra.mxu1 %v6991_v24  ;;  %5582 = vmatprep.mubr.msk.f32.mxu1 %vm6279_vm1, %v6280_v13 }
0x4781   :  { %5901 = vmatprep.subr.bf16.mxu1 %v6278_v4 }
0x4784   :  { %5903 = vmatpush3.bf16.msra.mxu1 %v7001_v27 }
0x4785   :  { %5910 = vmatprep.subr.bf16.mxu1 %v6278_v4 }
0x4852   :  { %v3710_v60 = vpop.f32.mrb[42].mxu1 }
0x4853   :  { %v3714_v63 = vadd.f32 %v3710_v60, %v3311_v57  ;;  %v5562_v2 = vpop.f32.mrb[43].mxu1  ;;  %v3326_v60 = vadd.f32 %v7027_v34, %v6978_v9 }
0x4855   :  { %6182 = vtanh.f32 %v3714_v63  ;;  %v4871_v5 = vmul.f32 -1.442695, %v3714_v63 }
0x4857   :  { %6184 = vpow2.f32 %v4871_v5 }
0x485f   :  { %v6183_v3 = vpop.eup %6182 }
0x4860   :  { %3724 = vrot.lane.b32.xlu0 %v6183_v3, %s6281_s5 }
0x4861   :  { %v6185_v8 = vpop.eup %6184 }
0x4862   :  { %v3718_v10 = vadd.f32 1.0, %v6185_v8 }
0x4864   :  { %6186 = vrcp.f32 %v3718_v10 }
0x486e   :  { %v6187_v14 = vpop.eup %6186 }
0x486f   :  { %v3722_v62 = vmul.f32 %v6187_v14, %v3632_v49 }
0x48d2   :  { %v3725_v0 = vpop.permute.xlu0 %3724 }
0x48d3   :  { %v3727_v15 = vmul.f32 %v6187_v14, %v3725_v0 }
0x48d5   :  { %3729 = vrot.lane.b32.xlu1 %v3727_v15, %s6282_s6 }
0x4947   :  { %v3730_v59 = vpop.permute.xlu1 %3729 }
0x4948   :  { %v3732_v11 = vadd.f32 %v3730_v59, %v3722_v62 }
0x494a   :  { %6188 = vtanh.f32 %v3732_v11 }
0x4954   :  { %v6189_v17 = vpop.eup %6188 }
0x4955   :  { %3735 = vrot.lane.b32.xlu0 %v6189_v17, %s6281_s5 }
0x49c7   :  { %v3736_v41 = vpop.permute.xlu0 %3735 }
0x49c8   :  { %v3738_v18 = vmul.f32 %v6187_v14, %v3736_v41 }
0x49ca   :  { %3740 = vrot.lane.b32.xlu1 %v3738_v18, %s6282_s6 }
0x4a3c   :  { %v3741_v19 = vpop.permute.xlu1 %3740 }
0x4a3d   :  { %5572 = vmatmul.mubr.msk.f32.vlgmr.msra.gmra.mrb[52].mxu0 %vm101_vm0, %v3741_v19 }
0x4a3e   :  { %5906 = vmatpush3.bf16.msra.mxu0 %v6991_v24  ;;  %5593 = vmatprep.mubr.msk.f32.mxu0 %vm6279_vm1, %v6280_v13 }
0x4a3f   :  { %5907 = vmatprep.subr.bf16.mxu0 %v6278_v4 }
0x4a42   :  { %5909 = vmatpush3.bf16.msra.mxu0 %v7001_v27 }
0x4a43   :  { %5916 = vmatprep.subr.bf16.mxu0 %v6278_v4 }
0x4b10   :  { %v3810_v21 = vpop.f32.mrb[52].mxu0 }
0x4b11   :  { %v3814_v22 = vadd.f32 %v3810_v21, %v3316_v20  ;;  %v5573_v23 = vpop.f32.mrb[53].mxu0  ;;  %v3331_v20 = vadd.f32 %v6976_v42, %v7027_v34 }
0x4b13   :  { %6190 = vtanh.f32 %v3814_v22  ;;  %v4873_v26 = vmul.f32 -1.442695, %v3814_v22 }
0x4b15   :  { %6192 = vpow2.f32 %v4873_v26 }
0x4b1d   :  { %v6191_v25 = vpop.eup %6190 }
0x4b1e   :  { %3824 = vrot.lane.b32.xlu0 %v6191_v25, %s6281_s5 }
0x4b1f   :  { %v6193_v28 = vpop.eup %6192 }
0x4b20   :  { %v3818_v29 = vadd.f32 1.0, %v6193_v28 }
0x4b22   :  { %6194 = vrcp.f32 %v3818_v29 }
0x4b2c   :  { %v6195_v1 = vpop.eup %6194 }
0x4b2d   :  { %v3822_v32 = vmul.f32 %v6195_v1, %v3732_v11 }
0x4b90   :  { %v3825_v30 = vpop.permute.xlu0 %3824 }
0x4b91   :  { %v3827_v31 = vmul.f32 %v6195_v1, %v3825_v30 }
0x4b93   :  { %3829 = vrot.lane.b32.xlu1 %v3827_v31, %s6282_s6 }
0x4c05   :  { %v3830_v33 = vpop.permute.xlu1 %3829 }
0x4c06   :  { %v3832_v16 = vadd.f32 %v3830_v33, %v3822_v32 }
0x4c08   :  { %6196 = vtanh.f32 %v3832_v16 }
0x4c12   :  { %v6197_v47 = vpop.eup %6196 }
0x4c13   :  { %3835 = vrot.lane.b32.xlu0 %v6197_v47, %s6281_s5 }
0x4c85   :  { %v3836_v7 = vpop.permute.xlu0 %3835 }
0x4c86   :  { %v3838_v39 = vmul.f32 %v6195_v1, %v3836_v7  ;;  %v3336_v7 = vadd.f32 %v7027_v34, %v7069_v51 }
0x4c88   :  { %3840 = vrot.lane.b32.xlu1 %v3838_v39, %s6282_s6 }
0x4cfa   :  { %v3841_v6 = vpop.permute.xlu1 %3840 }
0x4cfb   :  { %5583 = vmatmul.mubr.msk.f32.vlgmr.msra.gmra.mrb[44].mxu1 %vm101_vm0, %v3841_v6 }
0x4cfc   :  { %5912 = vmatpush3.bf16.msra.mxu1 %v6991_v24  ;;  %5604 = vmatprep.mubr.msk.f32.mxu1 %vm6279_vm1, %v6280_v13 }
0x4cfd   :  { %5913 = vmatprep.subr.bf16.mxu1 %v6278_v4 }
0x4d00   :  { %5915 = vmatpush3.bf16.msra.mxu1 %v7001_v27 }
0x4d01   :  { %5922 = vmatprep.subr.bf16.mxu1 %v6278_v4 }
0x4dce   :  { %v3910_v36 = vpop.f32.mrb[44].mxu1 }
0x4dcf   :  { %v3914_v38 = vadd.f32 %v3910_v36, %v3321_v35  ;;  %v5584_v40 = vpop.f32.mrb[45].mxu1 }
0x4dd1   :  { %6198 = vtanh.f32 %v3914_v38  ;;  %v4875_v58 = vmul.f32 -1.442695, %v3914_v38 }
0x4dd3   :  { %6200 = vpow2.f32 %v4875_v58 }
0x4ddb   :  { %v6199_v56 = vpop.eup %6198 }
0x4ddc   :  { %3924 = vrot.lane.b32.xlu0 %v6199_v56, %s6281_s5 }
0x4ddd   :  { %v6201_v55 = vpop.eup %6200 }
0x4dde   :  { %v3918_v44 = vadd.f32 1.0, %v6201_v55 }
0x4de0   :  { %6202 = vrcp.f32 %v3918_v44 }
0x4dea   :  { %v6203_v45 = vpop.eup %6202 }
0x4deb   :  { %v3922_v49 = vmul.f32 %v6203_v45, %v3832_v16 }
0x4e4e   :  { %v3925_v46 = vpop.permute.xlu0 %3924 }
0x4e4f   :  { %v3927_v48 = vmul.f32 %v6203_v45, %v3925_v46 }
0x4e51   :  { %3929 = vrot.lane.b32.xlu1 %v3927_v48, %s6282_s6 }
0x4ec3   :  { %v3930_v37 = vpop.permute.xlu1 %3929 }
0x4ec4   :  { %v3932_v12 = vadd.f32 %v3930_v37, %v3922_v49  ;;  %v4823_v37 = vmul.f32 -1.442695, %v6791_v54 }
0x4ec6   :  { %6204 = vtanh.f32 %v3932_v12 }
0x4ed0   :  { %v6205_v52 = vpop.eup %6204 }
0x4ed1   :  { %3935 = vrot.lane.b32.xlu0 %v6205_v52, %s6281_s5 }
0x4f43   :  { %v3936_v53 = vpop.permute.xlu0 %3935 }
0x4f44   :  { %v3938_v43 = vmul.f32 %v6203_v45, %v3936_v53 }
0x4f46   :  { %3940 = vrot.lane.b32.xlu1 %v3938_v43, %s6282_s6 }
0x4fb8   :  { %v3941_v57 = vpop.permute.xlu1 %3940 }
0x4fb9   :  { %5594 = vmatmul.mubr.msk.f32.vlgmr.msra.gmra.mrb[54].mxu0 %vm101_vm0, %v3941_v57 }
0x4fba   :  { %5918 = vmatpush3.bf16.msra.mxu0 %v6991_v24  ;;  %5615 = vmatprep.mubr.msk.f32.mxu0 %vm6279_vm1, %v6280_v13 }
0x4fbb   :  { %5919 = vmatprep.subr.bf16.mxu0 %v6278_v4 }
0x4fbe   :  { %5921 = vmatpush3.bf16.msra.mxu0 %v7001_v27 }
0x4fbf   :  { %5928 = vmatprep.subr.bf16.mxu0 %v6278_v4 }
0x508c   :  { %v4010_v63 = vpop.f32.mrb[54].mxu0 }
0x508d   :  { %v4014_v2 = vadd.f32 %v4010_v63, %v3326_v60  ;;  %v5595_v3 = vpop.f32.mrb[55].mxu0 }
0x508f   :  { %6206 = vtanh.f32 %v4014_v2  ;;  %v4877_v8 = vmul.f32 -1.442695, %v4014_v2 }
0x5091   :  { %6208 = vpow2.f32 %v4877_v8 }
0x5099   :  { %v6207_v5 = vpop.eup %6206 }
0x509a   :  { %4024 = vrot.lane.b32.xlu0 %v6207_v5, %s6281_s5 }
0x509b   :  { %v6209_v10 = vpop.eup %6208 }
0x509c   :  { %v4018_v14 = vadd.f32 1.0, %v6209_v10  ;;  %v4340_v10 = vld [vmem:[%s7277_s16] sm:$0xff] }
0x509e   :  { %6210 = vrcp.f32 %v4018_v14  ;;  %v4341_v14 = vld [vmem:[%s7277_s16 + $0x8] sm:$0xff] }
0x50a8   :  { %v6211_v0 = vpop.eup %6210 }
0x50a9   :  { %v4022_v59 = vmul.f32 %v6211_v0, %v3932_v12 }
0x510c   :  { %v4025_v15 = vpop.permute.xlu0 %4024 }
0x510d   :  { %v4027_v62 = vmul.f32 %v6211_v0, %v4025_v15  ;;  %v5935_v15 = vpack.c.bf16 %v4341_v14, %v4340_v10 }
0x510f   :  { %4029 = vrot.lane.b32.xlu1 %v4027_v62, %s6282_s6  ;;  %v4348_v62 = vld [vmem:[%s7278_s17] sm:$0xff] }
0x5181   :  { %v4030_v11 = vpop.permute.xlu1 %4029 }
0x5182   :  { %v4032_v9 = vadd.f32 %v4030_v11, %v4022_v59  ;;  %v4349_v59 = vld [vmem:[%s7278_s17 + $0x8] sm:$0xff] }
0x5183   :  { %v5929_v11 = vpack.c.bf16 %v4349_v59, %v4348_v62 }
0x5184   :  { %6212 = vtanh.f32 %v4032_v9 }
0x518e   :  { %v6213_v17 = vpop.eup %6212 }
0x518f   :  { %4035 = vrot.lane.b32.xlu0 %v6213_v17, %s6281_s5 }
0x5201   :  { %v4036_v41 = vpop.permute.xlu0 %4035 }
0x5202   :  { %v4038_v18 = vmul.f32 %v6211_v0, %v4036_v41  ;;  %v4342_v0 = vld [vmem:[%s7277_s16 + $0x10] sm:$0xff]  ;;  %v4351_v41 = vld [vmem:[%s7278_s17 + $0x18] sm:$0xff] }
0x5204   :  { %4040 = vrot.lane.b32.xlu1 %v4038_v18, %s6282_s6  ;;  %v4344_v18 = vld [vmem:[%s7277_s16 + $0x20] sm:$0xff] }
0x5276   :  { %v4041_v19 = vpop.permute.xlu1 %4040 }
0x5277   :  { %5605 = vmatmul.mubr.msk.f32.vlgmr.msra.gmra.mrb[46].mxu1 %vm101_vm0, %v4041_v19  ;;  %v4345_v19 = vld [vmem:[%s7277_s16 + $0x28] sm:$0xff] }
0x5278   :  { %5924 = vmatpush3.bf16.msra.mxu1 %v6991_v24  ;;  %5626 = vmatprep.mubr.msk.f32.mxu1 %vm6279_vm1, %v6280_v13 }
0x5279   :  { %5925 = vmatprep.subr.bf16.mxu1 %v6278_v4 }
0x527c   :  { %5927 = vmatpush3.bf16.msra.mxu1 %v7001_v27 }
0x527d   :  { %5934 = vmatprep.subr.bf16.mxu1 %v6278_v4 }
0x534a   :  { %v4110_v21 = vpop.f32.mrb[46].mxu1 }
0x534b   :  { %v4114_v22 = vadd.f32 %v4110_v21, %v3331_v20  ;;  %v5606_v23 = vpop.f32.mrb[47].mxu1  ;;  %v5941_v21 = vpack.c.bf16 %v4345_v19, %v4344_v18 }
0x534c   :  { %v4347_v23 = vld [vmem:[%s7277_s16 + $0x38] sm:$0xff] }
0x534d   :  { %6214 = vtanh.f32 %v4114_v22  ;;  %v4879_v24 = vmul.f32 -1.442695, %v4114_v22  ;;  %v4346_v22 = vld [vmem:[%s7277_s16 + $0x30] sm:$0xff] }
0x534f   :  { %6216 = vpow2.f32 %v4879_v24  ;;  %v4339_v24 = vld [vmem:[%s7297_s30] sm:$0xff] }
0x5357   :  { %v6215_v25 = vpop.eup %6214 }
0x5358   :  { %4124 = vrot.lane.b32.xlu0 %v6215_v25, %s6281_s5  ;;  %v5944_v25 = vpack.c.bf16 %v4347_v23, %v4346_v22 }
0x5359   :  { %v6217_v26 = vpop.eup %6216 }
0x535a   :  { %v4118_v28 = vadd.f32 1.0, %v6217_v26 }
0x535c   :  { %6218 = vrcp.f32 %v4118_v28 }
0x5366   :  { %v6219_v29 = vpop.eup %6218 }
0x5367   :  { %v4122_v30 = vmul.f32 %v6219_v29, %v4032_v9  ;;  %v4350_v9 = vld [vmem:[%s7278_s17 + $0x10] sm:$0xff] }
0x5368   :  { %v5932_v20 = vpack.c.bf16 %v4351_v41, %v4350_v9 }
0x53ca   :  { %v4125_v1 = vpop.permute.xlu0 %4124 }
0x53cb   :  { %v4127_v27 = vmul.f32 %v6219_v29, %v4125_v1 }
0x53cd   :  { %4129 = vrot.lane.b32.xlu1 %v4127_v27, %s6282_s6 }
0x543f   :  { %v4130_v31 = vpop.permute.xlu1 %4129 }
0x5440   :  { %v4132_v42 = vadd.f32 %v4130_v31, %v4122_v30 }
0x5442   :  { %6220 = vtanh.f32 %v4132_v42 }
0x544c   :  { %v6221_v32 = vpop.eup %6220 }
0x544d   :  { %4135 = vrot.lane.b32.xlu0 %v6221_v32, %s6281_s5 }
0x54bf   :  { %v4136_v33 = vpop.permute.xlu0 %4135 }
0x54c0   :  { %v4138_v16 = vmul.f32 %v6219_v29, %v4136_v33  ;;  %v3341_v29 = vadd.f32 %v7067_v50, %v7027_v34 }
0x54c2   :  { %4140 = vrot.lane.b32.xlu1 %v4138_v16, %s6282_s6 }
0x5534   :  { %v4141_v47 = vpop.permute.xlu1 %4140 }
0x5535   :  { %5616 = vmatmul.mubr.msk.f32.vlgmr.msra.gmra.mrb[56].mxu0 %vm101_vm0, %v4141_v47 }
0x5536   :  { %5637 = vmatprep.mubr.msk.f32.mxu0 %vm6279_vm1, %v6280_v13  ;;  %5930 = vmatpush3.bf16.msra.mxu0 %v5929_v11  ;;  %v4890_v11 = vld [vmem:[%s7281_s20] ss:$0 sm:$0xff] }
0x5537   :  { %5931 = vmatprep.subr.bf16.mxu0 %v6278_v4 }
0x553a   :  { %5933 = vmatpush3.bf16.msra.mxu0 %v5932_v20 }
0x553b   :  { %5664 = vmatprep.subr.mxu0 %v6280_v13 }
0x5608   :  { %v4210_v39 = vpop.f32.mrb[56].mxu0 }
0x5609   :  { %v4214_v6 = vadd.f32 %v4210_v39, %v3336_v7  ;;  %v5617_v35 = vpop.f32.mrb[57].mxu0 }
0x560b   :  { %6222 = vtanh.f32 %v4214_v6  ;;  %v4881_v38 = vmul.f32 -1.442695, %v4214_v6 }
0x560d   :  { %6224 = vpow2.f32 %v4881_v38 }
0x5615   :  { %v6223_v36 = vpop.eup %6222 }
0x5616   :  { %4224 = vrot.lane.b32.xlu0 %v6223_v36, %s6281_s5 }
0x5617   :  { %v6225_v40 = vpop.eup %6224 }
0x5618   :  { %v4218_v56 = vadd.f32 1.0, %v6225_v40 }
0x561a   :  { %6226 = vrcp.f32 %v4218_v56 }
0x5624   :  { %v6227_v58 = vpop.eup %6226 }
0x5625   :  { %v4222_v45 = vmul.f32 %v6227_v58, %v4132_v42 }
0x5688   :  { %v4225_v55 = vpop.permute.xlu0 %4224 }
0x5689   :  { %v4227_v44 = vmul.f32 %v6227_v58, %v4225_v55 }
0x568b   :  { %4229 = vrot.lane.b32.xlu1 %v4227_v44, %s6282_s6 }
0x56fd   :  { %v4230_v46 = vpop.permute.xlu1 %4229 }
0x56fe   :  { %v7145_v51 = vadd.f32 %v4230_v46, %v4222_v45  ;;  %v4886_v45 = vld [vmem:[%s7279_s18] ss:$0 sm:$0xff] }
0x5700   :  { %6228 = vtanh.f32 %v7145_v51 }
0x5701   :  { %6230 = vtanh.f32 %v6791_v54 }
0x5702   :  { %6232 = vpow2.f32 %v4823_v37 }
0x570a   :  { %v6229_v48 = vpop.eup %6228 }
0x570b   :  { %4235 = vrot.lane.b32.xlu0 %v6229_v48, %s6281_s5  ;;  %v6231_v49 = vpop.eup %6230 }
0x570c   :  { %v6233_v12 = vpop.eup %6232 }
0x570d   :  { %v1965_v52 = vadd.f32 1.0, %v6233_v12 }
0x570f   :  { %1971 = vrot.lane.b32.xlu0 %v6231_v49, %s6281_s5  ;;  %6234 = vrcp.f32 %v1965_v52  ;;  %v4510_v49 = vld [vmem:[%s7298_s4] sm:$0xff] }
0x5719   :  { %v6235_v57 = vpop.eup %6234 }
0x571a   :  { %v1969_v54 = vmul.f32 %v6235_v57, %v6729_v61  ;;  %v4343_v61 = vld [vmem:[%s7277_s16 + $0x18] sm:$0xff] }
0x571b   :  { %v5938_v17 = vpack.c.bf16 %v4343_v61, %v4342_v0  ;;  %v4677_v0 = vld [vmem:[%s7280_s19 + $0x10] sm:$0xff] }
0x577d   :  { %v4236_v53 = vpop.permute.xlu0 %4235 }
0x577e   :  { %v4238_v43 = vmul.f32 %v6227_v58, %v4236_v53 }
0x5780   :  { %4240 = vrot.lane.b32.xlu1 %v4238_v43, %s6282_s6 }
0x5781   :  { %v1972_v60 = vpop.permute.xlu0 %1971 }
0x5782   :  { %v1974_v63 = vmul.f32 %v6235_v57, %v1972_v60 }
0x5784   :  { %1976 = vrot.lane.b32.xlu1 %v1974_v63, %s6282_s6 }
0x57f2   :  { %v4241_v2 = vpop.permute.xlu1 %4240 }
0x57f3   :  { %5627 = vmatmul.mubr.msk.f32.vlgmr.msra.gmra.mrb[48].mxu1 %vm101_vm0, %v4241_v2 }
0x57f4   :  { %5656 = vmatprep.mubr.msk.f32.mxu1 %vm6279_vm1, %v6280_v13  ;;  %5936 = vmatpush3.bf16.msra.mxu1 %v5935_v15  ;;  %v4678_v15 = vld [vmem:[%s7280_s19 + $0x18] sm:$0xff] }
0x57f5   :  { %5937 = vmatprep.subr.bf16.mxu1 %v6278_v4  ;;  %v5950_v61 = vpack.c.bf16 %v4678_v15, %v4677_v0 }
0x57f6   :  { %v1977_v3 = vpop.permute.xlu1 %1976 }
0x57f7   :  { %v1979_v5 = vadd.f32 %v1977_v3, %v1969_v54  ;;  %v4675_v3 = vld [vmem:[%s7280_s19] sm:$0xff] }
0x57f8   :  { %5939 = vmatpush3.bf16.msra.mxu1 %v5938_v17 }
0x57f9   :  { %6236 = vtanh.f32 %v1979_v5  ;;  %5940 = vmatprep.subr.bf16.mxu1 %v6278_v4  ;;  %v4676_v5 = vld [vmem:[%s7280_s19 + $0x8] sm:$0xff]  ;;  %s6283_s19 = smov [#allocation4]  }
0x57fa   :  { %v5947_v10 = vpack.c.bf16 %v4676_v5, %v4675_v3  ;;  %s4768_s7 = sshll.u32 %s6283_s19, 4  ;;  %s4769_s7 = int_to_ptr.vmem [resolvable:$true] %s4768_s7 }
0x57fb   :  { %s6254_s3 = scalar_lea.vmem %s4769_s7, 128  ;;  %p6259_p1 = scmp.lt.s32.totalorder %s4769_s7, %s4769_s7 }
0x57fc   :  { %5942 = vmatpush3.bf16.msra.mxu1 %v5941_v21  ;;  %p6255_p0 = scmp.ne.s32.totalorder %s4769_s7, %s6254_s3  ;;  %p6260_p2 = scmp.lt.s32.totalorder %s6254_s3, %s6254_s3 }
0x57fd   :  { %5943 = vmatprep.subr.bf16.mxu1 %v6278_v4 }
0x57fe   :  { %p6261_p3 = por %p6260_p2, %p6259_p1 }
0x5800   :  { %5945 = vmatpush3.bf16.msra.mxu1 %v5944_v25  ;;  %p6262_p4 = pnand %p6261_p3, %p6255_p0 }
0x5801   :  { %5659 = vmatprep.subr.mxu1 %v6280_v13 }
0x5803   :  { %v6237_v8 = vpop.eup %6236  ;;  %5657 = vmatmul.mubr.msk.f32.vlgmr.msra.gmra.mrb[50].mxu1 %vm4427_vm2, %v4339_v24 }
0x5804   :  { %1982 = vrot.lane.b32.xlu0 %v6237_v8, %s6281_s5  ;;  %5661 = vmatprep.mubr.msk.f32.mxu1 %vm6279_vm1, %v6280_v13 }
0x5876   :  { %v1983_v26 = vpop.permute.xlu0 %1982 }
0x5877   :  { %v1985_v28 = vmul.f32 %v6235_v57, %v1983_v26 }
0x5879   :  { %4353 = vrot.lane.b32.xlu1 %v1985_v28, %s6282_s6 }
0x58c6   :  { %v4310_v1 = vpop.f32.mrb[48].mxu1 }
0x58c7   :  { %v4314_v27 = vadd.f32 %v4310_v1, %v3341_v29  ;;  %v5628_v30 = vpop.f32.mrb[49].mxu1 }
0x58c9   :  { %6238 = vtanh.f32 %v4314_v27  ;;  %v4883_v32 = vmul.f32 -1.442695, %v4314_v27 }
0x58cb   :  { %6240 = vpow2.f32 %v4883_v32 }
0x58d3   :  { %v6239_v31 = vpop.eup %6238 }
0x58d4   :  { %4324 = vrot.lane.b32.xlu0 %v6239_v31, %s6281_s5 }
0x58d5   :  { %v6241_v33 = vpop.eup %6240 }
0x58d6   :  { %v4318_v16 = vadd.f32 1.0, %v6241_v33  ;;  %v4497_v47 = vpop.f32.mrb[50].mxu1 }
0x58d7   :  { %v5658_v34 = vpop.f32.mrb[51].mxu1 }
0x58d8   :  { %6242 = vrcp.f32 %v4318_v16 }
0x58e2   :  { %v6243_v50 = vpop.eup %6242 }
0x58e3   :  { %v4322_v6 = vmul.f32 %v6243_v50, %v7145_v51 }
0x58eb   :  { %v4354_v42 = vpop.permute.xlu1 %4353 }
0x58ec   :  { %5638 = vmatmul.mubr.msk.f32.vlgmr.msra.gmra.mrb[58].mxu0 %vm101_vm0, %v4354_v42 }
0x58ed   :  { %5666 = vmatprep.mubr.msk.f32.mxu0 %vm6279_vm1, %v6280_v13 }
0x5946   :  { %v4325_v7 = vpop.permute.xlu0 %4324 }
0x5947   :  { %v4327_v39 = vmul.f32 %v6243_v50, %v4325_v7 }
0x5949   :  { %4329 = vrot.lane.b32.xlu1 %v4327_v39, %s6282_s6 }
0x59bb   :  { %v4330_v35 = vpop.permute.xlu1 %4329 }
0x59bc   :  { %v4332_v36 = vadd.f32 %v4330_v35, %v4322_v6 }
0x59be   :  { %6244 = vtanh.f32 %v4332_v36 }
0x59bf   :  { %v4423_v38 = vpop.f32.mrb[58].mxu0 }
0x59c0   :  { %v4498_v40 = vadd.f32 %v4497_v47, %v4423_v38  ;;  %v5639_v56 = vpop.f32.mrb[59].mxu0 }
0x59c2   :  { %v4508_v46 = vadd.f32 %v4886_v45, %v4498_v40 }
0x59c4   :  { %6246 = vtanh.f32 %v4508_v46 }
0x59c8   :  { %v6245_v58 = vpop.eup %6244 }
0x59c9   :  { %4335 = vrot.lane.b32.xlu0 %v6245_v58, %s6281_s5 }
0x59ce   :  { %v6247_v48 = vpop.eup %6246 }
0x5a3b   :  { %v4336_v55 = vpop.permute.xlu0 %4335 }
0x5a3c   :  { %v4338_v44 = vmul.f32 %v6243_v50, %v4336_v55 }
0x5a3e   :  { %4512 = vrot.lane.b32.xlu1 %v4338_v44, %s6282_s6 }
0x5ab0   :  { %v4513_v51 = vpop.permute.xlu1 %4512 }
0x5ab1   :  { %5660 = vmatpush3.xpose.msk.msra.mxu1 %vm101_vm0, %v4513_v51  ;;  %5665 = vmatpush3.msra.mxu0 %v4513_v51 }
0x5ab2   :  { %5946 = vmatprep.subr.bf16.mxu0 %v6278_v4 }
0x5ab4   :  { %5662 = vmatmul.mubr.msk.f32.vlgmr.msra.gmra.mrb[52].mxu1 %vm101_vm0, %v6247_v48 }
0x5b87   :  { %v4585_v37 = vpop.f32.mrb[52].mxu1 }
0x5b88   :  { %v4586_v12 = vadd.f32 %v4585_v37, %v4510_v49  ;;  %v5663_v52 = vpop.f32.mrb[53].mxu1 }
0x5b8a   :  { %v4590_v53 = vsel %vm4589_vm3, %v4586_v12, -inf }
0x5b8b   :  { %4591 = vmax.xlane.f32.xlu0 %v4590_v53 }
0x5c18   :  { %v4592_v43 = vpop.xlane.xlu0 %4591 }
0x5c19   :  { %v4593_v57 = vsub.f32 %v4586_v12, %v4592_v43 }
0x5c1b   :  { %v4594_v60 = vmul.f32 1.442695, %v4593_v57 }
0x5c1d   :  { %6248 = vpow2.f32 %v4594_v60 }
0x5c27   :  { %v6249_v63 = vpop.eup %6248 }
0x5c28   :  { %v4596_v2 = vsel %vm4589_vm3, %v6249_v63, 0.0 }
0x5c29   :  { %4597 = vadd.xlane.f32.xlu1 %v4596_v2 }
0x5cb6   :  { %v4598_v54 = vpop.xlane.xlu1 %4597 }
0x5cb7   :  { %6250 = vrcp.f32 %v4598_v54 }
0x5cc1   :  { %v6251_v8 = vpop.eup %6250 }
0x5cc2   :  { %v4600_v14 = vmul.f32 %v6251_v8, %v6249_v63 }
0x5cc4   :  { %5667 = vmatmul.mubr.msk.f32.vlgmr.msra.gmra.mrb[60].mxu0 %vm4589_vm3, %v4600_v14 }
0x5cc5   :  { %5948 = vmatpush3.bf16.msra.mxu0 %v5947_v10  ;;  %5677 = vmatprep.mubr.msk.f32.mxu0 %vm6279_vm1, %v6280_v13 }
0x5cc6   :  { %5949 = vmatprep.subr.bf16.mxu0 %v6278_v4 }
0x5cc9   :  { %5951 = vmatpush3.bf16.msra.mxu0 %v5950_v61 }
0x5d97   :  { %v4671_v62 = vpop.f32.mrb[60].mxu0 }
0x5d98   :  { %v5668_v59 = vpop.f32.mrb[61].mxu0  ;;  %5678 = vmatmul.mubr.msk.f32.vlgmr.msra.gmra.mrb[62].mxu0 %vm101_vm0, %v4671_v62 }
0x5e6b   :  { %v4755_v9 = vpop.f32.mrb[62].mxu0 }
0x5e6c   :  { %v4756_v17 = vadd.f32 %v4890_v11, %v4755_v9  ;;  %v5679_v41 = vpop.f32.mrb[63].mxu0 }
0x5e6e   :  { %6252 = vtanh.f32 %v4756_v17 }
0x5e78   :  { %v6253_v18 = vpop.eup %6252 }
0x5e79   :  { %v4760_v19 = vadd.f32 %v6253_v18, %v6247_v48 }
0x5e7b   :  { %4761 = vst.msk [vmem:[#allocation4] sm:$0xff] %vm101_vm0, %v4760_v19 }
0x5e7c   :  { %6265 = shalt.err (!%p6262_p4)
}
0x5e7d   :  { %s6266_s29 = scalar_lea.hbm %s7282_s21, 128 }
0x5e7e   :  { %p6267_p5 = scmp.ne.s32.totalorder %s7282_s21, %s6266_s29  ;;  %p6270_p6 = scmp.lt.u32.totalorder %s6266_s29, %s7282_s21 }
0x5e80   :  { %p6272_p7 = pnand %p6270_p6, %p6267_p5 }
0x5e82   :  { %6275 = shalt.err (!%p6272_p7)
}
0x5e83   :  { %4771 = dma.vmem_to_hbm [thread:$0]  %s4769_s7, 128, %s7282_s21, [#allocation5]  }
0x5e84   :  { %6276 = dma.done.wait [#allocation5], 128  }
0x5e85   :  { %6277 = vsyncadd [#allocation5], 4294967168 }
0x5e86   :  { %4775 = vsyncpa [#allocation5], 1 }

</bundles_post_ra>
